<compile_context>
chip_gen: v7x
topology: tpu7x:2x2x1
jax: 0.10.0
libtpu: 0.0.40
codegen_flags: <defaults>
</compile_context>

<pallas_src>
import functools
import math

import jax
import jax.numpy as jnp
from jax import lax
from jax.experimental import pallas as pl
from jax.experimental.pallas import tpu as pltpu

_LN_EPS = 1e-5
_HIGH = lax.Precision.HIGHEST


# --------------------------------------------------------------------------
# chip-aware tiling / VMEM knobs
# --------------------------------------------------------------------------
def _tpu_vmem_bytes():
    try:
        return int(pltpu.get_tpu_info().vmem_capacity_bytes)
    except Exception:
        return 64 * 1024 * 1024          # conservative (v7x-sized) fallback


_VMEM_BYTES = _tpu_vmem_bytes()
# v5e/v6e (128 MiB VMEM): 1024-wide lane tiles, generous scoped limit.
# v7x (64 MiB / TC) or unknown: 512-wide lane tiles, 32 MiB scoped limit.
_LANE_CAP = 1024 if _VMEM_BYTES >= 100 * 1024 * 1024 else 512
_VMEM_LIMIT = int(min(96 * 1024 * 1024,
                      max(32 * 1024 * 1024, _VMEM_BYTES // 2)))


# --------------------------------------------------------------------------
# small helpers
# --------------------------------------------------------------------------
def _gelu_exact(x):
    # nn.GELU() default (erf-based)
    return 0.5 * x * (1.0 + lax.erf(x * (1.0 / math.sqrt(2.0))))


def _silu(x):
    return x * jax.nn.sigmoid(x)


def _pick_lane_tile(n, cap):
    """Largest lane tile: full extent if small/odd, else a 128-mult divisor."""
    if n <= cap or n % 128 != 0:
        return n
    t = cap - (cap % 128)
    while t >= 128:
        if n % t == 0:
            return t
        t -= 128
    return n


def _k2_lane_cap(d, np_tokens):
    # Keep the (d, Np, Np, Gt) broadcast intermediates of K2 around ~4 MiB,
    # while keeping each grid step well above ~512 KB of moved data.
    budget = 4 * 1024 * 1024
    cap = budget // max(1, 4 * d * np_tokens * np_tokens)
    cap = max(128, (cap // 128) * 128)
    return int(min(cap, _LANE_CAP))


def _adaln(t, params):
    # Hoisted adaLN modulation: tiny (B,C)x(C,6C) matmul, shared by kernel path
    # and reference so both see identical shift/scale/gate values.
    return jnp.matmul(_silu(t), params['w_ada'], precision=_HIGH) + params['b_ada']


def _depthwise_conv3x3(x, w, b):
    # TODO(synk): 3x3 depthwise LePE conv (get_v) stays in XLA — no clean
    # Pallas win at these strip sizes.
    out = lax.conv_general_dilated(
        x, w, window_strides=(1, 1), padding=((1, 1), (1, 1)),
        dimension_numbers=('NCHW', 'OIHW', 'NCHW'),
        feature_group_count=x.shape[1], precision=_HIGH)
    return out + b[None, :, None, None]


# --------------------------------------------------------------------------
# K1: LayerNorm1 + modulate + QKV projection (channel-major)
# --------------------------------------------------------------------------
def _ln_mod_qkv_kernel(x_ref, shift_ref, scale_ref, g_ref, bln_ref, w_ref,
                       b_ref, o_ref):
    x = x_ref[0]                                            # (C, Tn)
    # single-pass LN statistics (one read of x, two reductions)
    mu = jnp.mean(x, axis=0, keepdims=True)
    ex2 = jnp.mean(x * x, axis=0, keepdims=True)
    var = jnp.maximum(ex2 - mu * mu, 0.0)
    y = (x - mu) * lax.rsqrt(var + _LN_EPS) * g_ref[...] + bln_ref[...]
    y = y * (1.0 + scale_ref[0]) + shift_ref[0]             # modulate
    o_ref[0] = (jnp.dot(w_ref[...], y, preferred_element_type=jnp.float32)
                + b_ref[...])                               # (3C, Tn)


def ln_mod_qkv(x_cm, shift, scale, ln_g, ln_b, w_qkv, b_qkv):
    B, C, N = x_cm.shape
    C3 = w_qkv.shape[0]
    tn = _pick_lane_tile(N, _LANE_CAP)
    cost = pl.CostEstimate(
        flops=2 * B * N * C * C3 + 12 * B * N * C,
        transcendentals=B * N,
        bytes_accessed=4 * (B * C * N + B * C3 * N + C3 * C + C3 + 4 * C))
    return pl.pallas_call(
        _ln_mod_qkv_kernel,
        out_shape=jax.ShapeDtypeStruct((B, C3, N), jnp.float32),
        grid=(B, N // tn),
        in_specs=[
            pl.BlockSpec((1, C, tn), lambda b, j: (b, 0, j)),
            pl.BlockSpec((1, C, 1), lambda b, j: (b, 0, 0)),
            pl.BlockSpec((1, C, 1), lambda b, j: (b, 0, 0)),
            pl.BlockSpec((C, 1), lambda b, j: (0, 0)),
            pl.BlockSpec((C, 1), lambda b, j: (0, 0)),
            pl.BlockSpec((C3, C), lambda b, j: (0, 0)),
            pl.BlockSpec((C3, 1), lambda b, j: (0, 0)),
        ],
        out_specs=pl.BlockSpec((1, C3, tn), lambda b, j: (b, 0, j)),
        compiler_params=pltpu.CompilerParams(
            dimension_semantics=("parallel", "parallel"),
            vmem_limit_bytes=_VMEM_LIMIT),
        cost_estimate=cost,
    )(x_cm, shift, scale, ln_g, ln_b, w_qkv, b_qkv)


# --------------------------------------------------------------------------
# K2: CSWin/LePE strip attention, group axis on lanes (softmax(q k^T) v + lepe)
# --------------------------------------------------------------------------
def _lepe_attn_kernel(q_ref, k_ref, v_ref, lepe_ref, o_ref, *, scale):
    # Refs are (d, Np, Gt): the huge group axis G sits on the 128-wide lane
    # dimension so every multiply / exp below is vectorised over Gt groups and
    # the output stores are lane-dense.  The per-group matmuls are only
    # Np x Np x d, so everything stays on the VPU/XLU/EUP (no MXU misuse).
    q = q_ref[...] * scale
    k = k_ref[...]
    v = v_ref[...]
    # s[n, m, g] = sum_d q[d, n, g] * k[d, m, g]   (reduce over an outer axis)
    s = jnp.sum(q[:, :, None, :] * k[:, None, :, :], axis=0)      # (Np, Np, Gt)
    s = s - jnp.max(s, axis=1, keepdims=True)
    p = jnp.exp(s)
    # pl.reciprocal keeps the divide on the EUP; approx=True would be a further
    # free win but is kept off to hold the 1e-3 check vs. the f32 reference.
    p = p * pl.reciprocal(jnp.sum(p, axis=1, keepdims=True), approx=False)
    # o[d, n, g] = sum_m p[n, m, g] * v[d, m, g]
    o = jnp.sum(p[None, :, :, :] * v[:, None, :, :], axis=2)      # (d, Np, Gt)
    o_ref[...] = o + lepe_ref[...]


def lepe_strip_attention(q, k, v, lepe, *, scale):
    d, Np, G = q.shape
    tg = _pick_lane_tile(G, _k2_lane_cap(d, Np))
    spec = pl.BlockSpec((d, Np, tg), lambda i: (0, 0, i))
    return pl.pallas_call(
        functools.partial(_lepe_attn_kernel, scale=scale),
        out_shape=jax.ShapeDtypeStruct((d, Np, G), jnp.float32),
        grid=(G // tg,),
        in_specs=[spec, spec, spec, spec],
        out_specs=spec,
        compiler_params=pltpu.CompilerParams(
            dimension_semantics=("parallel",),
            vmem_limit_bytes=_VMEM_LIMIT),
    )(q, k, v, lepe)


# --------------------------------------------------------------------------
# K3: WindowAttention.proj fused with RSAttention (channel attention)
#     - per-head qkv computed inside a fori_loop (low peak VMEM)
#     - per-head outputs written straight into a VMEM scratch (no concat)
# --------------------------------------------------------------------------
def _rsa_kernel(x_ref, wp_ref, bp_ref, wqkv_ref, scale_ref, wout_ref, o_ref,
                acc_ref, *, num_heads):
    # proj (Linear dim->dim, with the 'b n (g d)->b n (d g)' permutation folded
    # into its columns) applied channel-major; its output is both the RSA
    # input and the residual.
    xin = (jnp.dot(wp_ref[...], x_ref[0], preferred_element_type=jnp.float32)
           + bp_ref[...])                                   # (C, N)
    C = xin.shape[0]
    dh = C // num_heads

    def head_body(h, carry):
        off = h * dh
        if dh % 8 == 0:
            off = pl.multiple_of(off, 8)
        wq = wqkv_ref[pl.ds(off, dh), :]                    # (dh, C)
        wk = wqkv_ref[pl.ds(C + off, dh), :]
        wv = wqkv_ref[pl.ds(2 * C + off, dh), :]
        qh = jnp.dot(wq, xin, preferred_element_type=jnp.float32)   # (dh, N)
        kh = jnp.dot(wk, xin, preferred_element_type=jnp.float32)
        vh = jnp.dot(wv, xin, preferred_element_type=jnp.float32)
        qn = qh * lax.rsqrt(
            jnp.maximum(jnp.sum(qh * qh, axis=-1, keepdims=True), 1e-24))
        kn = kh * lax.rsqrt(
            jnp.maximum(jnp.sum(kh * kh, axis=-1, keepdims=True), 1e-24))
        attn = lax.dot_general(qn, kn, (((1,), (1,)), ((), ())),
                               preferred_element_type=jnp.float32)  # (dh, dh)
        attn = attn * scale_ref[h]                          # per-head scale (SMEM)
        attn = attn - jnp.max(attn, axis=-1, keepdims=True)
        attn = jnp.exp(attn)
        attn = attn * pl.reciprocal(jnp.sum(attn, axis=-1, keepdims=True),
                                    approx=False)
        acc_ref[pl.ds(off, dh), :] = jnp.dot(
            attn, vh, preferred_element_type=jnp.float32)
        return carry

    lax.fori_loop(0, num_heads, head_body, 0)
    o_ref[0] = (jnp.dot(wout_ref[...], acc_ref[...],
                        preferred_element_type=jnp.float32) + xin)


def proj_rsa_attention(x_cm, w_proj, b_proj, w_rsa_qkv, rsa_scale, w_rsa_out,
                       *, num_heads):
    # TODO(synk): when B == 1 on a 2-TC chip (v7x), add a second parallel grid
    # axis (heads or N-tiles with a reduction pass) so both cores get work.
    B, C, N = x_cm.shape
    C3 = w_rsa_qkv.shape[0]
    return pl.pallas_call(
        functools.partial(_rsa_kernel, num_heads=num_heads),
        out_shape=jax.ShapeDtypeStruct((B, C, N), jnp.float32),
        grid=(B,),
        in_specs=[
            pl.BlockSpec((1, C, N), lambda b: (b, 0, 0)),
            pl.BlockSpec((C, C), lambda b: (0, 0)),
            pl.BlockSpec((C, 1), lambda b: (0, 0)),
            pl.BlockSpec((C3, C), lambda b: (0, 0)),
            pl.BlockSpec(memory_space=pltpu.MemorySpace.SMEM),
            pl.BlockSpec((C, C), lambda b: (0, 0)),
        ],
        out_specs=pl.BlockSpec((1, C, N), lambda b: (b, 0, 0)),
        scratch_shapes=[pltpu.VMEM((C, N), jnp.float32)],
        compiler_params=pltpu.CompilerParams(
            dimension_semantics=("parallel",),
            vmem_limit_bytes=_VMEM_LIMIT),
    )(x_cm, w_proj, b_proj, w_rsa_qkv, rsa_scale, w_rsa_out)


# --------------------------------------------------------------------------
# K4: gated residual + LayerNorm2 + modulate + MLP + gated residual
# --------------------------------------------------------------------------
def _fused_mlp_kernel(short_ref, spec_ref, gmsa_ref, sh_ref, sc_ref, gmlp_ref,
                      g2_ref, b2_ref, w1_ref, bb1_ref, w2_ref, bb2_ref, o_ref):
    x = short_ref[0] + gmsa_ref[0] * spec_ref[0]            # (C, Tn)
    mu = jnp.mean(x, axis=0, keepdims=True)
    ex2 = jnp.mean(x * x, axis=0, keepdims=True)
    var = jnp.maximum(ex2 - mu * mu, 0.0)
    y = (x - mu) * lax.rsqrt(var + _LN_EPS) * g2_ref[...] + b2_ref[...]
    y = y * (1.0 + sc_ref[0]) + sh_ref[0]
    h = jnp.dot(w1_ref[...], y, preferred_element_type=jnp.float32) + bb1_ref[...]
    h = _gelu_exact(h)
    y2 = jnp.dot(w2_ref[...], h, preferred_element_type=jnp.float32) + bb2_ref[...]
    o_ref[0] = x + gmlp_ref[0] * y2


def fused_residual_mlp(short_cm, spec_cm, gate_msa, shift_mlp, scale_mlp,
                       gate_mlp, ln2_g, ln2_b, w1, b1, w2, b2):
    B, C, N = short_cm.shape
    Hd = w1.shape[0]
    tn = _pick_lane_tile(N, _LANE_CAP)
    cost = pl.CostEstimate(
        flops=4 * B * N * C * Hd + 20 * B * N * C,
        transcendentals=B * N * (Hd + 1),
        bytes_accessed=4 * (3 * B * C * N + 2 * C * Hd + Hd + 6 * C))
    vec = pl.BlockSpec((1, C, 1), lambda b, j: (b, 0, 0))
    tile = pl.BlockSpec((1, C, tn), lambda b, j: (b, 0, j))
    return pl.pallas_call(
        _fused_mlp_kernel,
        out_shape=jax.ShapeDtypeStruct((B, C, N), jnp.float32),
        grid=(B, N // tn),
        in_specs=[
            tile, tile, vec, vec, vec, vec,
            pl.BlockSpec((C, 1), lambda b, j: (0, 0)),
            pl.BlockSpec((C, 1), lambda b, j: (0, 0)),
            pl.BlockSpec((Hd, C), lambda b, j: (0, 0)),
            pl.BlockSpec((Hd, 1), lambda b, j: (0, 0)),
            pl.BlockSpec((C, Hd), lambda b, j: (0, 0)),
            pl.BlockSpec((C, 1), lambda b, j: (0, 0)),
        ],
        out_specs=tile,
        compiler_params=pltpu.CompilerParams(
            dimension_semantics=("parallel", "parallel"),
            vmem_limit_bytes=_VMEM_LIMIT),
        cost_estimate=cost,
    )(short_cm, spec_cm, gate_msa, shift_mlp, scale_mlp, gate_mlp,
      ln2_g, ln2_b, w1, b1, w2, b2)


# --------------------------------------------------------------------------
# Full S2TLA forward (Pallas kernels + XLA layout glue)
# --------------------------------------------------------------------------
def s2tla_forward(x, t, params, *, window_size, num_heads, split_size=1,
                  shift_size=0):
    B, C, H, W = x.shape
    N = H * W
    Ch = C // 2
    heads_b = num_heads // 2
    d = Ch // heads_b
    ws = window_size

    ada = _adaln(t, params)                                 # (B, 6C), hoisted
    (shift_msa, scale_msa, gate_msa,
     shift_mlp, scale_mlp, gate_mlp) = jnp.split(ada, 6, axis=1)

    def col(v):
        return v[:, :, None]                                # (B, C, 1)

    x_cm = x.reshape(B, C, N)                               # channel-major view

    # K1: LN1 + modulate + QKV projection.
    # TODO(synk): emitting q/k/v pre-split per LePE branch from K1 would shave
    # one more full-tensor HBM permute off the glue below.
    qkv_cm = ln_mod_qkv(x_cm, col(shift_msa), col(scale_msa),
                        params['ln1_g'], params['ln1_b'],
                        params['w_qkv'], params['b_qkv'])   # (B, 3C, N)

    qkv_sp = qkv_cm.reshape(B, 3, C, H, W)
    if shift_size > 0:
        qkv_sp = jnp.roll(qkv_sp, (-shift_size, -shift_size), axis=(3, 4))

    nH, nW = H // ws, W // ws
    Bp = B * nH * nW
    qkv_w = (qkv_sp.reshape(B, 3, C, nH, ws, nW, ws)
             .transpose(0, 3, 5, 1, 2, 4, 6)
             .reshape(Bp, 3, C, ws, ws))                    # window partition

    # Strip partition per branch directly into the lane-major (d, Np, G) layout
    # expected by K2; LePE depthwise conv stays in XLA.
    Np = ws * split_size
    qs, ks, vs, ls, branch_meta = [], [], [], [], []
    for idx in range(2):
        if idx == 0:
            H_sp, W_sp = ws, split_size
        else:
            H_sp, W_sp = split_size, ws
        nHs, nWs = ws // H_sp, ws // W_sp
        Gs = Bp * nHs * nWs
        qkv_b = qkv_w[:, :, idx * Ch:(idx + 1) * Ch]        # (Bp, 3, Ch, ws, ws)
        qkv_s = (qkv_b.reshape(Bp, 3, Ch, nHs, H_sp, nWs, W_sp)
                 .transpose(0, 3, 5, 1, 2, 4, 6)
                 .reshape(Gs, 3, Ch, H_sp, W_sp))           # strip partition
        v_strips = qkv_s[:, 2]
        lepe = _depthwise_conv3x3(v_strips, params[f'getv_w{idx}'],
                                  params[f'getv_b{idx}'])

        def to_lane_major(z):                               # (Gs,Ch,Hs,Ws)->(d,Np,Gs*hb)
            return (z.reshape(Gs, heads_b, d, Np).transpose(2, 3, 0, 1)
                    .reshape(d, Np, Gs * heads_b))

        qs.append(to_lane_major(qkv_s[:, 0]))
        ks.append(to_lane_major(qkv_s[:, 1]))
        vs.append(to_lane_major(v_strips))
        ls.append(to_lane_major(lepe))
        branch_meta.append((H_sp, W_sp, nHs, nWs, Gs))

    q_all = jnp.concatenate(qs, axis=-1)                    # (d, Np, G_all)
    k_all = jnp.concatenate(ks, axis=-1)
    v_all = jnp.concatenate(vs, axis=-1)
    l_all = jnp.concatenate(ls, axis=-1)

    # K2: both LePE branches in one lane-major strip-attention kernel.
    o_all = lepe_strip_attention(q_all, k_all, v_all, l_all,
                                 scale=d ** (-0.5))          # (d, Np, G_all)

    branch_outs = []
    goff = 0
    for idx in range(2):
        H_sp, W_sp, nHs, nWs, Gs = branch_meta[idx]
        gb = Gs * heads_b
        ob = o_all[:, :, goff:goff + gb]
        goff += gb
        o_strip = (ob.reshape(d, Np, Gs, heads_b).transpose(2, 3, 0, 1)
                   .reshape(Gs, Ch, H_sp, W_sp))            # undo lane-major
        o_win = (o_strip.reshape(Bp, nHs, nWs, Ch, H_sp, W_sp)
                 .transpose(0, 3, 1, 4, 2, 5)
                 .reshape(Bp, Ch, ws, ws))                  # strips -> window
        branch_outs.append(o_win)

    xcat = jnp.concatenate(branch_outs, axis=1)             # (Bp, C, ws, ws)
    # NOTE: the channel permutation 'b n (g d) -> b n (d g)' (g=4) is folded
    # into w_proj's columns below, so no permute of the activations is needed.
    xr = (xcat.reshape(B, nH, nW, C, ws, ws).transpose(0, 3, 1, 4, 2, 5)
          .reshape(B, C, H, W))                             # window_reverse
    if shift_size > 0:
        xr = jnp.roll(xr, (shift_size, shift_size), axis=(2, 3))

    w_proj_folded = (params['w_proj'].reshape(C, C // 4, 4)
                     .transpose(0, 2, 1).reshape(C, C))

    # K3: WindowAttention.proj + RSAttention (fused).
    spec_cm = proj_rsa_attention(xr.reshape(B, C, N),
                                 w_proj_folded, params['b_proj'],
                                 params['w_rsa_qkv'], params['rsa_scale'],
                                 params['w_rsa_out'], num_heads=num_heads)

    # K4: gated residual + LN2 + modulate + MLP + gated residual.
    out_cm = fused_residual_mlp(x_cm, spec_cm, col(gate_msa), col(shift_mlp),
                                col(scale_mlp), col(gate_mlp),
                                params['ln2_g'], params['ln2_b'],
                                params['w_fc1'], params['b_fc1'],
                                params['w_fc2'], params['b_fc2'])
    return out_cm.reshape(B, C, H, W)


# --------------------------------------------------------------------------
# Pure-JAX reference mirroring the PyTorch forward
# --------------------------------------------------------------------------
def _mm(a, b):
    return jnp.matmul(a, b, precision=_HIGH)


def _layernorm_lastdim(x, g, b):
    mu = jnp.mean(x, axis=-1, keepdims=True)
    xc = x - mu
    var = jnp.mean(xc * xc, axis=-1, keepdims=True)
    return xc * lax.rsqrt(var + _LN_EPS) * g + b


def _lepe_attn_ref(qkv, wv, bv, *, resolution, H_sp, W_sp, num_heads):
    q, k, v = qkv[0], qkv[1], qkv[2]                        # (Bp, Nw, Cb)
    Bp, _, Cb = q.shape
    H = W = resolution
    dh = Cb // num_heads
    scale = dh ** (-0.5)
    nHs, nWs = H // H_sp, W // W_sp

    def im2cswin(z):
        zz = z.transpose(0, 2, 1).reshape(Bp, Cb, H, W)
        zz = (zz.reshape(Bp, Cb, nHs, H_sp, nWs, W_sp).transpose(0, 2, 4, 3, 5, 1)
              .reshape(-1, H_sp * W_sp, Cb))
        return zz.reshape(-1, H_sp * W_sp, num_heads, dh).transpose(0, 2, 1, 3)

    qh, kh = im2cswin(q), im2cswin(k)
    vv = v.transpose(0, 2, 1).reshape(Bp, Cb, H, W)
    vv = (vv.reshape(Bp, Cb, nHs, H_sp, nWs, W_sp).transpose(0, 2, 4, 1, 3, 5)
          .reshape(-1, Cb, H_sp, W_sp))
    lepe = _depthwise_conv3x3(vv, wv, bv)
    lepe = lepe.reshape(-1, num_heads, dh, H_sp * W_sp).transpose(0, 1, 3, 2)
    vh = vv.reshape(-1, num_heads, dh, H_sp * W_sp).transpose(0, 1, 3, 2)

    attn = _mm(qh * scale, jnp.swapaxes(kh, -2, -1))
    attn = jax.nn.softmax(attn, axis=-1)
    out = _mm(attn, vh) + lepe
    out = out.transpose(0, 2, 1, 3).reshape(-1, H_sp * W_sp, Cb)
    out = (out.reshape(Bp, nHs, nWs, H_sp, W_sp, Cb).transpose(0, 1, 3, 2, 4, 5)
           .reshape(Bp, H * W, Cb))
    return out


def _window_attention_ref(xwin, p, *, num_heads, resolution, split_size):
    Bp, Nw, C = xwin.shape
    Ch = C // 2
    qkv = _mm(xwin, p['w_qkv'].T) + p['b_qkv'][:, 0]
    qkv = qkv.reshape(Bp, Nw, 3, C).transpose(2, 0, 1, 3)   # (3, Bp, Nw, C)
    x1 = _lepe_attn_ref(qkv[:, :, :, :Ch], p['getv_w0'], p['getv_b0'],
                        resolution=resolution, H_sp=resolution, W_sp=split_size,
                        num_heads=num_heads // 2)
    x2 = _lepe_attn_ref(qkv[:, :, :, Ch:], p['getv_w1'], p['getv_b1'],
                        resolution=resolution, H_sp=split_size, W_sp=resolution,
                        num_heads=num_heads // 2)
    xcat = jnp.concatenate([x1, x2], axis=2)
    xcat = xcat.reshape(Bp, Nw, 4, C // 4).transpose(0, 1, 3, 2).reshape(Bp, Nw, C)
    return _mm(xcat, p['w_proj'].T) + p['b_proj'][:, 0]


def _rsa_ref(x, p, *, num_heads):
    B, C, H, W = x.shape
    resid = x
    qkv = jnp.einsum('oc,bchw->bohw', p['w_rsa_qkv'], x, precision=_HIGH)
    q, k, v = jnp.split(qkv, 3, axis=1)

    def heads(z):
        return z.reshape(B, num_heads, C // num_heads, H * W)

    q, k, v = heads(q), heads(k), heads(v)
    qn = q / jnp.maximum(jnp.sqrt(jnp.sum(q * q, -1, keepdims=True)), 1e-12)
    kn = k / jnp.maximum(jnp.sqrt(jnp.sum(k * k, -1, keepdims=True)), 1e-12)
    attn = _mm(qn, jnp.swapaxes(kn, -2, -1)) * p['rsa_scale'][None, :, None, None]
    attn = jax.nn.softmax(attn, axis=-1)
    out = _mm(attn, v).reshape(B, C, H, W)
    out = jnp.einsum('oc,bchw->bohw', p['w_rsa_out'], out, precision=_HIGH)
    return out + resid


def s2tla_reference(x, t, p, *, window_size, num_heads, split_size=1,
                    shift_size=0):
    B, C, H, W = x.shape
    N = H * W
    ws = window_size
    ada = _adaln(t, p)
    (shift_msa, scale_msa, gate_msa,
     shift_mlp, scale_mlp, gate_mlp) = jnp.split(ada, 6, axis=1)

    xt = x.reshape(B, C, N).transpose(0, 2, 1)              # (B, N, C)
    shortcut = xt
    xn = _layernorm_lastdim(xt, p['ln1_g'][:, 0], p['ln1_b'][:, 0])
    xm = xn * (1.0 + scale_msa[:, None, :]) + shift_msa[:, None, :]
    xw = xm.reshape(B, H, W, C)
    if shift_size > 0:
        xw = jnp.roll(xw, (-shift_size, -shift_size), axis=(1, 2))
    xwin = (xw.reshape(B, H // ws, ws, W // ws, ws, C).transpose(0, 1, 3, 2, 4, 5)
            .reshape(-1, ws * ws, C))
    attn_windows = _window_attention_ref(xwin, p, num_heads=num_heads,
                                         resolution=ws, split_size=split_size)
    xr = (attn_windows.reshape(B, H // ws, W // ws, ws, ws, C)
          .transpose(0, 1, 3, 2, 4, 5).reshape(B, H, W, C))
    if shift_size > 0:
        xr = jnp.roll(xr, (shift_size, shift_size), axis=(1, 2))
    xsp = xr.reshape(B, N, C).transpose(0, 2, 1).reshape(B, C, H, W)
    xsp = _rsa_ref(xsp, p, num_heads=num_heads)
    xsp = xsp.reshape(B, C, N).transpose(0, 2, 1)

    x1 = shortcut + gate_msa[:, None, :] * xsp
    y = _layernorm_lastdim(x1, p['ln2_g'][:, 0], p['ln2_b'][:, 0])
    y = y * (1.0 + scale_mlp[:, None, :]) + shift_mlp[:, None, :]
    y = _gelu_exact(_mm(y, p['w_fc1'].T) + p['b_fc1'][:, 0])
    y = _mm(y, p['w_fc2'].T) + p['b_fc2'][:, 0]
    out = x1 + gate_mlp[:, None, :] * y
    return out.transpose(0, 2, 1).reshape(B, C, H, W)


# --------------------------------------------------------------------------
# parameters
# --------------------------------------------------------------------------
def init_params(key, dim, num_heads, mlp_ratio=2.0):
    C = dim
    Ch = C // 2
    hidden = int(C * mlp_ratio)
    ks = jax.random.split(key, 24)

    def nrm(k, shape, scale):
        return scale * jax.random.normal(k, shape, jnp.float32)

    p = {}
    # NOTE: PyTorch zero-inits adaLN_modulation; random here (with gate biases
    # pushed toward 1) so the modulation / attention / MLP paths are exercised.
    p['w_ada'] = nrm(ks[0], (C, 6 * C), 0.2 / math.sqrt(C))
    b_ada = nrm(ks[1], (6 * C,), 0.1)
    b_ada = b_ada.at[2 * C:3 * C].add(1.0).at[5 * C:6 * C].add(1.0)
    p['b_ada'] = b_ada
    p['ln1_g'] = 1.0 + nrm(ks[2], (C, 1), 0.05)
    p['ln1_b'] = nrm(ks[3], (C, 1), 0.05)
    p['w_qkv'] = nrm(ks[4], (3 * C, C), 1.0 / math.sqrt(C))
    p['b_qkv'] = nrm(ks[5], (3 * C, 1), 0.02)
    p['getv_w0'] = nrm(ks[6], (Ch, 1, 3, 3), 0.2)
    p['getv_b0'] = nrm(ks[7], (Ch,), 0.02)
    p['getv_w1'] = nrm(ks[8], (Ch, 1, 3, 3), 0.2)
    p['getv_b1'] = nrm(ks[9], (Ch,), 0.02)
    p['w_proj'] = nrm(ks[10], (C, C), 1.0 / math.sqrt(C))
    p['b_proj'] = nrm(ks[11], (C, 1), 0.02)
    p['w_rsa_qkv'] = nrm(ks[12], (3 * C, C), 1.0 / math.sqrt(C))
    p['rsa_scale'] = 1.0 + nrm(ks[13], (num_heads,), 0.1)
    p['w_rsa_out'] = nrm(ks[14], (C, C), 1.0 / math.sqrt(C))
    p['ln2_g'] = 1.0 + nrm(ks[15], (C, 1), 0.05)
    p['ln2_b'] = nrm(ks[16], (C, 1), 0.05)
    p['w_fc1'] = nrm(ks[17], (hidden, C), 1.0 / math.sqrt(C))
    p['b_fc1'] = nrm(ks[18], (hidden, 1), 0.02)
    p['w_fc2'] = nrm(ks[19], (C, hidden), 1.0 / math.sqrt(hidden))
    p['b_fc2'] = nrm(ks[20], (C, 1), 0.02)
    return p


# --------------------------------------------------------------------------
if __name__ == "__main__":
    B = 2
    C = 32            # dim
    H = W = 8         # input_resolution
    window_size = 8
    num_heads = 4
    split_size = 1
    shift_size = 0
    mlp_ratio = 2.0

    key = jax.random.PRNGKey(0)
    kx, kt, kp = jax.random.split(key, 3)
    x = jax.random.normal(kx, (B, C, H, W), dtype=jnp.float32)
    t = jax.random.normal(kt, (B, C), dtype=jnp.float32)
    params = init_params(kp, C, num_heads, mlp_ratio)

    fwd = jax.jit(functools.partial(s2tla_forward, window_size=window_size,
                                    num_heads=num_heads, split_size=split_size,
                                    shift_size=shift_size))
    out = jax.block_until_ready(fwd(x, t, params))

    ref = jax.block_until_ready(
        s2tla_reference(x, t, params, window_size=window_size,
                        num_heads=num_heads, split_size=split_size,
                        shift_size=shift_size))

    assert out.shape == (B, C, H, W), out.shape
    max_err = float(jnp.max(jnp.abs(out - ref)))
    assert jnp.allclose(out, ref, rtol=1e-3, atol=1e-3), max_err

    print("KERNEL_OK")
</pallas_src>

<mosaic_0001>
module attributes {stable_mosaic.version = 11 : i64} {
  func.func @_ln_mod_qkv_kernel(%arg0: i32, %arg1: i32, %arg2: memref<1x32x64xf32, #tpu.memory_space<vmem>>, %arg3: memref<1x32x1xf32, #tpu.memory_space<vmem>>, %arg4: memref<1x32x1xf32, #tpu.memory_space<vmem>>, %arg5: memref<32x1xf32, #tpu.memory_space<vmem>>, %arg6: memref<32x1xf32, #tpu.memory_space<vmem>>, %arg7: memref<96x32xf32, #tpu.memory_space<vmem>>, %arg8: memref<96x1xf32, #tpu.memory_space<vmem>>, %arg9: memref<1x96x64xf32, #tpu.memory_space<vmem>>) attributes {dimension_semantics = [#tpu.dimension_semantics<parallel>, #tpu.dimension_semantics<parallel>], iteration_bounds = array<i64: 2, 1>, scalar_prefetch = 0 : i64, scratch_operands = 0 : i64, tpu.core_type = #tpu.core_type<tc>, window_params = [{transform_indices = @transform_0, window_bounds = array<i64: 1, 32, 64>}, {transform_indices = @transform_1, window_bounds = array<i64: 1, 32, 1>}, {transform_indices = @transform_2, window_bounds = array<i64: 1, 32, 1>}, {pipeline_mode = #tpu.pipeline_mode<synchronous>, transform_indices = @transform_3, window_bounds = array<i64: 32, 1>}, {pipeline_mode = #tpu.pipeline_mode<synchronous>, transform_indices = @transform_4, window_bounds = array<i64: 32, 1>}, {pipeline_mode = #tpu.pipeline_mode<synchronous>, transform_indices = @transform_5, window_bounds = array<i64: 96, 32>}, {pipeline_mode = #tpu.pipeline_mode<synchronous>, transform_indices = @transform_6, window_bounds = array<i64: 96, 1>}, {transform_indices = @transform_7, window_bounds = array<i64: 1, 96, 64>}]} {
    %c0 = arith.constant 0 : index
    %c0_0 = arith.constant 0 : index
    %c0_1 = arith.constant 0 : index
    %0 = vector.load %arg2[%c0, %c0_0, %c0_1] : memref<1x32x64xf32, #tpu.memory_space<vmem>>, vector<1x32x64xf32>
    %1 = vector.shape_cast %0 : vector<1x32x64xf32> to vector<32x64xf32>
    %cst = arith.constant dense<0.000000e+00> : vector<64xf32>
    %2 = vector.multi_reduction <add>, %1, %cst [0] : vector<32x64xf32> to vector<64xf32>
    %3 = vector.shape_cast %2 : vector<64xf32> to vector<1x64xf32>
    %cst_2 = arith.constant 3.200000e+01 : f32
    %4 = vector.broadcast %cst_2 : f32 to vector<1x64xf32>
    %5 = arith.divf %3, %4 : vector<1x64xf32>
    %6 = arith.mulf %1, %1 : vector<32x64xf32>
    %cst_3 = arith.constant dense<0.000000e+00> : vector<64xf32>
    %7 = vector.multi_reduction <add>, %6, %cst_3 [0] : vector<32x64xf32> to vector<64xf32>
    %8 = vector.shape_cast %7 : vector<64xf32> to vector<1x64xf32>
    %cst_4 = arith.constant 3.200000e+01 : f32
    %9 = vector.broadcast %cst_4 : f32 to vector<1x64xf32>
    %10 = arith.divf %8, %9 : vector<1x64xf32>
    %11 = arith.mulf %5, %5 : vector<1x64xf32>
    %12 = arith.subf %10, %11 : vector<1x64xf32>
    %cst_5 = arith.constant 0.000000e+00 : f32
    %13 = vector.broadcast %cst_5 : f32 to vector<1x64xf32>
    %14 = arith.maximumf %12, %13 : vector<1x64xf32>
    %15 = vector.broadcast %5 : vector<1x64xf32> to vector<32x64xf32>
    %16 = arith.subf %1, %15 : vector<32x64xf32>
    %cst_6 = arith.constant 9.99999974E-6 : f32
    %17 = vector.broadcast %cst_6 : f32 to vector<1x64xf32>
    %18 = arith.addf %14, %17 : vector<1x64xf32>
    %19 = math.rsqrt %18 : vector<1x64xf32>
    %20 = vector.broadcast %19 : vector<1x64xf32> to vector<32x64xf32>
    %21 = arith.mulf %16, %20 : vector<32x64xf32>
    %c0_7 = arith.constant 0 : index
    %c0_8 = arith.constant 0 : index
    %22 = vector.load %arg5[%c0_7, %c0_8] : memref<32x1xf32, #tpu.memory_space<vmem>>, vector<32x1xf32>
    %23 = vector.broadcast %22 : vector<32x1xf32> to vector<32x64xf32>
    %24 = arith.mulf %21, %23 : vector<32x64xf32>
    %c0_9 = arith.constant 0 : index
    %c0_10 = arith.constant 0 : index
    %25 = vector.load %arg6[%c0_9, %c0_10] : memref<32x1xf32, #tpu.memory_space<vmem>>, vector<32x1xf32>
    %26 = vector.broadcast %25 : vector<32x1xf32> to vector<32x64xf32>
    %27 = arith.addf %24, %26 : vector<32x64xf32>
    %c0_11 = arith.constant 0 : index
    %c0_12 = arith.constant 0 : index
    %c0_13 = arith.constant 0 : index
    %28 = vector.load %arg4[%c0_11, %c0_12, %c0_13] : memref<1x32x1xf32, #tpu.memory_space<vmem>>, vector<1x32x1xf32>
    %29 = vector.shape_cast %28 : vector<1x32x1xf32> to vector<32x1xf32>
    %cst_14 = arith.constant 1.000000e+00 : f32
    %30 = vector.broadcast %cst_14 : f32 to vector<32x1xf32>
    %31 = arith.addf %30, %29 : vector<32x1xf32>
    %32 = vector.broadcast %31 : vector<32x1xf32> to vector<32x64xf32>
    %33 = arith.mulf %27, %32 : vector<32x64xf32>
    %c0_15 = arith.constant 0 : index
    %c0_16 = arith.constant 0 : index
    %c0_17 = arith.constant 0 : index
    %34 = vector.load %arg3[%c0_15, %c0_16, %c0_17] : memref<1x32x1xf32, #tpu.memory_space<vmem>>, vector<1x32x1xf32>
    %35 = vector.shape_cast %34 : vector<1x32x1xf32> to vector<32x1xf32>
    %36 = vector.broadcast %35 : vector<32x1xf32> to vector<32x64xf32>
    %37 = arith.addf %33, %36 : vector<32x64xf32>
    %c0_18 = arith.constant 0 : index
    %c0_19 = arith.constant 0 : index
    %38 = vector.load %arg7[%c0_18, %c0_19] : memref<96x32xf32, #tpu.memory_space<vmem>>, vector<96x32xf32>
    %cst_20 = arith.constant dense<0.000000e+00> : vector<96x64xf32>
    %39 = tpu.matmul %38, %37, %cst_20 {dimension_numbers = #tpu.dot_dimension_numbers<[1], [0], [0], [1], [0, 0, 1, 1], [], []>} : vector<96x32xf32>, vector<32x64xf32>, vector<96x64xf32> -> vector<96x64xf32>
    %c0_21 = arith.constant 0 : index
    %c0_22 = arith.constant 0 : index
    %40 = vector.load %arg8[%c0_21, %c0_22] : memref<96x1xf32, #tpu.memory_space<vmem>>, vector<96x1xf32>
    %41 = vector.broadcast %40 : vector<96x1xf32> to vector<96x64xf32>
    %42 = arith.addf %39, %41 : vector<96x64xf32>
    %c0_23 = arith.constant 0 : index
    %c0_24 = arith.constant 0 : index
    %c0_25 = arith.constant 0 : index
    %43 = vector.load %arg9[%c0_23, %c0_24, %c0_25] : memref<1x96x64xf32, #tpu.memory_space<vmem>>, vector<1x96x64xf32>
    %44 = vector.shape_cast %43 : vector<1x96x64xf32> to vector<96x64xf32>
    %45 = vector.shape_cast %42 : vector<96x64xf32> to vector<1x96x64xf32>
    tpu.vector_store %arg9[%c0_23, %c0_24, %c0_25], %45 {strides = array<i32>} : memref<1x96x64xf32, #tpu.memory_space<vmem>>, vector<1x96x64xf32>,
    return
  }
  func.func @transform_0(%arg0: i32, %arg1: i32) -> (i32, i32, i32) {
    %c0_i32 = arith.constant 0 : i32
    %c0_i32_0 = arith.constant 0 : i32
    return %arg0, %c0_i32, %arg1 : i32, i32, i32
  }
  func.func @transform_1(%arg0: i32, %arg1: i32) -> (i32, i32, i32) {
    %c0_i32 = arith.constant 0 : i32
    %c0_i32_0 = arith.constant 0 : i32
    %c0_i32_1 = arith.constant 0 : i32
    return %arg0, %c0_i32, %c0_i32_0 : i32, i32, i32
  }
  func.func @transform_2(%arg0: i32, %arg1: i32) -> (i32, i32, i32) {
    %c0_i32 = arith.constant 0 : i32
    %c0_i32_0 = arith.constant 0 : i32
    %c0_i32_1 = arith.constant 0 : i32
    return %arg0, %c0_i32, %c0_i32_0 : i32, i32, i32
  }
  func.func @transform_3(%arg0: i32, %arg1: i32) -> (i32, i32) {
    %c0_i32 = arith.constant 0 : i32
    %c0_i32_0 = arith.constant 0 : i32
    %c0_i32_1 = arith.constant 0 : i32
    return %c0_i32, %c0_i32_0 : i32, i32
  }
  func.func @transform_4(%arg0: i32, %arg1: i32) -> (i32, i32) {
    %c0_i32 = arith.constant 0 : i32
    %c0_i32_0 = arith.constant 0 : i32
    %c0_i32_1 = arith.constant 0 : i32
    return %c0_i32, %c0_i32_0 : i32, i32
  }
  func.func @transform_5(%arg0: i32, %arg1: i32) -> (i32, i32) {
    %c0_i32 = arith.constant 0 : i32
    %c0_i32_0 = arith.constant 0 : i32
    %c0_i32_1 = arith.constant 0 : i32
    return %c0_i32, %c0_i32_0 : i32, i32
  }
  func.func @transform_6(%arg0: i32, %arg1: i32) -> (i32, i32) {
    %c0_i32 = arith.constant 0 : i32
    %c0_i32_0 = arith.constant 0 : i32
    %c0_i32_1 = arith.constant 0 : i32
    return %c0_i32, %c0_i32_0 : i32, i32
  }
  func.func @transform_7(%arg0: i32, %arg1: i32) -> (i32, i32, i32) {
    %c0_i32 = arith.constant 0 : i32
    %c0_i32_0 = arith.constant 0 : i32
    return %arg0, %c0_i32, %arg1 : i32, i32, i32
  }
}

module attributes {stable_mosaic.version = 11 : i64} {
  func.func @_lepe_attn_kernel(%arg0: i32, %arg1: memref<8x8x64xf32, #tpu.memory_space<vmem>>, %arg2: memref<8x8x64xf32, #tpu.memory_space<vmem>>, %arg3: memref<8x8x64xf32, #tpu.memory_space<vmem>>, %arg4: memref<8x8x64xf32, #tpu.memory_space<vmem>>, %arg5: memref<8x8x64xf32, #tpu.memory_space<vmem>>) attributes {dimension_semantics = [#tpu.dimension_semantics<parallel>], iteration_bounds = array<i64: 1>, scalar_prefetch = 0 : i64, scratch_operands = 0 : i64, tpu.core_type = #tpu.core_type<tc>, window_params = [{transform_indices = @transform_0, window_bounds = array<i64: 8, 8, 64>}, {transform_indices = @transform_1, window_bounds = array<i64: 8, 8, 64>}, {transform_indices = @transform_2, window_bounds = array<i64: 8, 8, 64>}, {transform_indices = @transform_3, window_bounds = array<i64: 8, 8, 64>}, {transform_indices = @transform_4, window_bounds = array<i64: 8, 8, 64>}]} {
    %c0 = arith.constant 0 : index
    %c0_0 = arith.constant 0 : index
    %c0_1 = arith.constant 0 : index
    %0 = vector.load %arg1[%c0, %c0_0, %c0_1] : memref<8x8x64xf32, #tpu.memory_space<vmem>>, vector<8x8x64xf32>
    %cst = arith.constant 0.353553385 : f32
    %1 = vector.broadcast %cst : f32 to vector<8x8x64xf32>
    %2 = arith.mulf %0, %1 : vector<8x8x64xf32>
    %c0_2 = arith.constant 0 : index
    %c0_3 = arith.constant 0 : index
    %c0_4 = arith.constant 0 : index
    %3 = vector.load %arg2[%c0_2, %c0_3, %c0_4] : memref<8x8x64xf32, #tpu.memory_space<vmem>>, vector<8x8x64xf32>
    %c0_5 = arith.constant 0 : index
    %c0_6 = arith.constant 0 : index
    %c0_7 = arith.constant 0 : index
    %4 = vector.load %arg3[%c0_5, %c0_6, %c0_7] : memref<8x8x64xf32, #tpu.memory_space<vmem>>, vector<8x8x64xf32>
    %5 = vector.shape_cast %2 : vector<8x8x64xf32> to vector<8x8x1x64xf32>
    %6 = vector.shape_cast %3 : vector<8x8x64xf32> to vector<8x1x8x64xf32>
    %7 = vector.broadcast %5 : vector<8x8x1x64xf32> to vector<8x8x8x64xf32>
    %8 = vector.broadcast %6 : vector<8x1x8x64xf32> to vector<8x8x8x64xf32>
    %9 = arith.mulf %7, %8 : vector<8x8x8x64xf32>
    %cst_8 = arith.constant dense<0.000000e+00> : vector<8x8x64xf32>
    %10 = vector.multi_reduction <add>, %9, %cst_8 [0] : vector<8x8x8x64xf32> to vector<8x8x64xf32>
    %cst_9 = arith.constant dense<0xFF800000> : vector<8x64xf32>
    %11 = vector.multi_reduction <maximumf>, %10, %cst_9 [1] : vector<8x8x64xf32> to vector<8x64xf32>
    %12 = vector.shape_cast %11 : vector<8x64xf32> to vector<8x1x64xf32>
    %13 = vector.broadcast %12 : vector<8x1x64xf32> to vector<8x8x64xf32>
    %14 = arith.subf %10, %13 : vector<8x8x64xf32>
    %15 = math.exp %14 : vector<8x8x64xf32>
    %cst_10 = arith.constant dense<0.000000e+00> : vector<8x64xf32>
    %16 = vector.multi_reduction <add>, %15, %cst_10 [1] : vector<8x8x64xf32> to vector<8x64xf32>
    %17 = vector.shape_cast %16 : vector<8x64xf32> to vector<8x1x64xf32>
    %18 = tpu.reciprocal %17 : vector<8x1x64xf32> -> vector<8x1x64xf32>
    %19 = vector.broadcast %18 : vector<8x1x64xf32> to vector<8x8x64xf32>
    %20 = arith.mulf %15, %19 : vector<8x8x64xf32>
    %21 = vector.shape_cast %20 : vector<8x8x64xf32> to vector<1x8x8x64xf32>
    %22 = vector.shape_cast %4 : vector<8x8x64xf32> to vector<8x1x8x64xf32>
    %23 = vector.broadcast %21 : vector<1x8x8x64xf32> to vector<8x8x8x64xf32>
    %24 = vector.broadcast %22 : vector<8x1x8x64xf32> to vector<8x8x8x64xf32>
    %25 = arith.mulf %23, %24 : vector<8x8x8x64xf32>
    %cst_11 = arith.constant dense<0.000000e+00> : vector<8x8x64xf32>
    %26 = vector.multi_reduction <add>, %25, %cst_11 [2] : vector<8x8x8x64xf32> to vector<8x8x64xf32>
    %c0_12 = arith.constant 0 : index
    %c0_13 = arith.constant 0 : index
    %c0_14 = arith.constant 0 : index
    %27 = vector.load %arg4[%c0_12, %c0_13, %c0_14] : memref<8x8x64xf32, #tpu.memory_space<vmem>>, vector<8x8x64xf32>
    %28 = arith.addf %26, %27 : vector<8x8x64xf32>
    %c0_15 = arith.constant 0 : index
    %c0_16 = arith.constant 0 : index
    %c0_17 = arith.constant 0 : index
    %29 = vector.load %arg5[%c0_15, %c0_16, %c0_17] : memref<8x8x64xf32, #tpu.memory_space<vmem>>, vector<8x8x64xf32>
    tpu.vector_store %arg5[%c0_15, %c0_16, %c0_17], %28 {strides = array<i32>} : memref<8x8x64xf32, #tpu.memory_space<vmem>>, vector<8x8x64xf32>,
    return
  }
  func.func @transform_0(%arg0: i32) -> (i32, i32, i32) {
    %c0_i32 = arith.constant 0 : i32
    %c0_i32_0 = arith.constant 0 : i32
    %c0_i32_1 = arith.constant 0 : i32
    return %c0_i32, %c0_i32_0, %arg0 : i32, i32, i32
  }
  func.func @transform_1(%arg0: i32) -> (i32, i32, i32) {
    %c0_i32 = arith.constant 0 : i32
    %c0_i32_0 = arith.constant 0 : i32
    %c0_i32_1 = arith.constant 0 : i32
    return %c0_i32, %c0_i32_0, %arg0 : i32, i32, i32
  }
  func.func @transform_2(%arg0: i32) -> (i32, i32, i32) {
    %c0_i32 = arith.constant 0 : i32
    %c0_i32_0 = arith.constant 0 : i32
    %c0_i32_1 = arith.constant 0 : i32
    return %c0_i32, %c0_i32_0, %arg0 : i32, i32, i32
  }
  func.func @transform_3(%arg0: i32) -> (i32, i32, i32) {
    %c0_i32 = arith.constant 0 : i32
    %c0_i32_0 = arith.constant 0 : i32
    %c0_i32_1 = arith.constant 0 : i32
    return %c0_i32, %c0_i32_0, %arg0 : i32, i32, i32
  }
  func.func @transform_4(%arg0: i32) -> (i32, i32, i32) {
    %c0_i32 = arith.constant 0 : i32
    %c0_i32_0 = arith.constant 0 : i32
    %c0_i32_1 = arith.constant 0 : i32
    return %c0_i32, %c0_i32_0, %arg0 : i32, i32, i32
  }
}

module attributes {stable_mosaic.version = 11 : i64} {
  func.func @_rsa_kernel(%arg0: i32, %arg1: memref<1x32x64xf32, #tpu.memory_space<vmem>>, %arg2: memref<32x32xf32, #tpu.memory_space<vmem>>, %arg3: memref<32x1xf32, #tpu.memory_space<vmem>>, %arg4: memref<96x32xf32, #tpu.memory_space<vmem>>, %arg5: memref<4xf32, #tpu.memory_space<smem>>, %arg6: memref<32x32xf32, #tpu.memory_space<vmem>>, %arg7: memref<1x32x64xf32, #tpu.memory_space<vmem>>, %arg8: memref<32x64xf32, #tpu.memory_space<vmem>>) attributes {dimension_semantics = [#tpu.dimension_semantics<parallel>], iteration_bounds = array<i64: 2>, scalar_prefetch = 0 : i64, scratch_operands = 1 : i64, tpu.core_type = #tpu.core_type<tc>, window_params = [{transform_indices = @transform_0, window_bounds = array<i64: 1, 32, 64>}, {pipeline_mode = #tpu.pipeline_mode<synchronous>, transform_indices = @transform_1, window_bounds = array<i64: 32, 32>}, {pipeline_mode = #tpu.pipeline_mode<synchronous>, transform_indices = @transform_2, window_bounds = array<i64: 32, 1>}, {pipeline_mode = #tpu.pipeline_mode<synchronous>, transform_indices = @transform_3, window_bounds = array<i64: 96, 32>}, {transform_indices = @transform_4, window_bounds = array<i64: 4>}, {pipeline_mode = #tpu.pipeline_mode<synchronous>, transform_indices = @transform_5, window_bounds = array<i64: 32, 32>}, {transform_indices = @transform_6, window_bounds = array<i64: 1, 32, 64>}]} {
    %c0 = arith.constant 0 : index
    %c0_0 = arith.constant 0 : index
    %0 = vector.load %arg2[%c0, %c0_0] : memref<32x32xf32, #tpu.memory_space<vmem>>, vector<32x32xf32>
    %c0_1 = arith.constant 0 : index
    %c0_2 = arith.constant 0 : index
    %c0_3 = arith.constant 0 : index
    %1 = vector.load %arg1[%c0_1, %c0_2, %c0_3] : memref<1x32x64xf32, #tpu.memory_space<vmem>>, vector<1x32x64xf32>
    %2 = vector.shape_cast %1 : vector<1x32x64xf32> to vector<32x64xf32>
    %cst = arith.constant dense<0.000000e+00> : vector<32x64xf32>
    %3 = tpu.matmul %0, %2, %cst {dimension_numbers = #tpu.dot_dimension_numbers<[1], [0], [0], [1], [0, 0, 1, 1], [], []>} : vector<32x32xf32>, vector<32x64xf32>, vector<32x64xf32> -> vector<32x64xf32>
    %c0_4 = arith.constant 0 : index
    %c0_5 = arith.constant 0 : index
    %4 = vector.load %arg3[%c0_4, %c0_5] : memref<32x1xf32, #tpu.memory_space<vmem>>, vector<32x1xf32>
    %5 = vector.broadcast %4 : vector<32x1xf32> to vector<32x64xf32>
    %6 = arith.addf %3, %5 : vector<32x64xf32>
    %c0_i32 = arith.constant 0 : i32
    %c4_i32 = arith.constant 4 : i32
    %7 = arith.addi %c0_i32, %c4_i32 : i32
    %c1_i32 = arith.constant 1 : i32
    scf.for %arg9 = %c0_i32 to %7 step %c1_i32  : i32 {
      %c8_i32 = arith.constant 8 : i32
      %15 = arith.muli %arg9, %c8_i32 : i32
      %16 = tpu.assume_multiple %15, 8 : i32
      %17 = arith.index_cast %16 : i32 to index
      %c0_15 = arith.constant 0 : index
      %18 = vector.load %arg4[%17, %c0_15] : memref<96x32xf32, #tpu.memory_space<vmem>>, vector<8x32xf32>
      %c32_i32 = arith.constant 32 : i32
      %19 = arith.addi %c32_i32, %16 : i32
      %20 = arith.index_cast %19 : i32 to index
      %c0_16 = arith.constant 0 : index
      %21 = vector.load %arg4[%20, %c0_16] : memref<96x32xf32, #tpu.memory_space<vmem>>, vector<8x32xf32>
      %c64_i32 = arith.constant 64 : i32
      %22 = arith.addi %c64_i32, %16 : i32
      %23 = arith.index_cast %22 : i32 to index
      %c0_17 = arith.constant 0 : index
      %24 = vector.load %arg4[%23, %c0_17] : memref<96x32xf32, #tpu.memory_space<vmem>>, vector<8x32xf32>
      %cst_18 = arith.constant dense<0.000000e+00> : vector<8x64xf32>
      %25 = tpu.matmul %18, %6, %cst_18 {dimension_numbers = #tpu.dot_dimension_numbers<[1], [0], [0], [1], [0, 0, 1, 1], [], []>} : vector<8x32xf32>, vector<32x64xf32>, vector<8x64xf32> -> vector<8x64xf32>
      %cst_19 = arith.constant dense<0.000000e+00> : vector<8x64xf32>
      %26 = tpu.matmul %21, %6, %cst_19 {dimension_numbers = #tpu.dot_dimension_numbers<[1], [0], [0], [1], [0, 0, 1, 1], [], []>} : vector<8x32xf32>, vector<32x64xf32>, vector<8x64xf32> -> vector<8x64xf32>
      %cst_20 = arith.constant dense<0.000000e+00> : vector<8x64xf32>
      %27 = tpu.matmul %24, %6, %cst_20 {dimension_numbers = #tpu.dot_dimension_numbers<[1], [0], [0], [1], [0, 0, 1, 1], [], []>} : vector<8x32xf32>, vector<32x64xf32>, vector<8x64xf32> -> vector<8x64xf32>
      %28 = arith.mulf %25, %25 : vector<8x64xf32>
      %cst_21 = arith.constant dense<0.000000e+00> : vector<8xf32>
      %29 = vector.multi_reduction <add>, %28, %cst_21 [1] : vector<8x64xf32> to vector<8xf32>
      %30 = vector.shape_cast %29 : vector<8xf32> to vector<8x1xf32>
      %cst_22 = arith.constant 1.000000e-24 : f32
      %31 = vector.broadcast %cst_22 : f32 to vector<8x1xf32>
      %32 = arith.maximumf %30, %31 : vector<8x1xf32>
      %33 = math.rsqrt %32 : vector<8x1xf32>
      %34 = vector.broadcast %33 : vector<8x1xf32> to vector<8x64xf32>
      %35 = arith.mulf %25, %34 : vector<8x64xf32>
      %36 = arith.mulf %26, %26 : vector<8x64xf32>
      %cst_23 = arith.constant dense<0.000000e+00> : vector<8xf32>
      %37 = vector.multi_reduction <add>, %36, %cst_23 [1] : vector<8x64xf32> to vector<8xf32>
      %38 = vector.shape_cast %37 : vector<8xf32> to vector<8x1xf32>
      %cst_24 = arith.constant 1.000000e-24 : f32
      %39 = vector.broadcast %cst_24 : f32 to vector<8x1xf32>
      %40 = arith.maximumf %38, %39 : vector<8x1xf32>
      %41 = math.rsqrt %40 : vector<8x1xf32>
      %42 = vector.broadcast %41 : vector<8x1xf32> to vector<8x64xf32>
      %43 = arith.mulf %26, %42 : vector<8x64xf32>
      %cst_25 = arith.constant dense<0.000000e+00> : vector<8x8xf32>
      %44 = tpu.matmul %35, %43, %cst_25 {dimension_numbers = #tpu.dot_dimension_numbers<[1], [1], [0], [0], [0, 0, 1, 0], [], []>} : vector<8x64xf32>, vector<8x64xf32>, vector<8x8xf32> -> vector<8x8xf32>
      %45 = arith.index_cast %arg9 : i32 to index
      %46 = memref.load %arg5[%45] : memref<4xf32, #tpu.memory_space<smem>>
      %47 = vector.broadcast %46 : f32 to vector<8x8xf32>
      %48 = arith.mulf %44, %47 : vector<8x8xf32>
      %cst_26 = arith.constant dense<0xFF800000> : vector<8xf32>
      %49 = vector.multi_reduction <maximumf>, %48, %cst_26 [1] : vector<8x8xf32> to vector<8xf32>
      %50 = vector.shape_cast %49 : vector<8xf32> to vector<8x1xf32>
      %51 = vector.broadcast %50 : vector<8x1xf32> to vector<8x8xf32>
      %52 = arith.subf %48, %51 : vector<8x8xf32>
      %53 = math.exp %52 : vector<8x8xf32>
      %cst_27 = arith.constant dense<0.000000e+00> : vector<8xf32>
      %54 = vector.multi_reduction <add>, %53, %cst_27 [1] : vector<8x8xf32> to vector<8xf32>
      %55 = vector.shape_cast %54 : vector<8xf32> to vector<8x1xf32>
      %56 = tpu.reciprocal %55 : vector<8x1xf32> -> vector<8x1xf32>
      %57 = vector.broadcast %56 : vector<8x1xf32> to vector<8x8xf32>
      %58 = arith.mulf %53, %57 : vector<8x8xf32>
      %cst_28 = arith.constant dense<0.000000e+00> : vector<8x64xf32>
      %59 = tpu.matmul %58, %27, %cst_28 {dimension_numbers = #tpu.dot_dimension_numbers<[1], [0], [0], [1], [0, 0, 1, 1], [], []>} : vector<8x8xf32>, vector<8x64xf32>, vector<8x64xf32> -> vector<8x64xf32>
      %60 = arith.index_cast %16 : i32 to index
      %c0_29 = arith.constant 0 : index
      %61 = vector.load %arg8[%60, %c0_29] : memref<32x64xf32, #tpu.memory_space<vmem>>, vector<8x64xf32>
      tpu.vector_store %arg8[%60, %c0_29], %59 {strides = array<i32>} : memref<32x64xf32, #tpu.memory_space<vmem>>, vector<8x64xf32>,
    }
    %c4_i32_6 = arith.constant 4 : i32
    %c0_7 = arith.constant 0 : index
    %c0_8 = arith.constant 0 : index
    %8 = vector.load %arg6[%c0_7, %c0_8] : memref<32x32xf32, #tpu.memory_space<vmem>>, vector<32x32xf32>
    %c0_9 = arith.constant 0 : index
    %c0_10 = arith.constant 0 : index
    %9 = vector.load %arg8[%c0_9, %c0_10] : memref<32x64xf32, #tpu.memory_space<vmem>>, vector<32x64xf32>
    %cst_11 = arith.constant dense<0.000000e+00> : vector<32x64xf32>
    %10 = tpu.matmul %8, %9, %cst_11 {dimension_numbers = #tpu.dot_dimension_numbers<[1], [0], [0], [1], [0, 0, 1, 1], [], []>} : vector<32x32xf32>, vector<32x64xf32>, vector<32x64xf32> -> vector<32x64xf32>
    %11 = arith.addf %10, %6 : vector<32x64xf32>
    %c0_12 = arith.constant 0 : index
    %c0_13 = arith.constant 0 : index
    %c0_14 = arith.constant 0 : index
    %12 = vector.load %arg7[%c0_12, %c0_13, %c0_14] : memref<1x32x64xf32, #tpu.memory_space<vmem>>, vector<1x32x64xf32>
    %13 = vector.shape_cast %12 : vector<1x32x64xf32> to vector<32x64xf32>
    %14 = vector.shape_cast %11 : vector<32x64xf32> to vector<1x32x64xf32>
    tpu.vector_store %arg7[%c0_12, %c0_13, %c0_14], %14 {strides = array<i32>} : memref<1x32x64xf32, #tpu.memory_space<vmem>>, vector<1x32x64xf32>,
    return
  }
  func.func @transform_0(%arg0: i32) -> (i32, i32, i32) {
    %c0_i32 = arith.constant 0 : i32
    %c0_i32_0 = arith.constant 0 : i32
    %c0_i32_1 = arith.constant 0 : i32
    return %arg0, %c0_i32, %c0_i32_0 : i32, i32, i32
  }
  func.func @transform_1(%arg0: i32) -> (i32, i32) {
    %c0_i32 = arith.constant 0 : i32
    %c0_i32_0 = arith.constant 0 : i32
    %c0_i32_1 = arith.constant 0 : i32
    return %c0_i32, %c0_i32_0 : i32, i32
  }
  func.func @transform_2(%arg0: i32) -> (i32, i32) {
    %c0_i32 = arith.constant 0 : i32
    %c0_i32_0 = arith.constant 0 : i32
    %c0_i32_1 = arith.constant 0 : i32
    return %c0_i32, %c0_i32_0 : i32, i32
  }
  func.func @transform_3(%arg0: i32) -> (i32, i32) {
    %c0_i32 = arith.constant 0 : i32
    %c0_i32_0 = arith.constant 0 : i32
    %c0_i32_1 = arith.constant 0 : i32
    return %c0_i32, %c0_i32_0 : i32, i32
  }
  func.func @transform_4(%arg0: i32) -> i32 {
    %c0_i32 = arith.constant 0 : i32
    %c0_i32_0 = arith.constant 0 : i32
    return %c0_i32 : i32
  }
  func.func @transform_5(%arg0: i32) -> (i32, i32) {
    %c0_i32 = arith.constant 0 : i32
    %c0_i32_0 = arith.constant 0 : i32
    %c0_i32_1 = arith.constant 0 : i32
    return %c0_i32, %c0_i32_0 : i32, i32
  }
  func.func @transform_6(%arg0: i32) -> (i32, i32, i32) {
    %c0_i32 = arith.constant 0 : i32
    %c0_i32_0 = arith.constant 0 : i32
    %c0_i32_1 = arith.constant 0 : i32
    return %arg0, %c0_i32, %c0_i32_0 : i32, i32, i32
  }
}

module attributes {stable_mosaic.version = 11 : i64} {
  func.func @_fused_mlp_kernel(%arg0: i32, %arg1: i32, %arg2: memref<1x32x64xf32, #tpu.memory_space<vmem>>, %arg3: memref<1x32x64xf32, #tpu.memory_space<vmem>>, %arg4: memref<1x32x1xf32, #tpu.memory_space<vmem>>, %arg5: memref<1x32x1xf32, #tpu.memory_space<vmem>>, %arg6: memref<1x32x1xf32, #tpu.memory_space<vmem>>, %arg7: memref<1x32x1xf32, #tpu.memory_space<vmem>>, %arg8: memref<32x1xf32, #tpu.memory_space<vmem>>, %arg9: memref<32x1xf32, #tpu.memory_space<vmem>>, %arg10: memref<64x32xf32, #tpu.memory_space<vmem>>, %arg11: memref<64x1xf32, #tpu.memory_space<vmem>>, %arg12: memref<32x64xf32, #tpu.memory_space<vmem>>, %arg13: memref<32x1xf32, #tpu.memory_space<vmem>>, %arg14: memref<1x32x64xf32, #tpu.memory_space<vmem>>) attributes {dimension_semantics = [#tpu.dimension_semantics<parallel>, #tpu.dimension_semantics<parallel>], iteration_bounds = array<i64: 2, 1>, scalar_prefetch = 0 : i64, scratch_operands = 0 : i64, tpu.core_type = #tpu.core_type<tc>, window_params = [{transform_indices = @transform_0, window_bounds = array<i64: 1, 32, 64>}, {transform_indices = @transform_1, window_bounds = array<i64: 1, 32, 64>}, {transform_indices = @transform_2, window_bounds = array<i64: 1, 32, 1>}, {transform_indices = @transform_3, window_bounds = array<i64: 1, 32, 1>}, {transform_indices = @transform_4, window_bounds = array<i64: 1, 32, 1>}, {transform_indices = @transform_5, window_bounds = array<i64: 1, 32, 1>}, {pipeline_mode = #tpu.pipeline_mode<synchronous>, transform_indices = @transform_6, window_bounds = array<i64: 32, 1>}, {pipeline_mode = #tpu.pipeline_mode<synchronous>, transform_indices = @transform_7, window_bounds = array<i64: 32, 1>}, {pipeline_mode = #tpu.pipeline_mode<synchronous>, transform_indices = @transform_8, window_bounds = array<i64: 64, 32>}, {pipeline_mode = #tpu.pipeline_mode<synchronous>, transform_indices = @transform_9, window_bounds = array<i64: 64, 1>}, {pipeline_mode = #tpu.pipeline_mode<synchronous>, transform_indices = @transform_10, window_bounds = array<i64: 32, 64>}, {pipeline_mode = #tpu.pipeline_mode<synchronous>, transform_indices = @transform_11, window_bounds = array<i64: 32, 1>}, {transform_indices = @transform_12, window_bounds = array<i64: 1, 32, 64>}]} {
    %c0 = arith.constant 0 : index
    %c0_0 = arith.constant 0 : index
    %c0_1 = arith.constant 0 : index
    %0 = vector.load %arg2[%c0, %c0_0, %c0_1] : memref<1x32x64xf32, #tpu.memory_space<vmem>>, vector<1x32x64xf32>
    %1 = vector.shape_cast %0 : vector<1x32x64xf32> to vector<32x64xf32>
    %c0_2 = arith.constant 0 : index
    %c0_3 = arith.constant 0 : index
    %c0_4 = arith.constant 0 : index
    %2 = vector.load %arg4[%c0_2, %c0_3, %c0_4] : memref<1x32x1xf32, #tpu.memory_space<vmem>>, vector<1x32x1xf32>
    %3 = vector.shape_cast %2 : vector<1x32x1xf32> to vector<32x1xf32>
    %c0_5 = arith.constant 0 : index
    %c0_6 = arith.constant 0 : index
    %c0_7 = arith.constant 0 : index
    %4 = vector.load %arg3[%c0_5, %c0_6, %c0_7] : memref<1x32x64xf32, #tpu.memory_space<vmem>>, vector<1x32x64xf32>
    %5 = vector.shape_cast %4 : vector<1x32x64xf32> to vector<32x64xf32>
    %6 = vector.broadcast %3 : vector<32x1xf32> to vector<32x64xf32>
    %7 = arith.mulf %6, %5 : vector<32x64xf32>
    %8 = arith.addf %1, %7 : vector<32x64xf32>
    %cst = arith.constant dense<0.000000e+00> : vector<64xf32>
    %9 = vector.multi_reduction <add>, %8, %cst [0] : vector<32x64xf32> to vector<64xf32>
    %10 = vector.shape_cast %9 : vector<64xf32> to vector<1x64xf32>
    %cst_8 = arith.constant 3.200000e+01 : f32
    %11 = vector.broadcast %cst_8 : f32 to vector<1x64xf32>
    %12 = arith.divf %10, %11 : vector<1x64xf32>
    %13 = arith.mulf %8, %8 : vector<32x64xf32>
    %cst_9 = arith.constant dense<0.000000e+00> : vector<64xf32>
    %14 = vector.multi_reduction <add>, %13, %cst_9 [0] : vector<32x64xf32> to vector<64xf32>
    %15 = vector.shape_cast %14 : vector<64xf32> to vector<1x64xf32>
    %cst_10 = arith.constant 3.200000e+01 : f32
    %16 = vector.broadcast %cst_10 : f32 to vector<1x64xf32>
    %17 = arith.divf %15, %16 : vector<1x64xf32>
    %18 = arith.mulf %12, %12 : vector<1x64xf32>
    %19 = arith.subf %17, %18 : vector<1x64xf32>
    %cst_11 = arith.constant 0.000000e+00 : f32
    %20 = vector.broadcast %cst_11 : f32 to vector<1x64xf32>
    %21 = arith.maximumf %19, %20 : vector<1x64xf32>
    %22 = vector.broadcast %12 : vector<1x64xf32> to vector<32x64xf32>
    %23 = arith.subf %8, %22 : vector<32x64xf32>
    %cst_12 = arith.constant 9.99999974E-6 : f32
    %24 = vector.broadcast %cst_12 : f32 to vector<1x64xf32>
    %25 = arith.addf %21, %24 : vector<1x64xf32>
    %26 = math.rsqrt %25 : vector<1x64xf32>
    %27 = vector.broadcast %26 : vector<1x64xf32> to vector<32x64xf32>
    %28 = arith.mulf %23, %27 : vector<32x64xf32>
    %c0_13 = arith.constant 0 : index
    %c0_14 = arith.constant 0 : index
    %29 = vector.load %arg8[%c0_13, %c0_14] : memref<32x1xf32, #tpu.memory_space<vmem>>, vector<32x1xf32>
    %30 = vector.broadcast %29 : vector<32x1xf32> to vector<32x64xf32>
    %31 = arith.mulf %28, %30 : vector<32x64xf32>
    %c0_15 = arith.constant 0 : index
    %c0_16 = arith.constant 0 : index
    %32 = vector.load %arg9[%c0_15, %c0_16] : memref<32x1xf32, #tpu.memory_space<vmem>>, vector<32x1xf32>
    %33 = vector.broadcast %32 : vector<32x1xf32> to vector<32x64xf32>
    %34 = arith.addf %31, %33 : vector<32x64xf32>
    %c0_17 = arith.constant 0 : index
    %c0_18 = arith.constant 0 : index
    %c0_19 = arith.constant 0 : index
    %35 = vector.load %arg6[%c0_17, %c0_18, %c0_19] : memref<1x32x1xf32, #tpu.memory_space<vmem>>, vector<1x32x1xf32>
    %36 = vector.shape_cast %35 : vector<1x32x1xf32> to vector<32x1xf32>
    %cst_20 = arith.constant 1.000000e+00 : f32
    %37 = vector.broadcast %cst_20 : f32 to vector<32x1xf32>
    %38 = arith.addf %37, %36 : vector<32x1xf32>
    %39 = vector.broadcast %38 : vector<32x1xf32> to vector<32x64xf32>
    %40 = arith.mulf %34, %39 : vector<32x64xf32>
    %c0_21 = arith.constant 0 : index
    %c0_22 = arith.constant 0 : index
    %c0_23 = arith.constant 0 : index
    %41 = vector.load %arg5[%c0_21, %c0_22, %c0_23] : memref<1x32x1xf32, #tpu.memory_space<vmem>>, vector<1x32x1xf32>
    %42 = vector.shape_cast %41 : vector<1x32x1xf32> to vector<32x1xf32>
    %43 = vector.broadcast %42 : vector<32x1xf32> to vector<32x64xf32>
    %44 = arith.addf %40, %43 : vector<32x64xf32>
    %c0_24 = arith.constant 0 : index
    %c0_25 = arith.constant 0 : index
    %45 = vector.load %arg10[%c0_24, %c0_25] : memref<64x32xf32, #tpu.memory_space<vmem>>, vector<64x32xf32>
    %cst_26 = arith.constant dense<0.000000e+00> : vector<64x64xf32>
    %46 = tpu.matmul %45, %44, %cst_26 {dimension_numbers = #tpu.dot_dimension_numbers<[1], [0], [0], [1], [0, 0, 1, 1], [], []>} : vector<64x32xf32>, vector<32x64xf32>, vector<64x64xf32> -> vector<64x64xf32>
    %c0_27 = arith.constant 0 : index
    %c0_28 = arith.constant 0 : index
    %47 = vector.load %arg11[%c0_27, %c0_28] : memref<64x1xf32, #tpu.memory_space<vmem>>, vector<64x1xf32>
    %48 = vector.broadcast %47 : vector<64x1xf32> to vector<64x64xf32>
    %49 = arith.addf %46, %48 : vector<64x64xf32>
    %cst_29 = arith.constant 5.000000e-01 : f32
    %50 = vector.broadcast %cst_29 : f32 to vector<64x64xf32>
    %51 = arith.mulf %50, %49 : vector<64x64xf32>
    %cst_30 = arith.constant 0.707106769 : f32
    %52 = vector.broadcast %cst_30 : f32 to vector<64x64xf32>
    %53 = arith.mulf %49, %52 : vector<64x64xf32>
    %54 = math.erf %53 : vector<64x64xf32>
    %cst_31 = arith.constant 1.000000e+00 : f32
    %55 = vector.broadcast %cst_31 : f32 to vector<64x64xf32>
    %56 = arith.addf %55, %54 : vector<64x64xf32>
    %57 = arith.mulf %51, %56 : vector<64x64xf32>
    %c0_32 = arith.constant 0 : index
    %c0_33 = arith.constant 0 : index
    %58 = vector.load %arg12[%c0_32, %c0_33] : memref<32x64xf32, #tpu.memory_space<vmem>>, vector<32x64xf32>
    %cst_34 = arith.constant dense<0.000000e+00> : vector<32x64xf32>
    %59 = tpu.matmul %58, %57, %cst_34 {dimension_numbers = #tpu.dot_dimension_numbers<[1], [0], [0], [1], [0, 0, 1, 1], [], []>} : vector<32x64xf32>, vector<64x64xf32>, vector<32x64xf32> -> vector<32x64xf32>
    %c0_35 = arith.constant 0 : index
    %c0_36 = arith.constant 0 : index
    %60 = vector.load %arg13[%c0_35, %c0_36] : memref<32x1xf32, #tpu.memory_space<vmem>>, vector<32x1xf32>
    %61 = vector.broadcast %60 : vector<32x1xf32> to vector<32x64xf32>
    %62 = arith.addf %59, %61 : vector<32x64xf32>
    %c0_37 = arith.constant 0 : index
    %c0_38 = arith.constant 0 : index
    %c0_39 = arith.constant 0 : index
    %63 = vector.load %arg7[%c0_37, %c0_38, %c0_39] : memref<1x32x1xf32, #tpu.memory_space<vmem>>, vector<1x32x1xf32>
    %64 = vector.shape_cast %63 : vector<1x32x1xf32> to vector<32x1xf32>
    %65 = vector.broadcast %64 : vector<32x1xf32> to vector<32x64xf32>
    %66 = arith.mulf %65, %62 : vector<32x64xf32>
    %67 = arith.addf %8, %66 : vector<32x64xf32>
    %c0_40 = arith.constant 0 : index
    %c0_41 = arith.constant 0 : index
    %c0_42 = arith.constant 0 : index
    %68 = vector.load %arg14[%c0_40, %c0_41, %c0_42] : memref<1x32x64xf32, #tpu.memory_space<vmem>>, vector<1x32x64xf32>
    %69 = vector.shape_cast %68 : vector<1x32x64xf32> to vector<32x64xf32>
    %70 = vector.shape_cast %67 : vector<32x64xf32> to vector<1x32x64xf32>
    tpu.vector_store %arg14[%c0_40, %c0_41, %c0_42], %70 {strides = array<i32>} : memref<1x32x64xf32, #tpu.memory_space<vmem>>, vector<1x32x64xf32>,
    return
  }
  func.func @transform_0(%arg0: i32, %arg1: i32) -> (i32, i32, i32) {
    %c0_i32 = arith.constant 0 : i32
    %c0_i32_0 = arith.constant 0 : i32
    return %arg0, %c0_i32, %arg1 : i32, i32, i32
  }
  func.func @transform_1(%arg0: i32, %arg1: i32) -> (i32, i32, i32) {
    %c0_i32 = arith.constant 0 : i32
    %c0_i32_0 = arith.constant 0 : i32
    return %arg0, %c0_i32, %arg1 : i32, i32, i32
  }
  func.func @transform_2(%arg0: i32, %arg1: i32) -> (i32, i32, i32) {
    %c0_i32 = arith.constant 0 : i32
    %c0_i32_0 = arith.constant 0 : i32
    %c0_i32_1 = arith.constant 0 : i32
    return %arg0, %c0_i32, %c0_i32_0 : i32, i32, i32
  }
  func.func @transform_3(%arg0: i32, %arg1: i32) -> (i32, i32, i32) {
    %c0_i32 = arith.constant 0 : i32
    %c0_i32_0 = arith.constant 0 : i32
    %c0_i32_1 = arith.constant 0 : i32
    return %arg0, %c0_i32, %c0_i32_0 : i32, i32, i32
  }
  func.func @transform_4(%arg0: i32, %arg1: i32) -> (i32, i32, i32) {
    %c0_i32 = arith.constant 0 : i32
    %c0_i32_0 = arith.constant 0 : i32
    %c0_i32_1 = arith.constant 0 : i32
    return %arg0, %c0_i32, %c0_i32_0 : i32, i32, i32
  }
  func.func @transform_5(%arg0: i32, %arg1: i32) -> (i32, i32, i32) {
    %c0_i32 = arith.constant 0 : i32
    %c0_i32_0 = arith.constant 0 : i32
    %c0_i32_1 = arith.constant 0 : i32
    return %arg0, %c0_i32, %c0_i32_0 : i32, i32, i32
  }
  func.func @transform_6(%arg0: i32, %arg1: i32) -> (i32, i32) {
    %c0_i32 = arith.constant 0 : i32
    %c0_i32_0 = arith.constant 0 : i32
    %c0_i32_1 = arith.constant 0 : i32
    return %c0_i32, %c0_i32_0 : i32, i32
  }
  func.func @transform_7(%arg0: i32, %arg1: i32) -> (i32, i32) {
    %c0_i32 = arith.constant 0 : i32
    %c0_i32_0 = arith.constant 0 : i32
    %c0_i32_1 = arith.constant 0 : i32
    return %c0_i32, %c0_i32_0 : i32, i32
  }
  func.func @transform_8(%arg0: i32, %arg1: i32) -> (i32, i32) {
    %c0_i32 = arith.constant 0 : i32
    %c0_i32_0 = arith.constant 0 : i32
    %c0_i32_1 = arith.constant 0 : i32
    return %c0_i32, %c0_i32_0 : i32, i32
  }
  func.func @transform_9(%arg0: i32, %arg1: i32) -> (i32, i32) {
    %c0_i32 = arith.constant 0 : i32
    %c0_i32_0 = arith.constant 0 : i32
    %c0_i32_1 = arith.constant 0 : i32
    return %c0_i32, %c0_i32_0 : i32, i32
  }
  func.func @transform_10(%arg0: i32, %arg1: i32) -> (i32, i32) {
    %c0_i32 = arith.constant 0 : i32
    %c0_i32_0 = arith.constant 0 : i32
    %c0_i32_1 = arith.constant 0 : i32
    return %c0_i32, %c0_i32_0 : i32, i32
  }
  func.func @transform_11(%arg0: i32, %arg1: i32) -> (i32, i32) {
    %c0_i32 = arith.constant 0 : i32
    %c0_i32_0 = arith.constant 0 : i32
    %c0_i32_1 = arith.constant 0 : i32
    return %c0_i32, %c0_i32_0 : i32, i32
  }
  func.func @transform_12(%arg0: i32, %arg1: i32) -> (i32, i32, i32) {
    %c0_i32 = arith.constant 0 : i32
    %c0_i32_0 = arith.constant 0 : i32
    return %arg0, %c0_i32, %arg1 : i32, i32, i32
  }
}

</mosaic_0001>

<bundles_post_ra>
// kernel: s2tla_forward.4
= control target key start
LH: loop header
LB: loop body
LE: loop exit
PB: predicated region body
PF: predicated region fallthrough
CT: control target
= control target key end

     0   :  { %s1060_s24 = smov 0   ;;  %s1062_s25 = smov 0   ;;  %s1250_s0 = inlined_call_operand.vmem [shape: f32[2,32,64], index: 0, kind: input, shape index: {}]   ;;  %s1251_s1 = inlined_call_operand.vmem [shape: f32[2,32,1], index: 1, kind: input, shape index: {}]   ;;  %s1252_s2 = inlined_call_operand.vmem [shape: f32[2,32,1], index: 2, kind: input, shape index: {}]   ;;  %s1253_s3 = inlined_call_operand.vmem [shape: f32[32,1], index: 3, kind: input, shape index: {}]   ;;  %s1254_s4 = inlined_call_operand.vmem [shape: f32[32,1], index: 4, kind: input, shape index: {}]   ;;  %s1255_s5 = inlined_call_operand.vmem [shape: f32[96,32], index: 5, kind: input, shape index: {}]   ;;  %s1256_s6 = inlined_call_operand.vmem [shape: f32[96,1], index: 6, kind: input, shape index: {}]   ;;  %s1257_s7 = inlined_call_operand.vmem [shape: f32[2,96,64], index: 7, kind: output, shape index: {}]  }
   0x1   :  { %s1064_s26 = smov 0  }
   0x2 LB: > { %s29_s27 = sadd.s32 1, %s1013_s25  ;;  %p886_p0 = scmp.ge.s32.totalorder %s1017_s26, 1  ;;  %s1017_s26 = sphi %s1064_s26, %s17_s26   ;;  %s1013_s25 = sphi %s1062_s25, %s1259_s25   ;;  %s1009_s24 = sphi %s1060_s24, %s1258_s24  }
   0x3   : > { %p31_p1 = scmp.ge.s32.totalorder %s29_s27, 2  ;;  %p276_p2 = scmp.lt.s32.totalorder %s1017_s26, 3 }
   0x5   : > { %s1261_s27 = smov (%p31_p1, %s29_s27), 0  ;;  %p277_p3 = pnand %p886_p0, %p276_p2 }
   0x6   : > { %v429_v0 = vld [vmem:[%s1254_s4] sm:$0xff] (!%p277_p3)  ;;  %p324_p4 = scmp.lt.s32.totalorder (!%p277_p3), %s1009_s24, 1  ;;  %v1019_v2 = vmov (!%p277_p3), 0   ;;  %v430_v3 = vld [vmem:[%s1254_s4 + $0x8] sm:$0xff] (!%p277_p3)  ;;  %v404_v5 = vld [vmem:[%s1253_s3 + $0x18] sm:$0xff] (!%p277_p3)  ;;  %vm601_vm0 = vcmask (!%p277_p3), 261120  }
   0x7   : > { %280 = sbr.rel (%p277_p3) target bundleno = 396 (0x18c), region = 48  ;;  %v401_v1 = vld [vmem:[%s1253_s3] sm:$0xff] (!%p277_p3)  ;;  %992 = vset.pattern.permute.xlu1 (!%p277_p3), %v1019_v2  ;;  %991 = vset.pattern.permute.xlu0 (!%p277_p3), %v1019_v2  ;;  %v402_v4 = vld [vmem:[%s1253_s3 + $0x8] sm:$0xff] (!%p277_p3)  ;;  %v403_v6 = vld [vmem:[%s1253_s3 + $0x10] sm:$0xff] (!%p277_p3)  ;;  %vm354_vm1 = vcmask (!%p277_p3), 523264  }
   0x8   : > { %435 = vperm.xlu1 (!%p277_p3), %992, %v429_v0   ;;  %407 = vperm.xlu0 (!%p277_p3), %991, %v401_v1   ;;  %v432_v11 = vld [vmem:[%s1254_s4 + $0x18] sm:$0xff] (!%p277_p3)  ;;  %v431_v12 = vld [vmem:[%s1254_s4 + $0x10] sm:$0xff] (!%p277_p3)  ;;  %v530_v21 = vld [vmem:[%s1256_s6 + $0x8] sm:$0xff] (!%p277_p3) }
   0x9   : > { %v529_v22 = vld [vmem:[%s1256_s6] sm:$0xff] (!%p277_p3)  ;;  %v532_v23 = vld [vmem:[%s1256_s6 + $0x18] sm:$0xff] (!%p277_p3)  ;;  %v531_v24 = vld [vmem:[%s1256_s6 + $0x10] sm:$0xff] (!%p277_p3) }
   0xa   : > { %v517_v25 = vld [vmem:[%s1255_s5] sm:$0xff] (!%p277_p3)  ;;  %v523_v26 = vld [vmem:[%s1255_s5 + $0x30] sm:$0xff] (!%p277_p3)  ;;  %v534_v27 = vld [vmem:[%s1256_s6 + $0x28] sm:$0xff] (!%p277_p3) }
   0xb   : > { %935 = vmatprep.mubr.msk.f32.mxu0 (!%p277_p3), %vm601_vm0, %v517_v25  ;;  %944 = vmatprep.mubr.msk.f32.mxu1 (!%p277_p3), %vm601_vm0, %v523_v26  ;;  %v533_v28 = vld [vmem:[%s1256_s6 + $0x20] sm:$0xff] (!%p277_p3)  ;;  %v536_v29 = vld [vmem:[%s1256_s6 + $0x38] sm:$0xff] (!%p277_p3)  ;;  %v535_v30 = vld [vmem:[%s1256_s6 + $0x30] sm:$0xff] (!%p277_p3) }
   0xc   : > { %440 = vperm.xlu1 (!%p277_p3), %992, %v430_v3   ;;  %412 = vperm.xlu0 (!%p277_p3), %991, %v402_v4   ;;  %v538_v31 = vld [vmem:[%s1256_s6 + $0x48] sm:$0xff] (!%p277_p3)  ;;  %v537_v32 = vld [vmem:[%s1256_s6 + $0x40] sm:$0xff] (!%p277_p3)  ;;  %v540_v33 = vld [vmem:[%s1256_s6 + $0x58] sm:$0xff] (!%p277_p3) }
   0xd   : > { %v539_v34 = vld [vmem:[%s1256_s6 + $0x50] sm:$0xff] (!%p277_p3) }
   0xe   : > { %s1263_s24 = smov (!%p324_p4, %s1009_s24), 1 }
   0xf   : > { %s1093_s13 = sshll.u32 %s1263_s24, 5  ;;  %s965_s23 = smul.u32 96, %s1263_s24 }
  0x10   : > { %s341_s16 = scalar_lea.vmem %s1252_s2, %s1093_s13  ;;  %422 = vperm.xlu1 %992, %v404_v5   ;;  %417 = vperm.xlu0 %991, %v403_v6   ;;  %s336_s8 = scalar_lea.vmem %s1251_s1, %s1093_s13 }
  0x11   : > { %v458_v7 = vld [vmem:[%s341_s16 + $0x8] sm:$0xff]  ;;  %v457_v8 = vld [vmem:[%s341_s16] sm:$0xff]  ;;  %v460_v15 = vld [vmem:[%s341_s16 + $0x18] sm:$0xff]  ;;  %s331_s22 = scalar_lea.vmem %s1250_s0, %s1093_s13  ;;  %s1215_s30 = scalar_lea.vmem %s1257_s7, %s965_s23 }
  0x12   : > { %v462_v9 = vadd.f32 1.0, %v458_v7  ;;  %v461_v10 = vadd.f32 1.0, %v457_v8  ;;  %v490_v13 = vld [vmem:[%s336_s8 + $0x8] sm:$0xff]  ;;  %v489_v14 = vld [vmem:[%s336_s8] sm:$0xff]  ;;  %v459_v16 = vld [vmem:[%s341_s16 + $0x10] sm:$0xff]  ;;  %v464_v17 = vadd.f32 1.0, %v460_v15 }
  0x13   : > { %v463_v18 = vadd.f32 1.0, %v459_v16  ;;  %v492_v19 = vld [vmem:[%s336_s8 + $0x18] sm:$0xff]  ;;  %v491_v20 = vld [vmem:[%s336_s8 + $0x10] sm:$0xff]  ;;  %v350_v35 = vld [vmem:[%s331_s22] sm:$0xff] }
  0x14   : > { %472 = vperm.xlu1 %992, %v462_v9   ;;  %467 = vperm.xlu0 %991, %v461_v10   ;;  %v351_v36 = vld [vmem:[%s331_s22 + $0x8] sm:$0xff]  ;;  %v355_v37 = vsel %vm354_vm1, %v350_v35, 0.0  ;;  %v370_v39 = vmul.f32 %v350_v35, %v350_v35  ;;  %v352_v41 = vld [vmem:[%s331_s22 + $0x10] sm:$0xff]  ;;  %v353_v47 = vld [vmem:[%s331_s22 + $0x18] sm:$0xff] }
  0x15   : > { %v356_v38 = vsel %vm354_vm1, %v351_v36, 0.0  ;;  %v371_v40 = vmul.f32 %v351_v36, %v351_v36  ;;  %v358_v43 = vsel %vm354_vm1, %v352_v41, 0.0  ;;  %v372_v44 = vmul.f32 %v352_v41, %v352_v41 }
  0x16   : > { %v357_v42 = vadd.f32 %v356_v38, %v355_v37  ;;  %v374_v45 = vsel %vm354_vm1, %v370_v39, 0.0  ;;  %v360_v50 = vsel %vm354_vm1, %v353_v47, 0.0  ;;  %v373_v51 = vmul.f32 %v353_v47, %v353_v47 }
  0x17   : > { %v375_v46 = vsel %vm354_vm1, %v371_v40, 0.0  ;;  %v377_v52 = vsel %vm354_vm1, %v372_v44, 0.0 }
  0x18   : > { %450 = vperm.xlu1 %992, %v432_v11   ;;  %445 = vperm.xlu0 %991, %v431_v12   ;;  %v359_v48 = vadd.f32 %v358_v43, %v357_v42  ;;  %v376_v49 = vadd.f32 %v375_v46, %v374_v45  ;;  %v379_v55 = vsel %vm354_vm1, %v373_v51, 0.0 }
  0x1a   : > { %v361_v53 = vadd.f32 %v360_v50, %v359_v48  ;;  %v378_v54 = vadd.f32 %v377_v52, %v376_v49 }
  0x1c   : > { %500 = vperm.xlu1 %992, %v490_v13   ;;  %495 = vperm.xlu0 %991, %v489_v14   ;;  %v362_v56 = vrot.slane %v361_v53, 4  ;;  %v380_v57 = vadd.f32 %v379_v55, %v378_v54  ;;  %v518_v54 = vld [vmem:[%s1255_s5 + $0x8] sm:$0xff]  ;;  %v524_v55 = vld [vmem:[%s1255_s5 + $0x38] sm:$0xff] }
  0x1e   : > { %v363_v58 = vadd.f32 %v362_v56, %v361_v53  ;;  %v381_v59 = vrot.slane %v380_v57, 4  ;;  %v519_v56 = vld [vmem:[%s1255_s5 + $0x10] sm:$0xff] }
  0x20   : > { %482 = vperm.xlu1 %992, %v464_v17   ;;  %477 = vperm.xlu0 %991, %v463_v18   ;;  %v364_v60 = vrot.slane %v363_v58, 2  ;;  %v382_v61 = vadd.f32 %v381_v59, %v380_v57  ;;  %v525_v57 = vld [vmem:[%s1255_s5 + $0x40] sm:$0xff]  ;;  %v526_v59 = vld [vmem:[%s1255_s5 + $0x48] sm:$0xff] }
  0x22   : > { %v365_v62 = vadd.f32 %v364_v60, %v363_v58  ;;  %v383_v63 = vrot.slane %v382_v61, 2  ;;  %v520_v58 = vld [vmem:[%s1255_s5 + $0x18] sm:$0xff]  ;;  %v521_v60 = vld [vmem:[%s1255_s5 + $0x20] sm:$0xff] }
  0x24   : > { %510 = vperm.xlu1 %992, %v492_v19   ;;  %505 = vperm.xlu0 %991, %v491_v20   ;;  %v366_v0 = vrot.slane %v365_v62, 1  ;;  %v384_v1 = vadd.f32 %v383_v63, %v382_v61  ;;  %v527_v61 = vld [vmem:[%s1255_s5 + $0x50] sm:$0xff]  ;;  %v528_v63 = vld [vmem:[%s1255_s5 + $0x58] sm:$0xff] }
  0x26   : > { %v367_v2 = vadd.f32 %v366_v0, %v365_v62  ;;  %v385_v3 = vrot.slane %v384_v1, 1  ;;  %v522_v62 = vld [vmem:[%s1255_s5 + $0x28] sm:$0xff] }
  0x28   : > { %548 = vperm.xlu1 %992, %v530_v21   ;;  %543 = vperm.xlu0 %991, %v529_v22   ;;  %v369_v4 = vmul.f32 0.03125, %v367_v2  ;;  %v386_v5 = vadd.f32 %v385_v3, %v384_v1 }
  0x2a   : > { %v387_v6 = vmul.f32 0.03125, %v386_v5  ;;  %v388_v7 = vmul.f32 %v369_v4, %v369_v4  ;;  %v391_v15 = vsub.f32 %v350_v35, %v369_v4  ;;  %v392_v16 = vsub.f32 %v351_v36, %v369_v4 }
  0x2b   : > { %v394_v26 = vsub.f32 %v353_v47, %v369_v4 }
  0x2c   : > { %558 = vperm.xlu1 %992, %v532_v23   ;;  %553 = vperm.xlu0 %991, %v531_v24   ;;  %v389_v8 = vsub.f32 %v387_v6, %v388_v7 }
  0x2e   : > { %v390_v9 = vmax.f32 %v389_v8, 0.0 }
  0x30   : > { %568 = vperm.xlu1 %992, %v534_v27   ;;  %563 = vperm.xlu0 %991, %v533_v28   ;;  %v395_v10 = vadd.f32 1e-05, %v390_v9  ;;  %v393_v27 = vsub.f32 %v352_v41, %v369_v4 }
  0x32   : > { %993 = vrsqrt.f32 %v395_v10 }
  0x34   : > { %578 = vperm.xlu1 %992, %v536_v29   ;;  %573 = vperm.xlu0 %991, %v535_v30  }
  0x38   : > { %588 = vperm.xlu1 %992, %v538_v31   ;;  %583 = vperm.xlu0 %991, %v537_v32  }
  0x3c   : > { %598 = vperm.xlu1 %992, %v540_v33   ;;  %593 = vperm.xlu0 %991, %v539_v34   ;;  %v994_v17 = vpop.eup %993 }
  0x3d   : > { %v397_v20 = vmul.f32 %v994_v17, %v391_v15  ;;  %v398_v21 = vmul.f32 %v994_v17, %v392_v16  ;;  %v400_v32 = vmul.f32 %v994_v17, %v394_v26  ;;  %v399_v33 = vmul.f32 %v994_v17, %v393_v27 }
  0x87   : > { %v436_v11 = vpop.permute.xlu1 %435  ;;  %v408_v12 = vpop.permute.xlu0 %407 }
  0x88   : > { %v425_v24 = vmul.f32 %v408_v12, %v397_v20 }
  0x8a   : > { %v453_v31 = vadd.f32 %v436_v11, %v425_v24 }
  0x8b   : > { %v441_v13 = vpop.permute.xlu1 %440  ;;  %v413_v14 = vpop.permute.xlu0 %412 }
  0x8c   : > { %v426_v25 = vmul.f32 %v413_v14, %v398_v21 }
  0x8e   : > { %v454_v30 = vadd.f32 %v441_v13, %v426_v25 }
  0x8f   : > { %v423_v18 = vpop.permute.xlu1 %422  ;;  %v418_v19 = vpop.permute.xlu0 %417 }
  0x90   : > { %v428_v40 = vmul.f32 %v423_v18, %v400_v32  ;;  %v427_v42 = vmul.f32 %v418_v19, %v399_v33 }
  0x93   : > { %v473_v22 = vpop.permute.xlu1 %472  ;;  %v468_v23 = vpop.permute.xlu0 %467 }
  0x94   : > { %v486_v34 = vmul.f32 %v473_v22, %v454_v30  ;;  %v485_v35 = vmul.f32 %v468_v23, %v453_v31 }
  0x97   : > { %v451_v28 = vpop.permute.xlu1 %450  ;;  %v446_v29 = vpop.permute.xlu0 %445 }
  0x98   : > { %v456_v46 = vadd.f32 %v451_v28, %v428_v40  ;;  %v455_v47 = vadd.f32 %v446_v29, %v427_v42 }
  0x9b   : > { %v501_v36 = vpop.permute.xlu1 %500  ;;  %v496_v37 = vpop.permute.xlu0 %495 }
  0x9c   : > { %v514_v38 = vadd.f32 %v501_v36, %v486_v34  ;;  %v513_v39 = vadd.f32 %v496_v37, %v485_v35 }
  0x9e   : > { %v953_v43 = vpack.c.bf16 %v514_v38, %v513_v39 }
  0x9f   : > { %v483_v44 = vpop.permute.xlu1 %482  ;;  %v478_v45 = vpop.permute.xlu0 %477 }
  0xa0   : > { %954 = vmatprep.subr.bf16.mxu0 %v953_v43  ;;  %961 = vmatprep.subr.bf16.mxu1 %v953_v43  ;;  %v488_v41 = vmul.f32 %v483_v44, %v456_v46  ;;  %v487_v48 = vmul.f32 %v478_v45, %v455_v47 }
  0xa1   : > { %956 = vmatpush3.bf16.msra.mxu0 %v953_v43  ;;  %963 = vmatpush3.bf16.msra.mxu1 %v953_v43 }
  0xa3   : > { %v511_v49 = vpop.permute.xlu1 %510  ;;  %v506_v50 = vpop.permute.xlu0 %505 }
  0xa4   : > { %v516_v51 = vadd.f32 %v511_v49, %v488_v41  ;;  %v515_v52 = vadd.f32 %v506_v50, %v487_v48 }
  0xa6   : > { %v957_v53 = vpack.c.bf16 %v516_v51, %v515_v52 }
  0xa7   : > { %v549_v0 = vpop.permute.xlu1 %548  ;;  %v544_v1 = vpop.permute.xlu0 %543 }
  0xa8   : > { %958 = vmatprep.subr.bf16.mxu0 %v957_v53  ;;  %962 = vmatprep.subr.bf16.mxu1 %v957_v53 }
  0xa9   : > { %960 = vmatpush3.bf16.msra.mxu0 %v957_v53  ;;  %964 = vmatpush3.bf16.msra.mxu1 %v957_v53 }
  0xab   : > { %v559_v2 = vpop.permute.xlu1 %558  ;;  %v554_v3 = vpop.permute.xlu0 %553 }
  0xac   : > { %936 = vmatmul.mubr.msk.f32.vlgmr.msra.gmra.mrb[0].mxu0 %vm601_vm0, %v518_v54  ;;  %945 = vmatmul.mubr.msk.f32.vlgmr.msra.gmra.mrb[0].mxu1 %vm601_vm0, %v524_v55 }
  0xad   : > { %938 = vmatprep.mubr.msk.f32.mxu0 %vm601_vm0, %v519_v56  ;;  %947 = vmatprep.mubr.msk.f32.mxu1 %vm601_vm0, %v525_v57 }
  0xaf   : > { %v569_v4 = vpop.permute.xlu1 %568  ;;  %v564_v5 = vpop.permute.xlu0 %563 }
  0xb0   : > { %939 = vmatmul.mubr.msk.f32.gmra.mrb[2].mxu0 %vm601_vm0, %v520_v58  ;;  %948 = vmatmul.mubr.msk.f32.gmra.mrb[2].mxu1 %vm601_vm0, %v526_v59 }
  0xb1   : > { %941 = vmatprep.mubr.msk.f32.mxu0 %vm601_vm0, %v521_v60  ;;  %950 = vmatprep.mubr.msk.f32.mxu1 %vm601_vm0, %v527_v61 }
  0xb3   : > { %v579_v6 = vpop.permute.xlu1 %578  ;;  %v574_v7 = vpop.permute.xlu0 %573 }
  0xb4   : > { %942 = vmatmul.mubr.msk.f32.gmra.mrb[4].mxu0 %vm601_vm0, %v522_v62  ;;  %951 = vmatmul.mubr.msk.f32.gmra.mrb[4].mxu1 %vm601_vm0, %v528_v63 }
  0xb7   : > { %v589_v8 = vpop.permute.xlu1 %588  ;;  %v584_v9 = vpop.permute.xlu0 %583 }
  0xbb   : > { %v599_v26 = vpop.permute.xlu1 %598  ;;  %v594_v27 = vpop.permute.xlu0 %593 }
 0x17f   : > { %v937_v10 = vpop.f32.mrb[0].mxu0  ;;  %v946_v11 = vpop.f32.mrb[0].mxu1 }
 0x180   : > { %v710_v12 = vadd.f32 %v937_v10, %v549_v0  ;;  %v740_v13 = vadd.f32 %v946_v11, %v579_v6  ;;  %v704_v14 = vpop.f32.mrb[1].mxu0  ;;  %v734_v15 = vpop.f32.mrb[1].mxu1 }
 0x181   : > { %v705_v16 = vadd.f32 %v704_v14, %v544_v1  ;;  %v735_v17 = vadd.f32 %v734_v15, %v574_v7 }
 0x182   : > { %764 = vst.msk [vmem:[%s1215_s30 + $0x8] sm:$0xff] %vm354_vm1, %v710_v12  ;;  %770 = vst.msk [vmem:[%s1215_s30 + $0x38] sm:$0xff] %vm354_vm1, %v740_v13 }
 0x183   : > { %763 = vst.msk [vmem:[%s1215_s30] sm:$0xff] %vm354_vm1, %v705_v16  ;;  %769 = vst.msk [vmem:[%s1215_s30 + $0x30] sm:$0xff] %vm354_vm1, %v735_v17  ;;  %v940_v18 = vpop.f32.mrb[2].mxu0  ;;  %v949_v19 = vpop.f32.mrb[2].mxu1 }
 0x184   : > { %v720_v20 = vadd.f32 %v940_v18, %v559_v2  ;;  %v750_v21 = vadd.f32 %v949_v19, %v589_v8  ;;  %v714_v22 = vpop.f32.mrb[3].mxu0  ;;  %v744_v23 = vpop.f32.mrb[3].mxu1 }
 0x185   : > { %v715_v24 = vadd.f32 %v714_v22, %v554_v3  ;;  %v745_v25 = vadd.f32 %v744_v23, %v584_v9 }
 0x186   : > { %766 = vst.msk [vmem:[%s1215_s30 + $0x18] sm:$0xff] %vm354_vm1, %v720_v20  ;;  %772 = vst.msk [vmem:[%s1215_s30 + $0x48] sm:$0xff] %vm354_vm1, %v750_v21 }
 0x187   : > { %765 = vst.msk [vmem:[%s1215_s30 + $0x10] sm:$0xff] %vm354_vm1, %v715_v24  ;;  %771 = vst.msk [vmem:[%s1215_s30 + $0x40] sm:$0xff] %vm354_vm1, %v745_v25  ;;  %v943_v28 = vpop.f32.mrb[4].mxu0  ;;  %v952_v29 = vpop.f32.mrb[4].mxu1 }
 0x188   : > { %v730_v30 = vadd.f32 %v943_v28, %v569_v4  ;;  %v760_v31 = vadd.f32 %v952_v29, %v599_v26  ;;  %v724_v32 = vpop.f32.mrb[5].mxu0  ;;  %v754_v33 = vpop.f32.mrb[5].mxu1 }
 0x189   : > { %v725_v34 = vadd.f32 %v724_v32, %v564_v5  ;;  %v755_v35 = vadd.f32 %v754_v33, %v594_v27 }
 0x18a   : > { %768 = vst.msk [vmem:[%s1215_s30 + $0x28] sm:$0xff] %vm354_vm1, %v730_v30  ;;  %774 = vst.msk [vmem:[%s1215_s30 + $0x58] sm:$0xff] %vm354_vm1, %v760_v31 }
 0x18b   : > { %767 = vst.msk [vmem:[%s1215_s30 + $0x20] sm:$0xff] %vm354_vm1, %v725_v34  ;;  %773 = vst.msk [vmem:[%s1215_s30 + $0x50] sm:$0xff] %vm354_vm1, %v755_v35 }
 0x18c PF: > { %s17_s26 = sadd.s32 1, %s1017_s26   ;;  %s1258_s24 = smov %s1013_s25 }
 0x18d   : > { %p14_p5 = scmp.ge.s32.totalorder %s17_s26, 4   ;;  %s1259_s25 = smov %s1261_s27 }
 0x18f   :  { %16 = sbr.rel (!%p14_p5) target bundleno = 2 (0x2), region = 84 }

// kernel: s2tla_forward.5
= control target key start
LH: loop header
LB: loop body
LE: loop exit
PB: predicated region body
PF: predicated region fallthrough
CT: control target
= control target key end

     0   :  { %v61_v0 = vlaneseq  ;;  %v2056_v4 = vmov 1966171168   ;;  %vm833_vm0 = vcmask 523264   ;;  %vm1883_vm1 = vcmask 1041409   ;;  %s3971_s0 = inlined_call_operand.vmem [shape: f32[8,8,64], index: 0, kind: input, shape index: {}]   ;;  %s3972_s1 = inlined_call_operand.vmem [shape: f32[8,8,64], index: 1, kind: input, shape index: {}]   ;;  %s3973_s2 = inlined_call_operand.vmem [shape: f32[8,8,64], index: 2, kind: input, shape index: {}]   ;;  %s3974_s3 = inlined_call_operand.vmem [shape: f32[8,8,64], index: 3, kind: input, shape index: {}]   ;;  %s3975_s4 = inlined_call_operand.vmem [shape: f32[8,8,64], index: 4, kind: output, shape index: {}]  }
   0x1   :  { %v17_v1 = vld [vmem:[%s3971_s0] sm:$0xff]  ;;  %v18_v2 = vld [vmem:[%s3971_s0 + $0x8] sm:$0xff]  ;;  %v19_v3 = vld [vmem:[%s3971_s0 + $0x10] sm:$0xff]  ;;  %v59_v5 = vunpack.c.l.s4 %v2056_v4  ;;  %vm1886_vm2 = vcmask 1042434   ;;  %vm1889_vm3 = vcmask 1043459   ;;  %vm1892_vm4 = vcmask 1044484  }
   0x2   :  { %v20_v6 = vld [vmem:[%s3971_s0 + $0x18] sm:$0xff]  ;;  %v21_v7 = vld [vmem:[%s3971_s0 + $0x20] sm:$0xff]  ;;  %v22_v8 = vld [vmem:[%s3971_s0 + $0x28] sm:$0xff]  ;;  %v25_v9 = vmul.f32 0.35355338, %v17_v1  ;;  %v2100_v10 = vshrl.u32 %v61_v0, 7 }
   0x3   :  { %v23_v11 = vld [vmem:[%s3971_s0 + $0x30] sm:$0xff]  ;;  %v24_v12 = vld [vmem:[%s3971_s0 + $0x38] sm:$0xff]  ;;  %v26_v13 = vmul.f32 0.35355338, %v18_v2  ;;  %v60_v14 = vunpack.c.0.s8 %v59_v5  ;;  %v27_v15 = vmul.f32 0.35355338, %v19_v3 }
   0x4   :  { %v28_v16 = vmul.f32 0.35355338, %v20_v6  ;;  %v29_v17 = vmul.f32 0.35355338, %v21_v7  ;;  %v57_v18 = vcombine.high %v25_v9, %v25_v9  ;;  %v30_v19 = vmul.f32 0.35355338, %v22_v8 }
   0x5   :  { %v2108_v20 = vmul.f32 0.35355338, %v23_v11  ;;  %v2111_v21 = vsub.s32 %v60_v14, %v2100_v10  ;;  %v106_v22 = vcombine.high %v26_v13, %v26_v13  ;;  %v2113_v23 = vmul.f32 0.35355338, %v24_v12 }
   0x6   :  { %v155_v24 = vcombine.high %v27_v15, %v27_v15  ;;  %v204_v25 = vcombine.high %v28_v16, %v28_v16  ;;  %v253_v26 = vcombine.high %v29_v17, %v29_v17  ;;  %v302_v34 = vcombine.high %v30_v19, %v30_v19 }
   0x7   :  { %v64_v27 = vrot.slane %v25_v9, %v2111_v21  ;;  %v71_v28 = vrot.slane %v57_v18, %v2111_v21  ;;  %v113_v29 = vrot.slane %v26_v13, %v2111_v21  ;;  %v120_v30 = vrot.slane %v106_v22, %v2111_v21 }
   0x8   :  { %v162_v31 = vrot.slane %v27_v15, %v2111_v21  ;;  %v169_v32 = vrot.slane %v155_v24, %v2111_v21  ;;  %v211_v33 = vrot.slane %v28_v16, %v2111_v21  ;;  %v218_v46 = vrot.slane %v204_v25, %v2111_v21 }
   0x9   :  { %v72_v35 = vcombine.high %v64_v27, %v64_v27  ;;  %v73_v36 = vcombine.high %v71_v28, %v71_v28  ;;  %v2123_v37 = vrot.slane %v64_v27, %v2111_v21  ;;  %v2126_v38 = vrot.slane %v71_v28, %v2111_v21 }
   0xa   :  { %v121_v39 = vcombine.high %v113_v29, %v113_v29  ;;  %v122_v40 = vcombine.high %v120_v30, %v120_v30  ;;  %v2129_v41 = vrot.slane %v113_v29, %v2111_v21  ;;  %v2132_v42 = vrot.slane %v120_v30, %v2111_v21 }
   0xb   :  { %v2135_v43 = vrot.slane %v72_v35, %v2111_v21  ;;  %v2138_v44 = vrot.slane %v73_v36, %v2111_v21  ;;  %v102_v45 = vcombine.high %v2123_v37, %v2123_v37  ;;  %v103_v47 = vcombine.high %v2126_v38, %v2126_v38 }
   0xc   :  { %v2146_v48 = vrot.slane %v121_v39, %v2111_v21  ;;  %v2149_v49 = vrot.slane %v122_v40, %v2111_v21  ;;  %v151_v50 = vcombine.high %v2129_v41, %v2129_v41  ;;  %v152_v52 = vcombine.high %v2132_v42, %v2132_v42 }
   0xd   :  { %v104_v51 = vcombine.high %v2135_v43, %v2135_v43  ;;  %v170_v53 = vcombine.high %v162_v31, %v162_v31  ;;  %v171_v54 = vcombine.high %v169_v32, %v169_v32  ;;  %v105_v55 = vcombine.high %v2138_v44, %v2138_v44 }
   0xe   :  { %v153_v56 = vcombine.high %v2146_v48, %v2146_v48  ;;  %v2162_v57 = vrot.slane %v162_v31, %v2111_v21  ;;  %v2165_v58 = vrot.slane %v169_v32, %v2111_v21  ;;  %v219_v61 = vcombine.high %v211_v33, %v211_v33 }
   0xf   :  { %v2168_v59 = vrot.slane %v170_v53, %v2111_v21  ;;  %v2171_v60 = vrot.slane %v171_v54, %v2111_v21  ;;  %v220_v62 = vcombine.high %v218_v46, %v218_v46  ;;  %v154_v63 = vcombine.high %v2149_v49, %v2149_v49 }
  0x10   :  { %v200_v0 = vcombine.high %v2162_v57, %v2162_v57  ;;  %v2178_v1 = vrot.slane %v211_v33, %v2111_v21  ;;  %v2181_v2 = vrot.slane %v218_v46, %v2111_v21  ;;  %v201_v3 = vcombine.high %v2165_v58, %v2165_v58 }
  0x11   :  { %v202_v4 = vcombine.high %v2168_v59, %v2168_v59  ;;  %v203_v5 = vcombine.high %v2171_v60, %v2171_v60  ;;  %v2190_v6 = vrot.slane %v219_v61, %v2111_v21  ;;  %v2193_v7 = vrot.slane %v220_v62, %v2111_v21 }
  0x12   :  { %v249_v8 = vcombine.high %v2178_v1, %v2178_v1  ;;  %v260_v9 = vrot.slane %v29_v17, %v2111_v21  ;;  %v267_v11 = vrot.slane %v253_v26, %v2111_v21  ;;  %v250_v12 = vcombine.high %v2181_v2, %v2181_v2 }
  0x13   :  { %v251_v13 = vcombine.high %v2190_v6, %v2190_v6  ;;  %v309_v14 = vrot.slane %v30_v19, %v2111_v21  ;;  %v316_v15 = vrot.slane %v302_v34, %v2111_v21  ;;  %v252_v19 = vcombine.high %v2193_v7, %v2193_v7 }
  0x14   :  { %v268_v16 = vcombine.high %v260_v9, %v260_v9  ;;  %v269_v18 = vcombine.high %v267_v11, %v267_v11  ;;  %v2206_v22 = vrot.slane %v260_v9, %v2111_v21  ;;  %v2209_v24 = vrot.slane %v267_v11, %v2111_v21 }
  0x15   :  { %v317_v17 = vcombine.high %v309_v14, %v309_v14  ;;  %v318_v25 = vcombine.high %v316_v15, %v316_v15  ;;  %v2212_v26 = vrot.slane %v309_v14, %v2111_v21  ;;  %v2215_v27 = vrot.slane %v316_v15, %v2111_v21 }
  0x16   :  { %v2220_v28 = vrot.slane %v268_v16, %v2111_v21  ;;  %v2223_v29 = vrot.slane %v269_v18, %v2111_v21  ;;  %v298_v30 = vcombine.high %v2206_v22, %v2206_v22  ;;  %v299_v31 = vcombine.high %v2209_v24, %v2209_v24 }
  0x17   :  { %v2230_v32 = vrot.slane %v317_v17, %v2111_v21  ;;  %v2233_v33 = vrot.slane %v318_v25, %v2111_v21  ;;  %v347_v34 = vcombine.high %v2212_v26, %v2212_v26  ;;  %v348_v36 = vcombine.high %v2215_v27, %v2215_v27 }
  0x18   :  { %v300_v35 = vcombine.high %v2220_v28, %v2220_v28  ;;  %v351_v39 = vcombine.high %v2108_v20, %v2108_v20  ;;  %v358_v40 = vrot.slane %v2108_v20, %v2111_v21  ;;  %v301_v46 = vcombine.high %v2223_v29, %v2223_v29 }
  0x19   :  { %v349_v53 = vcombine.high %v2230_v32, %v2230_v32  ;;  %v400_v54 = vcombine.high %v2113_v23, %v2113_v23  ;;  %v407_v61 = vrot.slane %v2113_v23, %v2111_v21  ;;  %v2264_v18 = vsub.s32 0, %v2100_v10 }
  0x1a   :  { %v365_v9 = vrot.slane %v351_v39, %v2111_v21  ;;  %v366_v11 = vcombine.high %v358_v40, %v358_v40  ;;  %v2257_v20 = vrot.slane %v358_v40, %v2111_v21  ;;  %vm1895_vm5 = vcmask 1045509  }
  0x1b   :  { %v414_v14 = vrot.slane %v400_v54, %v2111_v21  ;;  %v415_v15 = vcombine.high %v407_v61, %v407_v61  ;;  %v2261_v16 = vrot.slane %v407_v61, %v2111_v21  ;;  %v2306_v39 = vrot.slane %v102_v45, %v2264_v18 }
  0x1c   :  { %v367_v17 = vcombine.high %v365_v9, %v365_v9  ;;  %v2267_v23 = vrot.slane %v365_v9, %v2111_v21  ;;  %v2270_v25 = vrot.slane %v366_v11, %v2111_v21  ;;  %v2324_v45 = vrot.slane %v103_v47, %v2264_v18 }
  0x1d   :  { %3986 = vst [vmem:[#allocation2_spill] sm:$0xff] %v2261_v16  ;;  %v416_v40 = vcombine.high %v414_v14, %v414_v14  ;;  %v2275_v54 = vrot.slane %v414_v14, %v2111_v21  ;;  %v2278_v61 = vrot.slane %v415_v15, %v2111_v21  ;;  %v2340_v15 = vrot.slane %v151_v50, %v2264_v18 }
  0x1e   :  { %3987 = vst [vmem:[#allocation3_spill] sm:$0xff] %v2270_v25  ;;  %v2283_v62 = vrot.slane %v367_v17, %v2111_v21  ;;  %v398_v11 = vcombine.high %v2270_v25, %v2270_v25  ;;  %v2346_v47 = vrot.slane %v153_v56, %v2264_v18  ;;  %v2356_v10 = vrot.slane %v152_v52, %v2264_v18 }
  0x1f   :  { %3988 = vst [vmem:[#allocation4_spill] sm:$0xff] %v2278_v61  ;;  %v2292_v14 = vrot.slane %v416_v40, %v2111_v21  ;;  %v2312_v21 = vrot.slane %v104_v51, %v2264_v18  ;;  %v2330_v51 = vrot.slane %v105_v55, %v2264_v18  ;;  %v2362_v50 = vrot.slane %v154_v63, %v2264_v18 }
  0x20   :  { %v399_v9 = vcombine.high %v2283_v62, %v2283_v62  ;;  %v2372_v40 = vrot.slane %v200_v0, %v2264_v18  ;;  %v2378_v52 = vrot.slane %v202_v4, %v2264_v18  ;;  %v2388_v55 = vrot.slane %v201_v3, %v2264_v18 }
  0x21   :  { %3989 = vst [vmem:[#allocation5_spill] sm:$0xff] %v2292_v14  ;;  %v448_v17 = vcombine.high %v2292_v14, %v2292_v14  ;;  %v2394_v0 = vrot.slane %v203_v5, %v2264_v18  ;;  %v2404_v56 = vrot.slane %v249_v8, %v2264_v18  ;;  %v2410_v3 = vrot.slane %v251_v13, %v2264_v18 }
  0x22   :  { %v2420_v63 = vrot.slane %v250_v12, %v2264_v18  ;;  %v2426_v8 = vrot.slane %v252_v19, %v2264_v18  ;;  %v2436_v4 = vrot.slane %v298_v30, %v2264_v18  ;;  %v2442_v12 = vrot.slane %v300_v35, %v2264_v18 }
  0x23   :  { %v2452_v5 = vrot.slane %v299_v31, %v2264_v18  ;;  %v2458_v30 = vrot.slane %v301_v46, %v2264_v18  ;;  %v2468_v13 = vrot.slane %v347_v34, %v2264_v18  ;;  %v2474_v31 = vrot.slane %v349_v53, %v2264_v18 }
  0x24   :  { %v2484_v19 = vrot.slane %v348_v36, %v2264_v18  ;;  %v3992_v34 = vcombine.high %v2233_v33, %v2233_v33  ;;  %v3994_v35 = vcombine.high %v2257_v20, %v2257_v20  ;;  %v2503_v36 = vrot.slane %v398_v11, %v2264_v18 }
  0x25   :  { %3990 = vst [vmem:[#allocation6_spill] sm:$0xff] %v2468_v13  ;;  %3991 = vst [vmem:[#allocation7_spill] sm:$0xff] %v2474_v31  ;;  %v3996_v46 = vcombine.high %v2267_v23, %v2267_v23  ;;  %v4004_v11 = vrot.slane %v2135_v43, %v2264_v18  ;;  %v4007_v43 = vrot.slane %v2138_v44, %v2264_v18  ;;  %vm1898_vm6 = vcmask 1046534  }
  0x26   :  { %v2490_v13 = vrot.slane %v3992_v34, %v2264_v18  ;;  %v2500_v31 = vrot.slane %v3994_v35, %v2264_v18  ;;  %3995 = vst [vmem:[#allocation9_spill] sm:$0xff] %v2503_v36  ;;  %v33_v34 = vld [vmem:[%s3972_s1] sm:$0xff]  ;;  %v2519_v35 = vrot.slane %v399_v9, %v2264_v18  ;;  %v34_v9 = vld [vmem:[%s3972_s1 + $0x8] sm:$0xff]  ;;  %vm1901_vm7 = vcmask 1047559  }
  0x27   :  { %v2516_v25 = vrot.slane %v3996_v46, %v2264_v18  ;;  %v4000_v46 = vcombine.high %v2278_v61, %v2278_v61  ;;  %v2551_v61 = vrot.slane %v448_v17, %v2264_v18  ;;  %v2564_v36 = vmul.f32 %v2306_v39, %v33_v34  ;;  %v35_v17 = vld [vmem:[%s3972_s1 + $0x10] sm:$0xff] }
  0x28   :  { %3993 = vst [vmem:[#allocation8_spill] sm:$0xff] %v2490_v13  ;;  %v3998_v13 = vcombine.high %v2261_v16, %v2261_v16  ;;  %v2561_v16 = vmul.f32 %v4004_v11, %v33_v34  ;;  %v2567_v14 = vmul.f32 %v2312_v21, %v33_v34  ;;  %v2580_v11 = vmul.f32 %v4007_v43, %v33_v34 }
  0x29   :  { %3997 = vst [vmem:[#allocation10_spill] sm:$0xff] %v2516_v25  ;;  %v2535_v25 = vrot.slane %v4000_v46, %v2264_v18  ;;  %v4003_v46 = vrot.slane %v2123_v37, %v2264_v18  ;;  %v4006_v37 = vrot.slane %v2126_v38, %v2264_v18  ;;  %v2583_v39 = vmul.f32 %v2324_v45, %v33_v34  ;;  %v36_v45 = vld [vmem:[%s3972_s1 + $0x18] sm:$0xff] }
  0x2a   :  { %v2529_v53 = vrot.slane %v3998_v13, %v2264_v18  ;;  %v4002_v13 = vcombine.high %v2275_v54, %v2275_v54  ;;  %4005 = vst [vmem:[#allocation13_spill] sm:$0xff] %v2567_v14  ;;  %v2586_v21 = vmul.f32 %v2330_v51, %v33_v34  ;;  %v4010_v38 = vrot.slane %v2146_v48, %v2264_v18 }
  0x2b   :  { %4001 = vst [vmem:[#allocation12_spill] sm:$0xff] %v2535_v25  ;;  %v2556_v25 = vmul.f32 %v4003_v46, %v33_v34  ;;  %v4009_v46 = vrot.slane %v2129_v41, %v2264_v18  ;;  %v2599_v44 = vmul.f32 %v2340_v15, %v34_v9  ;;  %v2602_v43 = vmul.f32 %v2346_v47, %v34_v9 }
  0x2c   :  { %3999 = vst [vmem:[#allocation11_spill] sm:$0xff] %v2529_v53  ;;  %v2548_v53 = vrot.slane %v4002_v13, %v2264_v18  ;;  %v2575_v13 = vmul.f32 %v4006_v37, %v33_v34  ;;  %4008 = vst [vmem:[#allocation14_spill] sm:$0xff] %v2586_v21  ;;  %v2596_v37 = vmul.f32 %v4010_v38, %v34_v9 }
  0x2d   :  { %v2591_v14 = vmul.f32 %v4009_v46, %v34_v9  ;;  %v4011_v41 = vrot.slane %v2132_v42, %v2264_v18  ;;  %v4012_v48 = vrot.slane %v2149_v49, %v2264_v18  ;;  %v2618_v15 = vmul.f32 %v2356_v10, %v34_v9  ;;  %v37_v10 = vld [vmem:[%s3972_s1 + $0x20] sm:$0xff] }
  0x2e   :  { %v2621_v47 = vmul.f32 %v2362_v50, %v34_v9  ;;  %v4014_v46 = vrot.slane %v2162_v57, %v2264_v18  ;;  %v4015_v42 = vrot.slane %v2168_v59, %v2264_v18  ;;  %v2632_v21 = vmul.f32 %v2372_v40, %v35_v17 }
  0x2f   :  { %v2610_v51 = vmul.f32 %v4011_v41, %v34_v9  ;;  %v2615_v34 = vmul.f32 %v4012_v48, %v34_v9  ;;  %v2635_v49 = vmul.f32 %v2378_v52, %v35_v17  ;;  %v4016_v50 = vrot.slane %v2165_v58, %v2264_v18 }
  0x30   :  { %4013 = vst [vmem:[#allocation15_spill] sm:$0xff] %v2621_v47  ;;  %v785_v38 = vmul.f32 %v4014_v46, %v35_v17  ;;  %v2629_v41 = vmul.f32 %v4015_v42, %v35_v17  ;;  %v4017_v59 = vrot.slane %v2171_v60, %v2264_v18  ;;  %v2651_v40 = vmul.f32 %v2388_v55, %v35_v17  ;;  %v38_v55 = vld [vmem:[%s3972_s1 + $0x28] sm:$0xff] }
  0x31   :  { %v2643_v57 = vmul.f32 %v4016_v50, %v35_v17  ;;  %v2654_v52 = vmul.f32 %v2394_v0, %v35_v17  ;;  %v4020_v48 = vrot.slane %v2178_v1, %v2264_v18  ;;  %v4021_v58 = vrot.slane %v2190_v6, %v2264_v18 }
  0x32   :  { %v2648_v9 = vmul.f32 %v4017_v59, %v35_v17  ;;  %4018 = vst [vmem:[#allocation16_spill] sm:$0xff] %v2651_v40  ;;  %v2663_v50 = vmul.f32 %v2404_v56, %v36_v45  ;;  %v2666_v60 = vmul.f32 %v2410_v3, %v36_v45  ;;  %v4022_v0 = vrot.slane %v2181_v2, %v2264_v18  ;;  %v4054_v40 = vld [vmem:[#allocation12_spill] sm:$0xff] }
  0x33   :  { %4019 = vst [vmem:[#allocation17_spill] sm:$0xff] %v2654_v52  ;;  %v793_v46 = vmul.f32 %v4020_v48, %v36_v45  ;;  %v794_v42 = vmul.f32 %v4021_v58, %v36_v45  ;;  %v4023_v1 = vrot.slane %v2193_v7, %v2264_v18  ;;  %v2682_v56 = vmul.f32 %v2420_v63, %v36_v45  ;;  %v39_v63 = vld [vmem:[%s3972_s1 + $0x30] sm:$0xff]  ;;  %v4035_v52 = vld [vmem:[#allocation7_spill] sm:$0xff] }
  0x34   :  { %v2674_v17 = vmul.f32 %v4022_v0, %v36_v45  ;;  %v2685_v3 = vmul.f32 %v2426_v8, %v36_v45  ;;  %v4026_v59 = vrot.slane %v2206_v22, %v2264_v18  ;;  %v4027_v2 = vrot.slane %v2220_v28, %v2264_v18 }
  0x35   :  { %v2679_v6 = vmul.f32 %v4023_v1, %v36_v45  ;;  %4024 = vst [vmem:[#allocation18_spill] sm:$0xff] %v2682_v56  ;;  %v803_v0 = vmul.f32 %v2436_v4, %v37_v10  ;;  %v2695_v7 = vmul.f32 %v2442_v12, %v37_v10  ;;  %v4028_v8 = vrot.slane %v2209_v24, %v2264_v18 }
  0x36   :  { %4025 = vst [vmem:[#allocation19_spill] sm:$0xff] %v2685_v3  ;;  %v801_v48 = vmul.f32 %v4026_v59, %v37_v10  ;;  %v802_v58 = vmul.f32 %v4027_v2, %v37_v10  ;;  %v4029_v22 = vrot.slane %v2223_v29, %v2264_v18  ;;  %v2711_v28 = vmul.f32 %v2452_v5, %v37_v10  ;;  %v40_v5 = vld [vmem:[%s3972_s1 + $0x38] sm:$0xff] }
  0x37   :  { %v2703_v45 = vmul.f32 %v4028_v8, %v37_v10  ;;  %v2714_v4 = vmul.f32 %v2458_v30, %v37_v10  ;;  %v4032_v12 = vrot.slane %v2212_v26, %v2264_v18  ;;  %v4033_v24 = vrot.slane %v2230_v32, %v2264_v18  ;;  %v4034_v8 = vld [vmem:[#allocation6_spill] sm:$0xff] }
  0x38   :  { %v2708_v1 = vmul.f32 %v4029_v22, %v37_v10  ;;  %4030 = vst [vmem:[#allocation20_spill] sm:$0xff] %v2711_v28  ;;  %v811_v3 = vmul.f32 %v4034_v8, %v38_v55  ;;  %v2724_v29 = vmul.f32 %v4035_v52, %v38_v55  ;;  %v4036_v30 = vrot.slane %v2215_v27, %v2264_v18  ;;  %v4044_v28 = vld [vmem:[#allocation9_spill] sm:$0xff] }
  0x39   :  { %4031 = vst [vmem:[#allocation21_spill] sm:$0xff] %v2714_v4  ;;  %v809_v59 = vmul.f32 %v4032_v12, %v38_v55  ;;  %v810_v2 = vmul.f32 %v4033_v24, %v38_v55  ;;  %v4037_v26 = vrot.slane %v2233_v33, %v2264_v18  ;;  %v2740_v32 = vmul.f32 %v2484_v19, %v38_v55  ;;  %v4039_v12 = vld [vmem:[#allocation8_spill] sm:$0xff]  ;;  %v4042_v4 = vld [vmem:[#allocation3_spill] sm:$0xff] }
  0x3a   :  { %v2732_v10 = vmul.f32 %v4036_v30, %v38_v55  ;;  %v2743_v52 = vmul.f32 %v4039_v12, %v38_v55  ;;  %v4041_v24 = vrot.slane %v2257_v20, %v2264_v18  ;;  %v4043_v27 = vrot.slane %v4042_v4, %v2264_v18  ;;  %v4047_v20 = vld [vmem:[#allocation10_spill] sm:$0xff] }
  0x3b   :  { %v2737_v22 = vmul.f32 %v4037_v26, %v38_v55  ;;  %4038 = vst [vmem:[#allocation6_spill] sm:$0xff] %v2740_v32  ;;  %v819_v47 = vmul.f32 %v2500_v31, %v39_v63  ;;  %v820_v33 = vmul.f32 %v4044_v28, %v39_v63  ;;  %v4045_v26 = vrot.slane %v2267_v23, %v2264_v18  ;;  %v4053_v32 = vld [vmem:[#allocation11_spill] sm:$0xff] }
  0x3c   :  { %4040 = vst [vmem:[#allocation7_spill] sm:$0xff] %v2743_v52  ;;  %v817_v8 = vmul.f32 %v4041_v24, %v39_v63  ;;  %v818_v30 = vmul.f32 %v4043_v27, %v39_v63  ;;  %v4046_v55 = vrot.slane %v2283_v62, %v2264_v18  ;;  %v2764_v24 = vmul.f32 %v4047_v20, %v39_v63  ;;  %v4049_v27 = vld [vmem:[#allocation2_spill] sm:$0xff]  ;;  %v4051_v52 = vld [vmem:[#allocation4_spill] sm:$0xff] }
  0x3d   :  { %v2756_v19 = vmul.f32 %v4045_v26, %v39_v63  ;;  %v2767_v4 = vmul.f32 %v2519_v35, %v39_v63  ;;  %v4050_v31 = vrot.slane %v4049_v27, %v2264_v18  ;;  %v4052_v23 = vrot.slane %v4051_v52, %v2264_v18 }
  0x3e   :  { %v2761_v12 = vmul.f32 %v4046_v55, %v39_v63  ;;  %4048 = vst [vmem:[#allocation8_spill] sm:$0xff] %v2764_v24  ;;  %v827_v56 = vmul.f32 %v4053_v32, %v40_v5  ;;  %v828_v62 = vmul.f32 %v4054_v40, %v40_v5  ;;  %v4055_v55 = vrot.slane %v2275_v54, %v2264_v18  ;;  %v4056_v24 = vld [vmem:[#allocation5_spill] sm:$0xff] }
  0x3f   :  { %v825_v28 = vmul.f32 %v4050_v31, %v40_v5  ;;  %v826_v26 = vmul.f32 %v4052_v23, %v40_v5  ;;  %v4057_v35 = vrot.slane %v4056_v24, %v2264_v18  ;;  %v2788_v27 = vmul.f32 %v2548_v53, %v40_v5 }
  0x40   :  { %v2780_v20 = vmul.f32 %v4055_v55, %v40_v5  ;;  %v2791_v52 = vmul.f32 %v2551_v61, %v40_v5  ;;  %v834_v32 = vsel %vm833_vm0, %v2556_v25, 0.0  ;;  %v835_v40 = vsel %vm833_vm0, %v2591_v14, 0.0 }
  0x41   :  { %v2785_v63 = vmul.f32 %v4057_v35, %v40_v5  ;;  %v837_v54 = vsel %vm833_vm0, %v785_v38, 0.0  ;;  %v839_v31 = vsel %vm833_vm0, %v793_v46, 0.0  ;;  %v836_v23 = vadd.f32 %v835_v40, %v834_v32 }
  0x42   :  { %v841_v18 = vsel %vm833_vm0, %v801_v48, 0.0  ;;  %v843_v24 = vsel %vm833_vm0, %v809_v59, 0.0  ;;  %v845_v53 = vsel %vm833_vm0, %v817_v8, 0.0  ;;  %v847_v61 = vsel %vm833_vm0, %v825_v28, 0.0 }
  0x43   :  { %v849_v5 = vsel %vm833_vm0, %v2561_v16, 0.0  ;;  %v850_v25 = vsel %vm833_vm0, %v2596_v37, 0.0  ;;  %v852_v14 = vsel %vm833_vm0, %v2629_v41, 0.0  ;;  %v838_v38 = vadd.f32 %v837_v54, %v836_v23  ;;  %v4058_v23 = vld [vmem:[#allocation13_spill] sm:$0xff] }
  0x44   :  { %v851_v46 = vadd.f32 %v850_v25, %v849_v5  ;;  %v854_v55 = vsel %vm833_vm0, %v794_v42, 0.0  ;;  %v856_v48 = vsel %vm833_vm0, %v802_v58, 0.0  ;;  %v858_v59 = vsel %vm833_vm0, %v810_v2, 0.0 }
  0x45   :  { %v860_v8 = vsel %vm833_vm0, %v818_v30, 0.0  ;;  %v862_v28 = vsel %vm833_vm0, %v826_v26, 0.0  ;;  %v864_v16 = vsel %vm833_vm0, %v2564_v36, 0.0  ;;  %v840_v35 = vadd.f32 %v839_v31, %v838_v38 }
  0x46   :  { %v853_v37 = vadd.f32 %v852_v14, %v851_v46  ;;  %v865_v41 = vsel %vm833_vm0, %v2599_v44, 0.0  ;;  %v867_v32 = vsel %vm833_vm0, %v2632_v21, 0.0  ;;  %v869_v58 = vsel %vm833_vm0, %v2663_v50, 0.0 }
  0x47   :  { %v866_v42 = vadd.f32 %v865_v41, %v864_v16  ;;  %v871_v2 = vsel %vm833_vm0, %v803_v0, 0.0  ;;  %v873_v30 = vsel %vm833_vm0, %v811_v3, 0.0  ;;  %v842_v26 = vadd.f32 %v841_v18, %v840_v35 }
  0x48   :  { %v855_v40 = vadd.f32 %v854_v55, %v853_v37  ;;  %v875_v36 = vsel %vm833_vm0, %v819_v47, 0.0  ;;  %v877_v54 = vsel %vm833_vm0, %v827_v56, 0.0  ;;  %v879_v44 = vsel %vm833_vm0, %v4058_v23, 0.0  ;;  %v4060_v23 = vld [vmem:[#allocation18_spill] sm:$0xff] }
  0x49   :  { %v868_v31 = vadd.f32 %v867_v32, %v866_v42  ;;  %v880_v21 = vsel %vm833_vm0, %v2602_v43, 0.0  ;;  %v882_v50 = vsel %vm833_vm0, %v2635_v49, 0.0  ;;  %v844_v5 = vadd.f32 %v843_v24, %v842_v26 }
  0x4a   :  { %v857_v0 = vadd.f32 %v856_v48, %v855_v40  ;;  %v881_v25 = vadd.f32 %v880_v21, %v879_v44  ;;  %v884_v3 = vsel %vm833_vm0, %v2666_v60, 0.0  ;;  %v886_v47 = vsel %vm833_vm0, %v2695_v7, 0.0  ;;  %v4059_v40 = vld [vmem:[#allocation16_spill] sm:$0xff]  ;;  %v4062_v21 = vld [vmem:[#allocation6_spill] sm:$0xff] }
  0x4b   :  { %v870_v18 = vadd.f32 %v869_v58, %v868_v31  ;;  %v888_v56 = vsel %vm833_vm0, %v2724_v29, 0.0  ;;  %v890_v14 = vsel %vm833_vm0, %v820_v33, 0.0  ;;  %v846_v38 = vadd.f32 %v845_v53, %v844_v5  ;;  %v4061_v44 = vld [vmem:[#allocation20_spill] sm:$0xff] }
  0x4c   :  { %v859_v43 = vadd.f32 %v858_v59, %v857_v0  ;;  %v883_v46 = vadd.f32 %v882_v50, %v881_v25  ;;  %v892_v49 = vsel %vm833_vm0, %v828_v62, 0.0  ;;  %v894_v55 = vsel %vm833_vm0, %v2575_v13, 0.0  ;;  %v4063_v50 = vld [vmem:[#allocation8_spill] sm:$0xff] }
  0x4d   :  { %v872_v24 = vadd.f32 %v871_v2, %v870_v18  ;;  %v895_v60 = vsel %vm833_vm0, %v2610_v51, 0.0  ;;  %v897_v7 = vsel %vm833_vm0, %v2643_v57, 0.0  ;;  %v2846_v48 = vadd.f32 %v847_v61, %v846_v38  ;;  %v4064_v18 = vld [vmem:[#allocation14_spill] sm:$0xff]  ;;  %v4066_v38 = vld [vmem:[#allocation17_spill] sm:$0xff] }
  0x4e   :  { %v861_v29 = vadd.f32 %v860_v8, %v859_v43  ;;  %v885_v16 = vadd.f32 %v884_v3, %v883_v46  ;;  %v896_v33 = vadd.f32 %v895_v60, %v894_v55  ;;  %v899_v59 = vsel %vm833_vm0, %v2674_v17, 0.0  ;;  %v4067_v46 = vld [vmem:[#allocation19_spill] sm:$0xff] }
  0x4f   :  { %v874_v53 = vadd.f32 %v873_v30, %v872_v24  ;;  %v901_v62 = vsel %vm833_vm0, %v2703_v45, 0.0  ;;  %v903_v13 = vsel %vm833_vm0, %v2732_v10, 0.0  ;;  %v905_v57 = vsel %vm833_vm0, %v2756_v19, 0.0 }
  0x50   :  { %v2854_v35 = vadd.f32 %v862_v28, %v861_v29  ;;  %v887_v51 = vadd.f32 %v886_v47, %v885_v16  ;;  %v898_v37 = vadd.f32 %v897_v7, %v896_v33  ;;  %v907_v8 = vsel %vm833_vm0, %v2780_v20, 0.0  ;;  %v4068_v29 = vld [vmem:[#allocation21_spill] sm:$0xff]  ;;  %v4069_v16 = vld [vmem:[#allocation7_spill] sm:$0xff] }
  0x51   :  { %v876_v61 = vadd.f32 %v875_v36, %v874_v53  ;;  %v909_v17 = vsel %vm833_vm0, %v2580_v11, 0.0  ;;  %v910_v45 = vsel %vm833_vm0, %v2615_v34, 0.0  ;;  %v912_v28 = vsel %vm833_vm0, %v2648_v9, 0.0 }
  0x52   :  { %v889_v41 = vadd.f32 %v888_v56, %v887_v51  ;;  %v900_v32 = vadd.f32 %v899_v59, %v898_v37  ;;  %v911_v10 = vadd.f32 %v910_v45, %v909_v17  ;;  %v914_v19 = vsel %vm833_vm0, %v2679_v6, 0.0  ;;  %v4065_v56 = vld [vmem:[#allocation15_spill] sm:$0xff] }
  0x53   :  { %v2866_v42 = vadd.f32 %v877_v54, %v876_v61  ;;  %v916_v20 = vsel %vm833_vm0, %v2708_v1, 0.0  ;;  %v918_v11 = vsel %vm833_vm0, %v2737_v22, 0.0  ;;  %v920_v30 = vsel %vm833_vm0, %v2761_v12, 0.0 }
  0x54   :  { %v891_v58 = vadd.f32 %v890_v14, %v889_v41  ;;  %v902_v2 = vadd.f32 %v901_v62, %v900_v32  ;;  %v913_v34 = vadd.f32 %v912_v28, %v911_v10  ;;  %v922_v9 = vsel %vm833_vm0, %v2785_v63, 0.0 }
  0x55   :  { %v924_v26 = vsel %vm833_vm0, %v2583_v39, 0.0  ;;  %v925_v6 = vsel %vm833_vm0, %v2618_v15, 0.0  ;;  %v927_v1 = vsel %vm833_vm0, %v4059_v40, 0.0  ;;  %v929_v12 = vsel %vm833_vm0, %v4060_v23, 0.0 }
  0x56   :  { %v2884_v36 = vadd.f32 %v892_v49, %v891_v58  ;;  %v904_v22 = vadd.f32 %v903_v13, %v902_v2  ;;  %v915_v54 = vadd.f32 %v914_v19, %v913_v34  ;;  %v926_v31 = vadd.f32 %v925_v6, %v924_v26 }
  0x57   :  { %v931_v63 = vsel %vm833_vm0, %v4061_v44, 0.0  ;;  %v933_v39 = vsel %vm833_vm0, %v4062_v21, 0.0  ;;  %v935_v15 = vsel %vm833_vm0, %v4063_v50, 0.0  ;;  %v937_v3 = vsel %vm833_vm0, %v2788_v27, 0.0 }
  0x58   :  { %v906_v5 = vadd.f32 %v905_v57, %v904_v22  ;;  %v917_v0 = vadd.f32 %v916_v20, %v915_v54  ;;  %v928_v25 = vadd.f32 %v927_v1, %v926_v31  ;;  %v939_v47 = vsel %vm833_vm0, %v4064_v18, 0.0 }
  0x59   :  { %v940_v14 = vsel %vm833_vm0, %v4065_v56, 0.0  ;;  %v942_v43 = vsel %vm833_vm0, %v4066_v38, 0.0  ;;  %v944_v49 = vsel %vm833_vm0, %v4067_v46, 0.0  ;;  %v946_v27 = vsel %vm833_vm0, %v4068_v29, 0.0 }
  0x5a   :  { %v2904_v24 = vadd.f32 %v907_v8, %v906_v5  ;;  %v919_v55 = vadd.f32 %v918_v11, %v917_v0  ;;  %v930_v60 = vadd.f32 %v929_v12, %v928_v25  ;;  %v941_v7 = vadd.f32 %v940_v14, %v939_v47 }
  0x5b   :  { %v948_v33 = vsel %vm833_vm0, %v4069_v16, 0.0  ;;  %v950_v53 = vsel %vm833_vm0, %v2767_v4, 0.0  ;;  %v952_v59 = vsel %vm833_vm0, %v2791_v52, 0.0  ;;  %v954_v37 = vsel %vm833_vm0, %v2846_v48, -inf }
  0x5c   :  { %v921_v62 = vadd.f32 %v920_v30, %v919_v55  ;;  %v932_v13 = vadd.f32 %v931_v63, %v930_v60  ;;  %v943_v51 = vadd.f32 %v942_v43, %v941_v7  ;;  %v955_v57 = vrot.slane %v954_v37, 4 }
  0x5d   :  { %v961_v61 = vsel %vm833_vm0, %v2854_v35, -inf  ;;  %v968_v8 = vsel %vm833_vm0, %v2866_v42, -inf  ;;  %v975_v17 = vsel %vm833_vm0, %v2884_v36, -inf  ;;  %v982_v19 = vsel %vm833_vm0, %v2904_v24, -inf }
  0x5e   :  { %v2922_v4 = vadd.f32 %v922_v9, %v921_v62  ;;  %v934_v45 = vadd.f32 %v933_v39, %v932_v13  ;;  %v945_v52 = vadd.f32 %v944_v49, %v943_v51  ;;  %v962_v41 = vrot.slane %v961_v61, 4 }
  0x5f   :  { %v956_v32 = vmax.f32 %v954_v37, %v955_v57  ;;  %v969_v10 = vrot.slane %v968_v8, 4  ;;  %v976_v28 = vrot.slane %v975_v17, 4  ;;  %v983_v2 = vrot.slane %v982_v19, 4 }
  0x60   :  { %v936_v20 = vadd.f32 %v935_v15, %v934_v45  ;;  %v947_v11 = vadd.f32 %v946_v27, %v945_v52  ;;  %v963_v58 = vmax.f32 %v961_v61, %v962_v41  ;;  %v989_v9 = vsel %vm833_vm0, %v2922_v4, -inf }
  0x61   :  { %v957_v34 = vrot.slane %v956_v32, 2  ;;  %v970_v30 = vmax.f32 %v968_v8, %v969_v10  ;;  %v977_v26 = vmax.f32 %v975_v17, %v976_v28  ;;  %v984_v22 = vmax.f32 %v982_v19, %v983_v2 }
  0x62   :  { %v2928_v6 = vadd.f32 %v937_v3, %v936_v20  ;;  %v949_v40 = vadd.f32 %v948_v33, %v947_v11  ;;  %v964_v1 = vrot.slane %v963_v58, 2  ;;  %v990_v12 = vrot.slane %v989_v9, 4 }
  0x63   :  { %v958_v54 = vmax.f32 %v956_v32, %v957_v34  ;;  %v971_v31 = vrot.slane %v970_v30, 2  ;;  %v978_v23 = vrot.slane %v977_v26, 2  ;;  %v985_v21 = vrot.slane %v984_v22, 2 }
  0x64   :  { %v951_v44 = vadd.f32 %v950_v53, %v949_v40  ;;  %v965_v63 = vmax.f32 %v963_v58, %v964_v1  ;;  %v996_v39 = vsel %vm833_vm0, %v2928_v6, -inf  ;;  %v991_v0 = vmax.f32 %v989_v9, %v990_v12 }
  0x65   :  { %v959_v50 = vrot.slane %v958_v54, 1  ;;  %v972_v15 = vmax.f32 %v970_v30, %v971_v31  ;;  %v979_v5 = vmax.f32 %v977_v26, %v978_v23  ;;  %v986_v18 = vmax.f32 %v984_v22, %v985_v21 }
  0x66   :  { %v953_v25 = vadd.f32 %v952_v59, %v951_v44  ;;  %v966_v3 = vrot.slane %v965_v63, 1  ;;  %v997_v47 = vrot.slane %v996_v39, 4  ;;  %v992_v43 = vrot.slane %v991_v0, 2 }
  0x67   :  { %v960_v56 = vmax.f32 %v958_v54, %v959_v50  ;;  %v973_v14 = vrot.slane %v972_v15, 1  ;;  %v980_v38 = vrot.slane %v979_v5, 1  ;;  %v987_v49 = vrot.slane %v986_v18, 1 }
  0x68   :  { %v967_v46 = vmax.f32 %v965_v63, %v966_v3  ;;  %v998_v55 = vmax.f32 %v996_v39, %v997_v47  ;;  %v1003_v60 = vsel %vm833_vm0, %v953_v25, -inf  ;;  %v993_v27 = vmax.f32 %v991_v0, %v992_v43 }
  0x69   :  { %v974_v7 = vmax.f32 %v972_v15, %v973_v14  ;;  %v981_v29 = vmax.f32 %v979_v5, %v980_v38  ;;  %v1004_v16 = vrot.slane %v1003_v60, 4  ;;  %v988_v33 = vmax.f32 %v986_v18, %v987_v49 }
  0x6a   :  { %v999_v53 = vrot.slane %v998_v55, 2  ;;  %v1010_v59 = vsub.f32 %v2846_v48, %v960_v56  ;;  %v1011_v62 = vsub.f32 %v2854_v35, %v967_v46  ;;  %v994_v13 = vrot.slane %v993_v27, 1 }
  0x6b   :  { %v1005_v51 = vmax.f32 %v1003_v60, %v1004_v16  ;;  %v1012_v37 = vsub.f32 %v2866_v42, %v974_v7  ;;  %v1013_v57 = vsub.f32 %v2884_v36, %v981_v29  ;;  %v1014_v8 = vsub.f32 %v2904_v24, %v988_v33 }
  0x6c   :  { %v1000_v61 = vmax.f32 %v998_v55, %v999_v53  ;;  %v1018_v17 = vmul.f32 1.442695, %v1010_v59  ;;  %v1020_v45 = vmul.f32 1.442695, %v1011_v62  ;;  %v995_v52 = vmax.f32 %v993_v27, %v994_v13 }
  0x6d   :  { %v1006_v41 = vrot.slane %v1005_v51, 2  ;;  %v1022_v32 = vmul.f32 1.442695, %v1012_v37  ;;  %v1024_v10 = vmul.f32 1.442695, %v1013_v57 }
  0x6e   :  { %v1001_v28 = vrot.slane %v1000_v61, 1  ;;  %2022 = vpow2.f32 %v1018_v17  ;;  %v1026_v48 = vmul.f32 1.442695, %v1014_v8  ;;  %v1015_v35 = vsub.f32 %v2922_v4, %v995_v52 }
  0x6f   :  { %v1007_v19 = vmax.f32 %v1005_v51, %v1006_v41  ;;  %2024 = vpow2.f32 %v1020_v45 }
  0x70   :  { %v1002_v20 = vmax.f32 %v1000_v61, %v1001_v28  ;;  %2026 = vpow2.f32 %v1022_v32  ;;  %v1028_v36 = vmul.f32 1.442695, %v1015_v35 }
  0x71   :  { %v1008_v42 = vrot.slane %v1007_v19, 1  ;;  %2028 = vpow2.f32 %v1024_v10 }
  0x72   :  { %v1016_v24 = vsub.f32 %v2928_v6, %v1002_v20  ;;  %2030 = vpow2.f32 %v1026_v48 }
  0x73   :  { %v1009_v11 = vmax.f32 %v1007_v19, %v1008_v42  ;;  %2032 = vpow2.f32 %v1028_v36 }
  0x74   :  { %v1030_v58 = vmul.f32 1.442695, %v1016_v24 }
  0x75   :  { %v1017_v2 = vsub.f32 %v953_v25, %v1009_v11 }
  0x76   :  { %2034 = vpow2.f32 %v1030_v58 }
  0x77   :  { %v1032_v34 = vmul.f32 1.442695, %v1017_v2 }
  0x78   :  { %v2940_v30 = vpop.eup %2022 }
  0x79   :  { %v2942_v26 = vpop.eup %2024  ;;  %2036 = vpow2.f32 %v1032_v34  ;;  %v1034_v4 = vsel %vm833_vm0, %v2940_v30, 0.0 }
  0x7a   :  { %v2946_v9 = vpop.eup %2026  ;;  %v1035_v40 = vrot.slane %v1034_v4, 4  ;;  %v1041_v6 = vsel %vm833_vm0, %v2942_v26, 0.0 }
  0x7b   :  { %v2950_v1 = vpop.eup %2028  ;;  %v1042_v22 = vrot.slane %v1041_v6, 4  ;;  %v1048_v54 = vsel %vm833_vm0, %v2946_v9, 0.0 }
  0x7c   :  { %v2954_v31 = vpop.eup %2030  ;;  %v1036_v23 = vadd.f32 %v1035_v40, %v1034_v4  ;;  %v1049_v12 = vrot.slane %v1048_v54, 4  ;;  %v1055_v44 = vsel %vm833_vm0, %v2950_v1, 0.0  ;;  %v2975_v40 = vld [vmem:[%s3973_s2] sm:$0xff] }
  0x7d   :  { %v2958_v63 = vpop.eup %2032  ;;  %v1043_v21 = vadd.f32 %v1042_v22, %v1041_v6  ;;  %v1056_v39 = vrot.slane %v1055_v44, 4  ;;  %v1062_v50 = vsel %vm833_vm0, %v2954_v31, 0.0  ;;  %v2980_v6 = vld [vmem:[%s3973_s2 + $0x8] sm:$0xff] }
  0x7e   :  { %v1037_v15 = vrot.slane %v1036_v23, 2  ;;  %v1050_v5 = vadd.f32 %v1049_v12, %v1048_v54  ;;  %v1063_v0 = vrot.slane %v1062_v50, 4  ;;  %v1069_v25 = vsel %vm833_vm0, %v2958_v63, 0.0  ;;  %v2985_v54 = vld [vmem:[%s3973_s2 + $0x10] sm:$0xff]  ;;  %v2993_v12 = vld [vmem:[%s3974_s3] sm:$0xff] }
  0x7f   :  { %v1044_v3 = vrot.slane %v1043_v21, 2  ;;  %v1057_v18 = vadd.f32 %v1056_v39, %v1055_v44  ;;  %v1070_v47 = vrot.slane %v1069_v25, 4  ;;  %4070 = vst [vmem:[#allocation3_spill] sm:$0xff] %v2993_v12  ;;  %v2998_v44 = vld [vmem:[%s3974_s3 + $0x8] sm:$0xff] }
  0x80   :  { %v2964_v56 = vpop.eup %2034  ;;  %v1038_v14 = vadd.f32 %v1037_v15, %v1036_v23  ;;  %v1051_v38 = vrot.slane %v1050_v5, 2  ;;  %v1064_v43 = vadd.f32 %v1063_v0, %v1062_v50  ;;  %4071 = vst [vmem:[#allocation9_spill] sm:$0xff] %v2998_v44 }
  0x81   :  { %v1045_v46 = vadd.f32 %v1044_v3, %v1043_v21  ;;  %v1058_v49 = vrot.slane %v1057_v18, 2  ;;  %v1071_v55 = vadd.f32 %v1070_v47, %v1069_v25  ;;  %v1076_v60 = vsel %vm833_vm0, %v2964_v56, 0.0 }
  0x82   :  { %v1039_v7 = vrot.slane %v1038_v14, 1  ;;  %v1052_v29 = vadd.f32 %v1051_v38, %v1050_v5  ;;  %v1065_v27 = vrot.slane %v1064_v43, 2  ;;  %v1077_v16 = vrot.slane %v1076_v60, 4 }
  0x83   :  { %v2968_v33 = vpop.eup %2036  ;;  %v1046_v53 = vrot.slane %v1045_v46, 1  ;;  %v1059_v59 = vadd.f32 %v1058_v49, %v1057_v18  ;;  %v1072_v62 = vrot.slane %v1071_v55, 2 }
  0x84   :  { %v1040_v13 = vadd.f32 %v1039_v7, %v1038_v14  ;;  %v1053_v51 = vrot.slane %v1052_v29, 1  ;;  %v1066_v37 = vadd.f32 %v1065_v27, %v1064_v43  ;;  %v1078_v57 = vadd.f32 %v1077_v16, %v1076_v60 }
  0x85   :  { %v1047_v61 = vadd.f32 %v1046_v53, %v1045_v46  ;;  %v1060_v8 = vrot.slane %v1059_v59, 1  ;;  %v1073_v17 = vadd.f32 %v1072_v62, %v1071_v55  ;;  %v1083_v45 = vsel %vm833_vm0, %v2968_v33, 0.0  ;;  %v44_v55 = vld [vmem:[%s3973_s2 + $0x18] sm:$0xff]  ;;  %v45_v62 = vld [vmem:[%s3973_s2 + $0x20] sm:$0xff] }
  0x86   :  { %v1054_v52 = vadd.f32 %v1053_v51, %v1052_v29  ;;  %v1067_v41 = vrot.slane %v1066_v37, 1  ;;  %v1079_v32 = vrot.slane %v1078_v57, 2  ;;  %v1084_v10 = vrot.slane %v1083_v45, 4 }
  0x87   :  { %v1061_v28 = vadd.f32 %v1060_v8, %v1059_v59  ;;  %v1074_v48 = vrot.slane %v1073_v17, 1  ;;  %2038 = vrcp.f32 %v1040_v13 }
  0x88   :  { %v1068_v19 = vadd.f32 %v1067_v41, %v1066_v37  ;;  %v1080_v35 = vadd.f32 %v1079_v32, %v1078_v57  ;;  %v1085_v20 = vadd.f32 %v1084_v10, %v1083_v45  ;;  %2040 = vrcp.f32 %v1047_v61 }
  0x89   :  { %v1075_v42 = vadd.f32 %v1074_v48, %v1073_v17  ;;  %2042 = vrcp.f32 %v1054_v52 }
  0x8a   :  { %v1081_v36 = vrot.slane %v1080_v35, 1  ;;  %v1086_v24 = vrot.slane %v1085_v20, 2  ;;  %2044 = vrcp.f32 %v1061_v28 }
  0x8b   :  { %2046 = vrcp.f32 %v1068_v19 }
  0x8c   :  { %v1082_v11 = vadd.f32 %v1081_v36, %v1080_v35  ;;  %v1087_v58 = vadd.f32 %v1086_v24, %v1085_v20  ;;  %2048 = vrcp.f32 %v1075_v42 }
  0x8e   :  { %v1088_v2 = vrot.slane %v1087_v58, 1  ;;  %2050 = vrcp.f32 %v1082_v11 }
  0x90   :  { %v1089_v34 = vadd.f32 %v1088_v2, %v1087_v58  ;;  %v47_v58 = vld [vmem:[%s3973_s2 + $0x30] sm:$0xff] }
  0x91   :  { %v2039_v4 = vpop.eup %2038 }
  0x92   :  { %v2041_v22 = vpop.eup %2040  ;;  %2052 = vrcp.f32 %v1089_v34  ;;  %v2988_v23 = vmul.f32 %v2039_v4, %v2940_v30 }
  0x93   :  { %v2043_v21 = vpop.eup %2042  ;;  %v3001_v39 = vmul.f32 %v2041_v22, %v2942_v26 }
  0x94   :  { %v2045_v30 = vpop.eup %2044  ;;  %v3006_v5 = vmul.f32 %v2043_v21, %v2946_v9  ;;  %v3010_v0 = vmul.f32 %v2988_v23, %v2975_v40  ;;  %v3014_v25 = vmul.f32 %v2988_v23, %v2980_v6  ;;  %v3018_v26 = vmul.f32 %v2988_v23, %v2985_v54 }
  0x95   :  { %v2047_v3 = vpop.eup %2046  ;;  %v3021_v18 = vmul.f32 %v2045_v30, %v2950_v1  ;;  %v3025_v9 = vmul.f32 %v3001_v39, %v2975_v40  ;;  %v3029_v47 = vmul.f32 %v3001_v39, %v2980_v6  ;;  %v3033_v14 = vmul.f32 %v3001_v39, %v2985_v54 }
  0x96   :  { %v2049_v38 = vpop.eup %2048  ;;  %v3036_v43 = vmul.f32 %v2047_v3, %v2954_v31  ;;  %v3040_v1 = vmul.f32 %v3006_v5, %v2975_v40  ;;  %v3044_v46 = vmul.f32 %v3006_v5, %v2980_v6  ;;  %v3048_v49 = vmul.f32 %v3006_v5, %v2985_v54 }
  0x97   :  { %v1103_v60 = vmul.f32 %v2049_v38, %v2958_v63  ;;  %v3056_v31 = vmul.f32 %v3021_v18, %v2975_v40  ;;  %v3060_v7 = vmul.f32 %v3021_v18, %v2980_v6  ;;  %v3064_v29 = vmul.f32 %v3021_v18, %v2985_v54  ;;  %v48_v38 = vld [vmem:[%s3973_s2 + $0x38] sm:$0xff] }
  0x98   :  { %v2051_v27 = vpop.eup %2050  ;;  %v3068_v16 = vmul.f32 %v3036_v43, %v2975_v40  ;;  %v3072_v63 = vmul.f32 %v3036_v43, %v2980_v6  ;;  %v3076_v53 = vmul.f32 %v3036_v43, %v2985_v54  ;;  %v3079_v59 = vmul.f32 %v2988_v23, %v44_v55 }
  0x99   :  { %v1104_v13 = vmul.f32 %v2051_v27, %v2964_v56  ;;  %v1111_v51 = vmul.f32 %v1103_v60, %v2975_v40  ;;  %v3087_v37 = vmul.f32 %v1103_v60, %v2980_v6  ;;  %v3090_v57 = vmul.f32 %v1103_v60, %v2985_v54  ;;  %v46_v56 = vld [vmem:[%s3973_s2 + $0x28] sm:$0xff] }
  0x9a   :  { %v3093_v61 = vmul.f32 %v3001_v39, %v44_v55  ;;  %v3096_v8 = vmul.f32 %v3006_v5, %v44_v55  ;;  %v3099_v17 = vmul.f32 %v3021_v18, %v44_v55  ;;  %v3102_v45 = vmul.f32 %v3036_v43, %v44_v55 }
  0x9b   :  { %v1112_v52 = vmul.f32 %v1104_v13, %v2975_v40  ;;  %v3109_v41 = vmul.f32 %v1104_v13, %v2980_v6  ;;  %v3112_v32 = vmul.f32 %v1104_v13, %v2985_v54  ;;  %v3114_v10 = vmul.f32 %v1103_v60, %v44_v55 }
  0x9c   :  { %v2053_v28 = vpop.eup %2052  ;;  %v3116_v48 = vmul.f32 %v1104_v13, %v44_v55  ;;  %v3119_v19 = vmul.f32 %v2988_v23, %v45_v62  ;;  %v3122_v35 = vmul.f32 %v3001_v39, %v45_v62  ;;  %v3125_v20 = vmul.f32 %v3006_v5, %v45_v62 }
  0x9d   :  { %v1105_v42 = vmul.f32 %v2053_v28, %v2968_v33  ;;  %v3129_v36 = vmul.f32 %v3021_v18, %v45_v62  ;;  %v3132_v24 = vmul.f32 %v3036_v43, %v45_v62  ;;  %v3134_v11 = vmul.f32 %v1103_v60, %v45_v62 }
  0x9e   :  { %v3139_v2 = vmul.f32 %v1104_v13, %v45_v62  ;;  %v3142_v34 = vmul.f32 %v2988_v23, %v46_v56  ;;  %v3145_v4 = vmul.f32 %v3001_v39, %v46_v56  ;;  %v3148_v33 = vmul.f32 %v3006_v5, %v46_v56 }
  0x9f   :  { %v1113_v22 = vmul.f32 %v1105_v42, %v2975_v40  ;;  %v3152_v21 = vmul.f32 %v1105_v42, %v2980_v6  ;;  %v3155_v30 = vmul.f32 %v1105_v42, %v2985_v54  ;;  %v3157_v3 = vmul.f32 %v1105_v42, %v44_v55 }
  0xa0   :  { %4072 = vst [vmem:[#allocation10_spill] sm:$0xff] %v3142_v34  ;;  %4073 = vst [vmem:[#allocation2_spill] sm:$0xff] %v3145_v4  ;;  %v3162_v27 = vmul.f32 %v1105_v42, %v45_v62  ;;  %v3165_v28 = vmul.f32 %v3021_v18, %v46_v56  ;;  %v3168_v15 = vmul.f32 %v3036_v43, %v46_v56 }
  0xa1   :  { %4074 = vst [vmem:[#allocation4_spill] sm:$0xff] %v3148_v33  ;;  %v3170_v40 = vmul.f32 %v1103_v60, %v46_v56  ;;  %v3172_v6 = vmul.f32 %v1104_v13, %v46_v56  ;;  %v3174_v54 = vmul.f32 %v1105_v42, %v46_v56  ;;  %v3177_v55 = vmul.f32 %v2988_v23, %v47_v58 }
  0xa2   :  { %4075 = vst [vmem:[#allocation11_spill] sm:$0xff] %v3165_v28  ;;  %4076 = vst [vmem:[#allocation12_spill] sm:$0xff] %v3168_v15  ;;  %v3180_v50 = vmul.f32 %v3001_v39, %v47_v58  ;;  %v3183_v62 = vmul.f32 %v3006_v5, %v47_v58  ;;  %v3186_v44 = vmul.f32 %v3021_v18, %v47_v58 }
  0xa3   :  { %4077 = vst [vmem:[#allocation5_spill] sm:$0xff] %v3170_v40  ;;  %4078 = vst [vmem:[#allocation13_spill] sm:$0xff] %v3172_v6  ;;  %v3189_v12 = vmul.f32 %v3036_v43, %v47_v58  ;;  %v3191_v40 = vmul.f32 %v1103_v60, %v47_v58  ;;  %v3193_v6 = vmul.f32 %v1104_v13, %v47_v58 }
  0xa4   :  { %4079 = vst [vmem:[#allocation16_spill] sm:$0xff] %v3174_v54  ;;  %4080 = vst [vmem:[#allocation18_spill] sm:$0xff] %v3177_v55  ;;  %v3195_v56 = vmul.f32 %v1105_v42, %v47_v58  ;;  %v3198_v55 = vmul.f32 %v2988_v23, %v48_v38  ;;  %v3216_v58 = vmul.f32 %v1105_v42, %v48_v38  ;;  %v1170_v23 = vsel %vm833_vm0, %v3010_v0, 0.0 }
  0xa5   :  { %4081 = vst [vmem:[#allocation20_spill] sm:$0xff] %v3180_v50  ;;  %4082 = vst [vmem:[#allocation6_spill] sm:$0xff] %v3183_v62  ;;  %v3201_v50 = vmul.f32 %v3001_v39, %v48_v38  ;;  %v3204_v62 = vmul.f32 %v3006_v5, %v48_v38  ;;  %v1177_v39 = vsel %vm833_vm0, %v3025_v9, 0.0  ;;  %v1171_v5 = vrot.slane %v1170_v23, 4 }
  0xa6   :  { %4083 = vst [vmem:[#allocation8_spill] sm:$0xff] %v3186_v44  ;;  %4084 = vst [vmem:[#allocation14_spill] sm:$0xff] %v3189_v12  ;;  %v3207_v44 = vmul.f32 %v3021_v18, %v48_v38  ;;  %v3210_v12 = vmul.f32 %v3036_v43, %v48_v38  ;;  %v1184_v18 = vsel %vm833_vm0, %v3040_v1, 0.0  ;;  %v1191_v43 = vsel %vm833_vm0, %v3056_v31, 0.0 }
  0xa7   :  { %4085 = vst [vmem:[#allocation15_spill] sm:$0xff] %v3191_v40  ;;  %4086 = vst [vmem:[#allocation17_spill] sm:$0xff] %v3193_v6  ;;  %v3212_v40 = vmul.f32 %v1103_v60, %v48_v38  ;;  %v3214_v6 = vmul.f32 %v1104_v13, %v48_v38  ;;  %v1185_v60 = vrot.slane %v1184_v18, 4  ;;  %v1198_v13 = vsel %vm833_vm0, %v3068_v16, 0.0 }
  0xa8   :  { %4087 = vst [vmem:[#allocation19_spill] sm:$0xff] %v3195_v56  ;;  %4088 = vst [vmem:[#allocation21_spill] sm:$0xff] %v3198_v55  ;;  %v1205_v42 = vsel %vm833_vm0, %v1111_v51, 0.0  ;;  %v1172_v38 = vadd.f32 %v1171_v5, %v1170_v23  ;;  %v1219_v1 = vsel %vm833_vm0, %v1113_v22, 0.0 }
  0xa9   :  { %4089 = vst [vmem:[#allocation7_spill] sm:$0xff] %v3201_v50  ;;  %4090 = vst [vmem:[#allocation22_spill] sm:$0xff] %v3204_v62  ;;  %v1178_v62 = vrot.slane %v1177_v39, 4  ;;  %v1186_v9 = vadd.f32 %v1185_v60, %v1184_v18  ;;  %v1220_v16 = vrot.slane %v1219_v1, 4 }
  0xaa   :  { %4091 = vst [vmem:[#allocation23_spill] sm:$0xff] %v3207_v44  ;;  %4092 = vst [vmem:[#allocation24_spill] sm:$0xff] %v3210_v12  ;;  %v1212_v44 = vsel %vm833_vm0, %v1112_v52, 0.0  ;;  %v1173_v50 = vrot.slane %v1172_v38, 2 }
  0xab   :  { %4093 = vst [vmem:[#allocation25_spill] sm:$0xff] %v3212_v40  ;;  %4094 = vst [vmem:[#allocation26_spill] sm:$0xff] %v3214_v6  ;;  %v1192_v40 = vrot.slane %v1191_v43, 4  ;;  %v1179_v0 = vadd.f32 %v1178_v62, %v1177_v39  ;;  %v1206_v6 = vrot.slane %v1205_v42, 4  ;;  %v1187_v54 = vrot.slane %v1186_v9, 2 }
  0xac   :  { %4095 = vst [vmem:[#allocation27_spill] sm:$0xff] %v3216_v58  ;;  %v1199_v58 = vrot.slane %v1198_v13, 4  ;;  %v1213_v28 = vrot.slane %v1212_v44, 4  ;;  %v1174_v33 = vadd.f32 %v1173_v50, %v1172_v38 }
  0xad   :  { %v1193_v12 = vadd.f32 %v1192_v40, %v1191_v43  ;;  %v1180_v55 = vrot.slane %v1179_v0, 2  ;;  %v1207_v56 = vadd.f32 %v1206_v6, %v1205_v42  ;;  %v1188_v39 = vadd.f32 %v1187_v54, %v1186_v9 }
  0xae   :  { %v1200_v31 = vadd.f32 %v1199_v58, %v1198_v13  ;;  %v1214_v18 = vadd.f32 %v1213_v28, %v1212_v44  ;;  %v1221_v40 = vadd.f32 %v1220_v16, %v1219_v1  ;;  %v1175_v43 = vrot.slane %v1174_v33, 1 }
  0xaf   :  { %v1194_v15 = vrot.slane %v1193_v12, 2  ;;  %v1181_v51 = vadd.f32 %v1180_v55, %v1179_v0  ;;  %v1208_v62 = vrot.slane %v1207_v56, 2  ;;  %v1189_v4 = vrot.slane %v1188_v39, 1 }
  0xb0   :  { %v1201_v23 = vrot.slane %v1200_v31, 2  ;;  %v1215_v58 = vrot.slane %v1214_v18, 2  ;;  %v1222_v6 = vrot.slane %v1221_v40, 2  ;;  %v3231_v13 = vadd.f32 %v1175_v43, %v1174_v33 }
  0xb1   :  { %v1195_v5 = vadd.f32 %v1194_v15, %v1193_v12  ;;  %v1182_v52 = vrot.slane %v1181_v51, 1  ;;  %v1209_v22 = vadd.f32 %v1208_v62, %v1207_v56  ;;  %v3235_v38 = vadd.f32 %v1189_v4, %v1188_v39 }
  0xb2   :  { %v1202_v60 = vadd.f32 %v1201_v23, %v1200_v31  ;;  %v1216_v12 = vadd.f32 %v1215_v58, %v1214_v18  ;;  %v1223_v44 = vadd.f32 %v1222_v6, %v1221_v40  ;;  %v1226_v56 = vsel %vm833_vm0, %v3014_v25, 0.0 }
  0xb3   :  { %v1196_v34 = vrot.slane %v1195_v5, 1  ;;  %v3233_v42 = vadd.f32 %v1182_v52, %v1181_v51  ;;  %v1210_v55 = vrot.slane %v1209_v22, 1  ;;  %v1233_v33 = vsel %vm833_vm0, %v3029_v47, 0.0 }
  0xb4   :  { %v1203_v50 = vrot.slane %v1202_v60, 1  ;;  %v1217_v0 = vrot.slane %v1216_v12, 1  ;;  %v1224_v9 = vrot.slane %v1223_v44, 1  ;;  %v1227_v1 = vrot.slane %v1226_v56, 4 }
  0xb5   :  { %v3237_v54 = vadd.f32 %v1196_v34, %v1195_v5  ;;  %v3241_v28 = vadd.f32 %v1210_v55, %v1209_v22  ;;  %v1234_v31 = vrot.slane %v1233_v33, 4  ;;  %v1240_v34 = vsel %vm833_vm0, %v3044_v46, 0.0 }
  0xb6   :  { %v3239_v15 = vadd.f32 %v1203_v50, %v1202_v60  ;;  %v1247_v4 = vsel %vm833_vm0, %v3060_v7, 0.0  ;;  %v1254_v16 = vsel %vm833_vm0, %v3072_v63, 0.0  ;;  %v1261_v51 = vsel %vm833_vm0, %v3087_v37, 0.0 }
  0xb7   :  { %v3255_v25 = vadd.f32 %v1217_v0, %v1216_v12  ;;  %v3257_v23 = vadd.f32 %v1224_v9, %v1223_v44  ;;  %v1228_v47 = vadd.f32 %v1227_v1, %v1226_v56  ;;  %v1235_v62 = vadd.f32 %v1234_v31, %v1233_v33 }
  0xb8   :  { %v1241_v39 = vrot.slane %v1240_v34, 4  ;;  %v1248_v5 = vrot.slane %v1247_v4, 4  ;;  %v1255_v18 = vrot.slane %v1254_v16, 4  ;;  %v1262_v40 = vrot.slane %v1261_v51, 4 }
  0xb9   :  { %4096 = vst [vmem:[#allocation28_spill] sm:$0xff] %v3255_v25  ;;  %4097 = vst [vmem:[#allocation29_spill] sm:$0xff] %v3257_v23  ;;  %v1229_v46 = vrot.slane %v1228_v47, 2  ;;  %v1236_v43 = vrot.slane %v1235_v62, 2  ;;  %v1268_v7 = vsel %vm833_vm0, %v3109_v41, 0.0  ;;  %v1275_v63 = vsel %vm833_vm0, %v3152_v21, 0.0 }
  0xba   :  { %v1242_v52 = vadd.f32 %v1241_v39, %v1240_v34  ;;  %v1249_v37 = vadd.f32 %v1248_v5, %v1247_v4  ;;  %v1256_v60 = vadd.f32 %v1255_v18, %v1254_v16  ;;  %v1263_v22 = vadd.f32 %v1262_v40, %v1261_v51 }
  0xbb   :  { %v1230_v58 = vadd.f32 %v1229_v46, %v1228_v47  ;;  %v1237_v6 = vadd.f32 %v1236_v43, %v1235_v62  ;;  %v1269_v50 = vrot.slane %v1268_v7, 4  ;;  %v1276_v55 = vrot.slane %v1275_v63, 4 }
  0xbc   :  { %v1243_v12 = vrot.slane %v1242_v52, 2  ;;  %v1250_v44 = vrot.slane %v1249_v37, 2  ;;  %v1257_v56 = vrot.slane %v1256_v60, 2  ;;  %v1264_v33 = vrot.slane %v1263_v22, 2 }
  0xbd   :  { %v1231_v0 = vrot.slane %v1230_v58, 1  ;;  %v1238_v9 = vrot.slane %v1237_v6, 1  ;;  %v1270_v1 = vadd.f32 %v1269_v50, %v1268_v7  ;;  %v1277_v31 = vadd.f32 %v1276_v55, %v1275_v63 }
  0xbe   :  { %v1244_v41 = vadd.f32 %v1243_v12, %v1242_v52  ;;  %v1251_v23 = vadd.f32 %v1250_v44, %v1249_v37  ;;  %v1258_v25 = vadd.f32 %v1257_v56, %v1256_v60  ;;  %v1265_v21 = vadd.f32 %v1264_v33, %v1263_v22 }
  0xbf   :  { %v3263_v34 = vadd.f32 %v1231_v0, %v1230_v58  ;;  %v3265_v4 = vadd.f32 %v1238_v9, %v1237_v6  ;;  %v1271_v16 = vrot.slane %v1270_v1, 2  ;;  %v1278_v51 = vrot.slane %v1277_v31, 2 }
  0xc0   :  { %v1245_v47 = vrot.slane %v1244_v41, 1  ;;  %v1252_v62 = vrot.slane %v1251_v23, 1  ;;  %v1259_v39 = vrot.slane %v1258_v25, 1  ;;  %v1266_v5 = vrot.slane %v1265_v21, 1 }
  0xc1   :  { %v1272_v18 = vadd.f32 %v1271_v16, %v1270_v1  ;;  %v1279_v40 = vadd.f32 %v1278_v51, %v1277_v31  ;;  %v1282_v46 = vsel %vm833_vm0, %v3018_v26, 0.0  ;;  %v1289_v43 = vsel %vm833_vm0, %v3033_v14, 0.0 }
  0xc2   :  { %v3271_v7 = vadd.f32 %v1245_v47, %v1244_v41  ;;  %v3273_v63 = vadd.f32 %v1252_v62, %v1251_v23  ;;  %v3275_v52 = vadd.f32 %v1259_v39, %v1258_v25  ;;  %v3277_v37 = vadd.f32 %v1266_v5, %v1265_v21 }
  0xc3   :  { %v1273_v60 = vrot.slane %v1272_v18, 1  ;;  %v1280_v22 = vrot.slane %v1279_v40, 1  ;;  %v1283_v58 = vrot.slane %v1282_v46, 4  ;;  %v1290_v6 = vrot.slane %v1289_v43, 4 }
  0xc4   :  { %v1296_v50 = vsel %vm833_vm0, %v3048_v49, 0.0  ;;  %v1303_v26 = vsel %vm833_vm0, %v3064_v29, 0.0  ;;  %v1310_v14 = vsel %vm833_vm0, %v3076_v53, 0.0  ;;  %v1317_v23 = vsel %vm833_vm0, %v3090_v57, 0.0 }
  0xc5   :  { %v3287_v25 = vadd.f32 %v1273_v60, %v1272_v18  ;;  %v3289_v55 = vadd.f32 %v1280_v22, %v1279_v40  ;;  %v1284_v12 = vadd.f32 %v1283_v58, %v1282_v46  ;;  %v1291_v44 = vadd.f32 %v1290_v6, %v1289_v43 }
  0xc6   :  { %v1297_v56 = vrot.slane %v1296_v50, 4  ;;  %v1304_v33 = vrot.slane %v1303_v26, 4  ;;  %v1311_v0 = vrot.slane %v1310_v14, 4  ;;  %v1318_v9 = vrot.slane %v1317_v23, 4 }
  0xc7   :  { %v1285_v49 = vrot.slane %v1284_v12, 2  ;;  %v1292_v1 = vrot.slane %v1291_v44, 2  ;;  %v1324_v29 = vsel %vm833_vm0, %v3112_v32, 0.0  ;;  %v1331_v53 = vsel %vm833_vm0, %v3155_v30, 0.0 }
  0xc8   :  { %v1298_v31 = vadd.f32 %v1297_v56, %v1296_v50  ;;  %v1305_v57 = vadd.f32 %v1304_v33, %v1303_v26  ;;  %v1312_v41 = vadd.f32 %v1311_v0, %v1310_v14  ;;  %v1319_v21 = vadd.f32 %v1318_v9, %v1317_v23 }
  0xc9   :  { %v1286_v16 = vadd.f32 %v1285_v49, %v1284_v12  ;;  %v1293_v51 = vadd.f32 %v1292_v1, %v1291_v44  ;;  %v1325_v47 = vrot.slane %v1324_v29, 4  ;;  %v1332_v62 = vrot.slane %v1331_v53, 4 }
  0xca   :  { %v1299_v39 = vrot.slane %v1298_v31, 2  ;;  %v1306_v5 = vrot.slane %v1305_v57, 2  ;;  %v1313_v18 = vrot.slane %v1312_v41, 2  ;;  %v1320_v40 = vrot.slane %v1319_v21, 2 }
  0xcb   :  { %v1287_v46 = vrot.slane %v1286_v16, 1  ;;  %v1294_v43 = vrot.slane %v1293_v51, 1  ;;  %v1326_v60 = vadd.f32 %v1325_v47, %v1324_v29  ;;  %v1333_v22 = vadd.f32 %v1332_v62, %v1331_v53 }
  0xcc   :  { %v1300_v32 = vadd.f32 %v1299_v39, %v1298_v31  ;;  %v1307_v58 = vadd.f32 %v1306_v5, %v1305_v57  ;;  %v1314_v6 = vadd.f32 %v1313_v18, %v1312_v41  ;;  %v1321_v30 = vadd.f32 %v1320_v40, %v1319_v21 }
  0xcd   :  { %v3295_v50 = vadd.f32 %v1287_v46, %v1286_v16  ;;  %v3297_v26 = vadd.f32 %v1294_v43, %v1293_v51  ;;  %v1327_v14 = vrot.slane %v1326_v60, 2  ;;  %v1334_v23 = vrot.slane %v1333_v22, 2 }
  0xce   :  { %v1301_v12 = vrot.slane %v1300_v32, 1  ;;  %v1308_v44 = vrot.slane %v1307_v58, 1  ;;  %v1315_v56 = vrot.slane %v1314_v6, 1  ;;  %v1322_v33 = vrot.slane %v1321_v30, 1 }
  0xcf   :  { %v1328_v0 = vadd.f32 %v1327_v14, %v1326_v60  ;;  %v1335_v9 = vadd.f32 %v1334_v23, %v1333_v22  ;;  %v1338_v49 = vsel %vm833_vm0, %v3079_v59, 0.0  ;;  %v1345_v1 = vsel %vm833_vm0, %v3093_v61, 0.0 }
  0xd0   :  { %v3303_v29 = vadd.f32 %v1301_v12, %v1300_v32  ;;  %v3305_v53 = vadd.f32 %v1308_v44, %v1307_v58  ;;  %v3307_v31 = vadd.f32 %v1315_v56, %v1314_v6  ;;  %v3309_v57 = vadd.f32 %v1322_v33, %v1321_v30 }
  0xd1   :  { %v1329_v41 = vrot.slane %v1328_v0, 1  ;;  %v1336_v21 = vrot.slane %v1335_v9, 1  ;;  %v1339_v16 = vrot.slane %v1338_v49, 4  ;;  %v1346_v51 = vrot.slane %v1345_v1, 4 }
  0xd2   :  { %v1352_v47 = vsel %vm833_vm0, %v3096_v8, 0.0  ;;  %v1359_v59 = vsel %vm833_vm0, %v3099_v17, 0.0  ;;  %v1366_v61 = vsel %vm833_vm0, %v3102_v45, 0.0  ;;  %v1373_v62 = vsel %vm833_vm0, %v3114_v10, 0.0 }
  0xd3   :  { %v3319_v39 = vadd.f32 %v1329_v41, %v1328_v0  ;;  %v3321_v5 = vadd.f32 %v1336_v21, %v1335_v9  ;;  %v1340_v18 = vadd.f32 %v1339_v16, %v1338_v49  ;;  %v1347_v40 = vadd.f32 %v1346_v51, %v1345_v1 }
  0xd4   :  { %v1353_v46 = vrot.slane %v1352_v47, 4  ;;  %v1360_v43 = vrot.slane %v1359_v59, 4  ;;  %v1367_v60 = vrot.slane %v1366_v61, 4  ;;  %v1374_v22 = vrot.slane %v1373_v62, 4 }
  0xd5   :  { %4098 = vst [vmem:[#allocation30_spill] sm:$0xff] %v3319_v39  ;;  %4099 = vst [vmem:[#allocation31_spill] sm:$0xff] %v3321_v5  ;;  %v1341_v8 = vrot.slane %v1340_v18, 2  ;;  %v1348_v32 = vrot.slane %v1347_v40, 2  ;;  %v1380_v17 = vsel %vm833_vm0, %v3116_v48, 0.0  ;;  %v1387_v45 = vsel %vm833_vm0, %v3157_v3, 0.0 }
  0xd6   :  { %v1354_v58 = vadd.f32 %v1353_v46, %v1352_v47  ;;  %v1361_v10 = vadd.f32 %v1360_v43, %v1359_v59  ;;  %v1368_v6 = vadd.f32 %v1367_v60, %v1366_v61  ;;  %v1375_v30 = vadd.f32 %v1374_v22, %v1373_v62 }
  0xd7   :  { %v1342_v14 = vadd.f32 %v1341_v8, %v1340_v18  ;;  %v1349_v23 = vadd.f32 %v1348_v32, %v1347_v40  ;;  %v1381_v12 = vrot.slane %v1380_v17, 4  ;;  %v1388_v44 = vrot.slane %v1387_v45, 4 }
  0xd8   :  { %v1355_v56 = vrot.slane %v1354_v58, 2  ;;  %v1362_v33 = vrot.slane %v1361_v10, 2  ;;  %v1369_v0 = vrot.slane %v1368_v6, 2  ;;  %v1376_v9 = vrot.slane %v1375_v30, 2 }
  0xd9   :  { %v1343_v49 = vrot.slane %v1342_v14, 1  ;;  %v1350_v1 = vrot.slane %v1349_v23, 1  ;;  %v1382_v41 = vadd.f32 %v1381_v12, %v1380_v17  ;;  %v1389_v21 = vadd.f32 %v1388_v44, %v1387_v45 }
  0xda   :  { %v1356_v48 = vadd.f32 %v1355_v56, %v1354_v58  ;;  %v1363_v16 = vadd.f32 %v1362_v33, %v1361_v10  ;;  %v1370_v51 = vadd.f32 %v1369_v0, %v1368_v6  ;;  %v1377_v3 = vadd.f32 %v1376_v9, %v1375_v30 }
  0xdb   :  { %v3327_v47 = vadd.f32 %v1343_v49, %v1342_v14  ;;  %v3329_v59 = vadd.f32 %v1350_v1, %v1349_v23  ;;  %v1383_v61 = vrot.slane %v1382_v41, 2  ;;  %v1390_v62 = vrot.slane %v1389_v21, 2 }
  0xdc   :  { %v1357_v18 = vrot.slane %v1356_v48, 1  ;;  %v1364_v40 = vrot.slane %v1363_v16, 1  ;;  %v1371_v46 = vrot.slane %v1370_v51, 1  ;;  %v1378_v43 = vrot.slane %v1377_v3, 1 }
  0xdd   :  { %4100 = vst [vmem:[#allocation32_spill] sm:$0xff] %v3327_v47  ;;  %4101 = vst [vmem:[#allocation33_spill] sm:$0xff] %v3329_v59  ;;  %v1384_v60 = vadd.f32 %v1383_v61, %v1382_v41  ;;  %v1391_v22 = vadd.f32 %v1390_v62, %v1389_v21  ;;  %v1394_v8 = vsel %vm833_vm0, %v3119_v19, 0.0  ;;  %v1401_v32 = vsel %vm833_vm0, %v3122_v35, 0.0  ;;  %v4168_v47 = vld [vmem:[#allocation3_spill] sm:$0xff] }
  0xde   :  { %v3335_v17 = vadd.f32 %v1357_v18, %v1356_v48  ;;  %v3337_v45 = vadd.f32 %v1364_v40, %v1363_v16  ;;  %v3339_v58 = vadd.f32 %v1371_v46, %v1370_v51  ;;  %v3341_v10 = vadd.f32 %v1378_v43, %v1377_v3 }
  0xdf   :  { %v1385_v6 = vrot.slane %v1384_v60, 1  ;;  %v1392_v30 = vrot.slane %v1391_v22, 1  ;;  %v1395_v14 = vrot.slane %v1394_v8, 4  ;;  %v1402_v23 = vrot.slane %v1401_v32, 4 }
  0xe0   :  { %4102 = vst [vmem:[#allocation34_spill] sm:$0xff] %v3335_v17  ;;  %4103 = vst [vmem:[#allocation35_spill] sm:$0xff] %v3337_v45  ;;  %v1408_v12 = vsel %vm833_vm0, %v3125_v20, 0.0  ;;  %v1415_v19 = vsel %vm833_vm0, %v3129_v36, 0.0  ;;  %v1422_v35 = vsel %vm833_vm0, %v3132_v24, 0.0  ;;  %v1429_v44 = vsel %vm833_vm0, %v3134_v11, 0.0 }
  0xe1   :  { %4104 = vst [vmem:[#allocation36_spill] sm:$0xff] %v3339_v58  ;;  %4105 = vst [vmem:[#allocation37_spill] sm:$0xff] %v3341_v10  ;;  %v3351_v56 = vadd.f32 %v1385_v6, %v1384_v60  ;;  %v3353_v33 = vadd.f32 %v1392_v30, %v1391_v22  ;;  %v1396_v0 = vadd.f32 %v1395_v14, %v1394_v8  ;;  %v1409_v49 = vrot.slane %v1408_v12, 4 }
  0xe2   :  { %v1403_v9 = vadd.f32 %v1402_v23, %v1401_v32  ;;  %v1416_v1 = vrot.slane %v1415_v19, 4  ;;  %v1423_v41 = vrot.slane %v1422_v35, 4  ;;  %v1430_v21 = vrot.slane %v1429_v44, 4 }
  0xe3   :  { %4106 = vst [vmem:[#allocation38_spill] sm:$0xff] %v3351_v56  ;;  %4107 = vst [vmem:[#allocation39_spill] sm:$0xff] %v3353_v33  ;;  %v1397_v20 = vrot.slane %v1396_v0, 2  ;;  %v1436_v36 = vsel %vm833_vm0, %v3139_v2, 0.0  ;;  %v1443_v24 = vsel %vm833_vm0, %v3162_v27, 0.0  ;;  %v1410_v16 = vadd.f32 %v1409_v49, %v1408_v12 }
  0xe4   :  { %v1404_v48 = vrot.slane %v1403_v9, 2  ;;  %v1417_v11 = vadd.f32 %v1416_v1, %v1415_v19  ;;  %v1424_v51 = vadd.f32 %v1423_v41, %v1422_v35  ;;  %v1431_v3 = vadd.f32 %v1430_v21, %v1429_v44 }
  0xe5   :  { %v1398_v61 = vadd.f32 %v1397_v20, %v1396_v0  ;;  %v1437_v18 = vrot.slane %v1436_v36, 4  ;;  %v1444_v40 = vrot.slane %v1443_v24, 4  ;;  %v1411_v46 = vrot.slane %v1410_v16, 2  ;;  %v4110_v20 = vld [vmem:[#allocation10_spill] sm:$0xff] }
  0xe6   :  { %v1405_v62 = vadd.f32 %v1404_v48, %v1403_v9  ;;  %v1418_v43 = vrot.slane %v1417_v11, 2  ;;  %v1425_v60 = vrot.slane %v1424_v51, 2  ;;  %v1432_v22 = vrot.slane %v1431_v3, 2 }
  0xe7   :  { %v1399_v8 = vrot.slane %v1398_v61, 1  ;;  %v1438_v6 = vadd.f32 %v1437_v18, %v1436_v36  ;;  %v1445_v30 = vadd.f32 %v1444_v40, %v1443_v24  ;;  %v1412_v2 = vadd.f32 %v1411_v46, %v1410_v16  ;;  %v4111_v36 = vld [vmem:[#allocation2_spill] sm:$0xff]  ;;  %v4116_v46 = vld [vmem:[#allocation4_spill] sm:$0xff] }
  0xe8   :  { %v1406_v32 = vrot.slane %v1405_v62, 1  ;;  %v1419_v14 = vadd.f32 %v1418_v43, %v1417_v11  ;;  %v1426_v23 = vadd.f32 %v1425_v60, %v1424_v51  ;;  %v1433_v27 = vadd.f32 %v1432_v22, %v1431_v3  ;;  %v4117_v60 = vld [vmem:[#allocation11_spill] sm:$0xff] }
  0xe9   :  { %v3359_v12 = vadd.f32 %v1399_v8, %v1398_v61  ;;  %v1439_v35 = vrot.slane %v1438_v6, 2  ;;  %v1446_v44 = vrot.slane %v1445_v30, 2  ;;  %v1413_v0 = vrot.slane %v1412_v2, 1  ;;  %v4118_v8 = vld [vmem:[#allocation12_spill] sm:$0xff] }
  0xea   :  { %v3361_v19 = vadd.f32 %v1406_v32, %v1405_v62  ;;  %v1420_v9 = vrot.slane %v1419_v14, 1  ;;  %v1427_v49 = vrot.slane %v1426_v23, 1  ;;  %v1434_v1 = vrot.slane %v1433_v27, 1 }
  0xeb   :  { %4108 = vst [vmem:[#allocation40_spill] sm:$0xff] %v3359_v12  ;;  %v1440_v41 = vadd.f32 %v1439_v35, %v1438_v6  ;;  %v1447_v21 = vadd.f32 %v1446_v44, %v1445_v30  ;;  %v1450_v48 = vsel %vm833_vm0, %v4110_v20, 0.0  ;;  %v1457_v24 = vsel %vm833_vm0, %v4111_v36, 0.0  ;;  %v4119_v6 = vld [vmem:[#allocation5_spill] sm:$0xff] }
  0xec   :  { %4109 = vst [vmem:[#allocation41_spill] sm:$0xff] %v3361_v19  ;;  %v3367_v16 = vadd.f32 %v1413_v0, %v1412_v2  ;;  %v3369_v11 = vadd.f32 %v1420_v9, %v1419_v14  ;;  %v3371_v51 = vadd.f32 %v1427_v49, %v1426_v23  ;;  %v3373_v3 = vadd.f32 %v1434_v1, %v1433_v27  ;;  %v4122_v20 = vld [vmem:[#allocation13_spill] sm:$0xff] }
  0xed   :  { %v1441_v61 = vrot.slane %v1440_v41, 1  ;;  %v1448_v62 = vrot.slane %v1447_v21, 1  ;;  %v1451_v18 = vrot.slane %v1450_v48, 4  ;;  %v1458_v40 = vrot.slane %v1457_v24, 4 }
  0xee   :  { %4112 = vst [vmem:[#allocation10_spill] sm:$0xff] %v3367_v16  ;;  %4113 = vst [vmem:[#allocation2_spill] sm:$0xff] %v3369_v11  ;;  %v1464_v43 = vsel %vm833_vm0, %v4116_v46, 0.0  ;;  %v1471_v22 = vsel %vm833_vm0, %v4117_v60, 0.0  ;;  %v1478_v32 = vsel %vm833_vm0, %v4118_v8, 0.0  ;;  %v1485_v30 = vsel %vm833_vm0, %v4119_v6, 0.0 }
  0xef   :  { %4114 = vst [vmem:[#allocation42_spill] sm:$0xff] %v3371_v51  ;;  %4115 = vst [vmem:[#allocation43_spill] sm:$0xff] %v3373_v3  ;;  %v3383_v2 = vadd.f32 %v1441_v61, %v1440_v41  ;;  %v3385_v14 = vadd.f32 %v1448_v62, %v1447_v21  ;;  %v1452_v23 = vadd.f32 %v1451_v18, %v1450_v48  ;;  %v1465_v35 = vrot.slane %v1464_v43, 4  ;;  %v4123_v46 = vld [vmem:[#allocation16_spill] sm:$0xff] }
  0xf0   :  { %v1459_v27 = vadd.f32 %v1458_v40, %v1457_v24  ;;  %v1472_v44 = vrot.slane %v1471_v22, 4  ;;  %v1479_v0 = vrot.slane %v1478_v32, 4  ;;  %v1486_v9 = vrot.slane %v1485_v30, 4 }
  0xf1   :  { %4120 = vst [vmem:[#allocation4_spill] sm:$0xff] %v3383_v2  ;;  %4121 = vst [vmem:[#allocation11_spill] sm:$0xff] %v3385_v14  ;;  %v1453_v49 = vrot.slane %v1452_v23, 2  ;;  %v1492_v36 = vsel %vm833_vm0, %v4122_v20, 0.0  ;;  %v1499_v60 = vsel %vm833_vm0, %v4123_v46, 0.0  ;;  %v1466_v8 = vadd.f32 %v1465_v35, %v1464_v43 }
  0xf2   :  { %v1460_v1 = vrot.slane %v1459_v27, 2  ;;  %v1473_v6 = vadd.f32 %v1472_v44, %v1471_v22  ;;  %v1480_v41 = vadd.f32 %v1479_v0, %v1478_v32  ;;  %v1487_v61 = vadd.f32 %v1486_v9, %v1485_v30 }
  0xf3   :  { %v1454_v21 = vadd.f32 %v1453_v49, %v1452_v23  ;;  %v1493_v48 = vrot.slane %v1492_v36, 4  ;;  %v1500_v24 = vrot.slane %v1499_v60, 4  ;;  %v1467_v18 = vrot.slane %v1466_v8, 2  ;;  %v4126_v49 = vld [vmem:[#allocation18_spill] sm:$0xff] }
  0xf4   :  { %v1461_v62 = vadd.f32 %v1460_v1, %v1459_v27  ;;  %v1474_v40 = vrot.slane %v1473_v6, 2  ;;  %v1481_v14 = vrot.slane %v1480_v41, 2  ;;  %v1488_v2 = vrot.slane %v1487_v61, 2 }
  0xf5   :  { %v1455_v3 = vrot.slane %v1454_v21, 1  ;;  %v1494_v11 = vadd.f32 %v1493_v48, %v1492_v36  ;;  %v1501_v16 = vadd.f32 %v1500_v24, %v1499_v60  ;;  %v1468_v20 = vadd.f32 %v1467_v18, %v1466_v8  ;;  %v4127_v36 = vld [vmem:[#allocation20_spill] sm:$0xff]  ;;  %v4134_v48 = vld [vmem:[#allocation14_spill] sm:$0xff]  ;;  %v4135_v18 = vld [vmem:[#allocation15_spill] sm:$0xff] }
  0xf6   :  { %v1462_v51 = vrot.slane %v1461_v62, 1  ;;  %v1475_v19 = vadd.f32 %v1474_v40, %v1473_v6  ;;  %v1482_v12 = vadd.f32 %v1481_v14, %v1480_v41  ;;  %v1489_v46 = vadd.f32 %v1488_v2, %v1487_v61 }
  0xf7   :  { %v3391_v43 = vadd.f32 %v1455_v3, %v1454_v21  ;;  %v1495_v32 = vrot.slane %v1494_v11, 2  ;;  %v1502_v30 = vrot.slane %v1501_v16, 2  ;;  %v1469_v23 = vrot.slane %v1468_v20, 1  ;;  %v4133_v21 = vld [vmem:[#allocation8_spill] sm:$0xff] }
  0xf8   :  { %v3393_v22 = vadd.f32 %v1462_v51, %v1461_v62  ;;  %v1476_v27 = vrot.slane %v1475_v19, 1  ;;  %v1483_v35 = vrot.slane %v1482_v12, 1  ;;  %v1490_v44 = vrot.slane %v1489_v46, 1 }
  0xf9   :  { %4124 = vst [vmem:[#allocation12_spill] sm:$0xff] %v3391_v43  ;;  %v1496_v0 = vadd.f32 %v1495_v32, %v1494_v11  ;;  %v1503_v9 = vadd.f32 %v1502_v30, %v1501_v16  ;;  %v1506_v1 = vsel %vm833_vm0, %v4126_v49, 0.0  ;;  %v1513_v60 = vsel %vm833_vm0, %v4127_v36, 0.0  ;;  %v4132_v11 = vld [vmem:[#allocation6_spill] sm:$0xff]  ;;  %v4138_v49 = vld [vmem:[#allocation17_spill] sm:$0xff] }
  0xfa   :  { %4125 = vst [vmem:[#allocation5_spill] sm:$0xff] %v3393_v22  ;;  %v3399_v14 = vadd.f32 %v1469_v23, %v1468_v20  ;;  %v3401_v3 = vadd.f32 %v1476_v27, %v1475_v19  ;;  %v3403_v51 = vadd.f32 %v1483_v35, %v1482_v12  ;;  %v3405_v2 = vadd.f32 %v1490_v44, %v1489_v46 }
  0xfb   :  { %v1497_v8 = vrot.slane %v1496_v0, 1  ;;  %v1504_v6 = vrot.slane %v1503_v9, 1  ;;  %v1507_v41 = vrot.slane %v1506_v1, 4  ;;  %v1514_v61 = vrot.slane %v1513_v60, 4 }
  0xfc   :  { %4128 = vst [vmem:[#allocation13_spill] sm:$0xff] %v3399_v14  ;;  %4129 = vst [vmem:[#allocation16_spill] sm:$0xff] %v3401_v3  ;;  %v1520_v16 = vsel %vm833_vm0, %v4132_v11, 0.0  ;;  %v1527_v62 = vsel %vm833_vm0, %v4133_v21, 0.0  ;;  %v1534_v24 = vsel %vm833_vm0, %v4134_v48, 0.0  ;;  %v1541_v19 = vsel %vm833_vm0, %v4135_v18, 0.0 }
  0xfd   :  { %4130 = vst [vmem:[#allocation18_spill] sm:$0xff] %v3403_v51  ;;  %4131 = vst [vmem:[#allocation20_spill] sm:$0xff] %v3405_v2  ;;  %v3415_v12 = vadd.f32 %v1497_v8, %v1496_v0  ;;  %v3417_v40 = vadd.f32 %v1504_v6, %v1503_v9  ;;  %v1508_v20 = vadd.f32 %v1507_v41, %v1506_v1  ;;  %v1521_v32 = vrot.slane %v1520_v16, 4  ;;  %v4139_v11 = vld [vmem:[#allocation19_spill] sm:$0xff] }
  0xfe   :  { %v1515_v46 = vadd.f32 %v1514_v61, %v1513_v60  ;;  %v1528_v30 = vrot.slane %v1527_v62, 4  ;;  %v1535_v23 = vrot.slane %v1534_v24, 4  ;;  %v1542_v27 = vrot.slane %v1541_v19, 4 }
  0xff   :  { %4136 = vst [vmem:[#allocation6_spill] sm:$0xff] %v3415_v12  ;;  %4137 = vst [vmem:[#allocation8_spill] sm:$0xff] %v3417_v40  ;;  %v1509_v35 = vrot.slane %v1508_v20, 2  ;;  %v1548_v36 = vsel %vm833_vm0, %v4138_v49, 0.0  ;;  %v1555_v21 = vsel %vm833_vm0, %v4139_v11, 0.0  ;;  %v1522_v48 = vadd.f32 %v1521_v32, %v1520_v16 }
 0x100   :  { %v1516_v44 = vrot.slane %v1515_v46, 2  ;;  %v1529_v18 = vadd.f32 %v1528_v30, %v1527_v62  ;;  %v1536_v0 = vadd.f32 %v1535_v23, %v1534_v24  ;;  %v1543_v8 = vadd.f32 %v1542_v27, %v1541_v19 }
 0x101   :  { %v1510_v9 = vadd.f32 %v1509_v35, %v1508_v20  ;;  %v1549_v1 = vrot.slane %v1548_v36, 4  ;;  %v1556_v60 = vrot.slane %v1555_v21, 4  ;;  %v1523_v41 = vrot.slane %v1522_v48, 2  ;;  %v4142_v35 = vld [vmem:[#allocation21_spill] sm:$0xff] }
 0x102   :  { %v1517_v6 = vadd.f32 %v1516_v44, %v1515_v46  ;;  %v1530_v61 = vrot.slane %v1529_v18, 2  ;;  %v1537_v40 = vrot.slane %v1536_v0, 2  ;;  %v1544_v12 = vrot.slane %v1543_v8, 2 }
 0x103   :  { %v1511_v2 = vrot.slane %v1510_v9, 1  ;;  %v1550_v3 = vadd.f32 %v1549_v1, %v1548_v36  ;;  %v1557_v14 = vadd.f32 %v1556_v60, %v1555_v21  ;;  %v1524_v49 = vadd.f32 %v1523_v41, %v1522_v48  ;;  %v4143_v36 = vld [vmem:[#allocation7_spill] sm:$0xff]  ;;  %v4150_v1 = vld [vmem:[#allocation24_spill] sm:$0xff]  ;;  %v4151_v41 = vld [vmem:[#allocation25_spill] sm:$0xff] }
 0x104   :  { %v1518_v51 = vrot.slane %v1517_v6, 1  ;;  %v1531_v22 = vadd.f32 %v1530_v61, %v1529_v18  ;;  %v1538_v43 = vadd.f32 %v1537_v40, %v1536_v0  ;;  %v1545_v11 = vadd.f32 %v1544_v12, %v1543_v8 }
 0x105   :  { %v3423_v16 = vadd.f32 %v1511_v2, %v1510_v9  ;;  %v1551_v24 = vrot.slane %v1550_v3, 2  ;;  %v1558_v19 = vrot.slane %v1557_v14, 2  ;;  %v1525_v20 = vrot.slane %v1524_v49, 1  ;;  %v4149_v9 = vld [vmem:[#allocation23_spill] sm:$0xff] }
 0x106   :  { %v3425_v62 = vadd.f32 %v1518_v51, %v1517_v6  ;;  %v1532_v46 = vrot.slane %v1531_v22, 1  ;;  %v1539_v32 = vrot.slane %v1538_v43, 1  ;;  %v1546_v30 = vrot.slane %v1545_v11, 1 }
 0x107   :  { %4140 = vst [vmem:[#allocation14_spill] sm:$0xff] %v3423_v16  ;;  %v1552_v23 = vadd.f32 %v1551_v24, %v1550_v3  ;;  %v1559_v27 = vadd.f32 %v1558_v19, %v1557_v14  ;;  %v1562_v44 = vsel %vm833_vm0, %v4142_v35, 0.0  ;;  %v1569_v21 = vsel %vm833_vm0, %v4143_v36, 0.0  ;;  %v4148_v3 = vld [vmem:[#allocation22_spill] sm:$0xff] }
 0x108   :  { %4141 = vst [vmem:[#allocation15_spill] sm:$0xff] %v3425_v62  ;;  %v3431_v40 = vadd.f32 %v1525_v20, %v1524_v49  ;;  %v3433_v2 = vadd.f32 %v1532_v46, %v1531_v22  ;;  %v3435_v51 = vadd.f32 %v1539_v32, %v1538_v43  ;;  %v3437_v12 = vadd.f32 %v1546_v30, %v1545_v11  ;;  %v4154_v35 = vld [vmem:[#allocation26_spill] sm:$0xff] }
 0x109   :  { %v1553_v48 = vrot.slane %v1552_v23, 1  ;;  %v1560_v18 = vrot.slane %v1559_v27, 1  ;;  %v1563_v0 = vrot.slane %v1562_v44, 4  ;;  %v1570_v8 = vrot.slane %v1569_v21, 4 }
 0x10a   :  { %4144 = vst [vmem:[#allocation17_spill] sm:$0xff] %v3431_v40  ;;  %4145 = vst [vmem:[#allocation19_spill] sm:$0xff] %v3433_v2  ;;  %v1576_v14 = vsel %vm833_vm0, %v4148_v3, 0.0  ;;  %v1583_v6 = vsel %vm833_vm0, %v4149_v9, 0.0  ;;  %v1590_v60 = vsel %vm833_vm0, %v4150_v1, 0.0  ;;  %v1597_v22 = vsel %vm833_vm0, %v4151_v41, 0.0 }
 0x10b   :  { %4146 = vst [vmem:[#allocation21_spill] sm:$0xff] %v3435_v51  ;;  %4147 = vst [vmem:[#allocation7_spill] sm:$0xff] %v3437_v12  ;;  %v3447_v43 = vadd.f32 %v1553_v48, %v1552_v23  ;;  %v3449_v61 = vadd.f32 %v1560_v18, %v1559_v27  ;;  %v1564_v49 = vadd.f32 %v1563_v0, %v1562_v44  ;;  %v1577_v24 = vrot.slane %v1576_v14, 4  ;;  %v4155_v3 = vld [vmem:[#allocation27_spill] sm:$0xff] }
 0x10c   :  { %v1571_v11 = vadd.f32 %v1570_v8, %v1569_v21  ;;  %v1584_v19 = vrot.slane %v1583_v6, 4  ;;  %v1591_v20 = vrot.slane %v1590_v60, 4  ;;  %v1598_v46 = vrot.slane %v1597_v22, 4 }
 0x10d   :  { %4152 = vst [vmem:[#allocation22_spill] sm:$0xff] %v3447_v43  ;;  %4153 = vst [vmem:[#allocation23_spill] sm:$0xff] %v3449_v61  ;;  %v1565_v32 = vrot.slane %v1564_v49, 2  ;;  %v1604_v36 = vsel %vm833_vm0, %v4154_v35, 0.0  ;;  %v1611_v9 = vsel %vm833_vm0, %v4155_v3, 0.0  ;;  %v1578_v1 = vadd.f32 %v1577_v24, %v1576_v14 }
 0x10e   :  { %v1572_v30 = vrot.slane %v1571_v11, 2  ;;  %v1585_v41 = vadd.f32 %v1584_v19, %v1583_v6  ;;  %v1592_v23 = vadd.f32 %v1591_v20, %v1590_v60  ;;  %v1599_v48 = vadd.f32 %v1598_v46, %v1597_v22 }
 0x10f   :  { %v1566_v27 = vadd.f32 %v1565_v32, %v1564_v49  ;;  %v1605_v44 = vrot.slane %v1604_v36, 4  ;;  %v1612_v21 = vrot.slane %v1611_v9, 4  ;;  %v1579_v0 = vrot.slane %v1578_v1, 2  ;;  %v3462_v32 = vld [vmem:[%s3974_s3] sm:$0xff] }
 0x110   :  { %v1573_v18 = vadd.f32 %v1572_v30, %v1571_v11  ;;  %v1586_v8 = vrot.slane %v1585_v41, 2  ;;  %v1593_v61 = vrot.slane %v1592_v23, 2  ;;  %v1600_v43 = vrot.slane %v1599_v48, 2 }
 0x111   :  { %v1567_v12 = vrot.slane %v1566_v27, 1  ;;  %v1606_v2 = vadd.f32 %v1605_v44, %v1604_v36  ;;  %v1613_v40 = vadd.f32 %v1612_v21, %v1611_v9  ;;  %v1580_v35 = vadd.f32 %v1579_v0, %v1578_v1  ;;  %v3497_v21 = vld [vmem:[%s3974_s3 + $0x18] sm:$0xff] }
 0x112   :  { %v1574_v51 = vrot.slane %v1573_v18, 1  ;;  %v1587_v62 = vadd.f32 %v1586_v8, %v1585_v41  ;;  %v1594_v16 = vadd.f32 %v1593_v61, %v1592_v23  ;;  %v1601_v3 = vadd.f32 %v1600_v43, %v1599_v48  ;;  %4164 = vst [vmem:[#allocation48_spill] sm:$0xff] %v3497_v21  ;;  %v3530_v41 = vld [vmem:[%s3974_s3 + $0x30] sm:$0xff] }
 0x113   :  { %v3455_v14 = vadd.f32 %v1567_v12, %v1566_v27  ;;  %v1607_v60 = vrot.slane %v1606_v2, 2  ;;  %v1614_v22 = vrot.slane %v1613_v40, 2  ;;  %v1581_v49 = vrot.slane %v1580_v35, 1 }
 0x114   :  { %v3457_v6 = vadd.f32 %v1574_v51, %v1573_v18  ;;  %v1588_v11 = vrot.slane %v1587_v62, 1  ;;  %v1595_v24 = vrot.slane %v1594_v16, 1  ;;  %v1602_v19 = vrot.slane %v1601_v3, 1 }
 0x115   :  { %4156 = vst [vmem:[#allocation24_spill] sm:$0xff] %v3455_v14  ;;  %v1608_v20 = vadd.f32 %v1607_v60, %v1606_v2  ;;  %v1615_v46 = vadd.f32 %v1614_v22, %v1613_v40  ;;  %v3466_v43 = vadd.f32 %v1581_v49, %v1580_v35  ;;  %v3477_v40 = vld [vmem:[%s3974_s3 + $0x10] sm:$0xff]  ;;  %v3508_v49 = vld [vmem:[%s3974_s3 + $0x20] sm:$0xff]  ;;  %v1656_v22 = vrot.slane %v3497_v21, 2 }
 0x116   :  { %4157 = vst [vmem:[#allocation25_spill] sm:$0xff] %v3457_v6  ;;  %v3468_v51 = vadd.f32 %v1588_v11, %v1587_v62  ;;  %v3470_v30 = vadd.f32 %v1595_v24, %v1594_v16  ;;  %v3472_v36 = vadd.f32 %v1602_v19, %v1601_v3  ;;  %v3486_v16 = vld [vmem:[%s3974_s3 + $0x8] sm:$0xff]  ;;  %4165 = vst [vmem:[#allocation49_spill] sm:$0xff] %v3508_v49  ;;  %v1650_v11 = vrot.slane %v3477_v40, 3 }
 0x117   :  { %4158 = vst [vmem:[#allocation26_spill] sm:$0xff] %v3466_v43  ;;  %v1609_v9 = vrot.slane %v1608_v20, 1  ;;  %v1616_v2 = vrot.slane %v1615_v46, 1  ;;  %v1644_v0 = vrot.slane %v3486_v16, 4  ;;  %v1645_v8 = vrot.slane %v3486_v16, 5  ;;  %v3543_v43 = vld [vmem:[%s3974_s3 + $0x38] sm:$0xff] }
 0x118   :  { %4159 = vst [vmem:[#allocation27_spill] sm:$0xff] %v3468_v51  ;;  %4160 = vst [vmem:[#allocation44_spill] sm:$0xff] %v3470_v30  ;;  %v1646_v35 = vrot.slane %v3486_v16, 6  ;;  %v1647_v3 = vrot.slane %v3486_v16, 7  ;;  %v1651_v24 = vrot.slane %v3477_v40, 4  ;;  %v1652_v19 = vrot.slane %v3477_v40, 5 }
 0x119   :  { %4161 = vst [vmem:[#allocation45_spill] sm:$0xff] %v3472_v36  ;;  %v3490_v18 = vadd.f32 %v1609_v9, %v1608_v20  ;;  %v3492_v44 = vadd.f32 %v1616_v2, %v1615_v46  ;;  %v1653_v20 = vrot.slane %v3477_v40, 6  ;;  %v3517_v46 = vld [vmem:[%s3974_s3 + $0x28] sm:$0xff]  ;;  %v1654_v9 = vrot.slane %v3477_v40, 7 }
 0x11a   :  { %4166 = vst [vmem:[#allocation50_spill] sm:$0xff] %v3517_v46  ;;  %v1655_v2 = vrot.slane %v3497_v21, 1  ;;  %v1657_v60 = vrot.slane %v3497_v21, 3  ;;  %v1658_v27 = vrot.slane %v3497_v21, 4  ;;  %v1659_v48 = vrot.slane %v3497_v21, 5 }
 0x11b   :  { %4162 = vst [vmem:[#allocation46_spill] sm:$0xff] %v3490_v18  ;;  %4163 = vst [vmem:[#allocation47_spill] sm:$0xff] %v3492_v44  ;;  %v1660_v62 = vrot.slane %v3497_v21, 6  ;;  %v1661_v23 = vrot.slane %v3497_v21, 7  ;;  %v1662_v1 = vrot.slane %v3508_v49, 1  ;;  %v1663_v12 = vrot.slane %v3508_v49, 2 }
 0x11c   :  { %v1664_v61 = vrot.slane %v3508_v49, 3  ;;  %v1665_v44 = vrot.slane %v3508_v49, 4  ;;  %v1666_v18 = vrot.slane %v3508_v49, 5  ;;  %v1667_v36 = vrot.slane %v3508_v49, 6 }
 0x11d   :  { %v1668_v30 = vrot.slane %v3508_v49, 7  ;;  %v1670_v6 = vrot.slane %v3517_v46, 2  ;;  %v1671_v14 = vrot.slane %v3517_v46, 3  ;;  %v1672_v33 = vrot.slane %v3517_v46, 4 }
 0x11e   :  { %v1673_v56 = vrot.slane %v3517_v46, 5  ;;  %v1674_v10 = vrot.slane %v3517_v46, 6  ;;  %v1675_v58 = vrot.slane %v3517_v46, 7  ;;  %v3567_v59 = vadd.f32 %v3462_v32, %v3231_v13 }
 0x11f   :  { %v4169_v21 = vrot.slane %v4168_v47, 1  ;;  %v4170_v46 = vrot.slane %v3462_v32, 2  ;;  %v4171_v51 = vrot.slane %v3462_v32, 3  ;;  %v4172_v17 = vrot.slane %v3462_v32, 4 }
 0x120   :  { %4167 = vst [vmem:[#allocation51_spill] sm:$0xff] %v3567_v59  ;;  %v4174_v47 = vrot.slane %v3462_v32, 5  ;;  %v4176_v49 = vrot.slane %v3462_v32, 6  ;;  %v4178_v59 = vrot.slane %v3462_v32, 7 }
 0x121   :  { %v3572_v5 = vadd.f32 %v4169_v21, %v3233_v42  ;;  %v3577_v39 = vadd.f32 %v4170_v46, %v3235_v38  ;;  %v3582_v45 = vadd.f32 %v4171_v51, %v3237_v54  ;;  %v3587_v13 = vadd.f32 %v4172_v17, %v3239_v15  ;;  %v4175_v21 = vld [vmem:[#allocation28_spill] sm:$0xff]  ;;  %v4177_v46 = vld [vmem:[#allocation29_spill] sm:$0xff] }
 0x122   :  { %v3592_v42 = vadd.f32 %v4174_v47, %v3241_v28  ;;  %v3597_v38 = vadd.f32 %v4176_v49, %v4175_v21  ;;  %v3602_v54 = vadd.f32 %v4178_v59, %v4177_v46  ;;  %v3606_v51 = vadd.f32 %v3486_v16, %v3263_v34  ;;  %v4179_v15 = vld [vmem:[#allocation9_spill] sm:$0xff]  ;;  %v4188_v46 = vld [vmem:[#allocation48_spill] sm:$0xff] }
 0x123   :  { %4173 = vst [vmem:[#allocation3_spill] sm:$0xff] %v3587_v13  ;;  %v4180_v17 = vrot.slane %v4179_v15, 1  ;;  %v4181_v28 = vrot.slane %v3486_v16, 2  ;;  %v4182_v49 = vrot.slane %v3486_v16, 3  ;;  %v3624_v59 = vadd.f32 %v1644_v0, %v3275_v52 }
 0x124   :  { %v3627_v34 = vadd.f32 %v1645_v8, %v3277_v37  ;;  %v3630_v21 = vadd.f32 %v1646_v35, %v3287_v25  ;;  %v4184_v52 = vrot.slane %v3477_v40, 2  ;;  %v3650_v25 = vadd.f32 %v1650_v11, %v3305_v53  ;;  %v4186_v35 = vld [vmem:[#allocation31_spill] sm:$0xff]  ;;  %v4190_v53 = vld [vmem:[#allocation34_spill] sm:$0xff] }
 0x125   :  { %v3611_v13 = vadd.f32 %v4180_v17, %v3265_v4  ;;  %v3616_v47 = vadd.f32 %v4181_v28, %v3271_v7  ;;  %v3621_v32 = vadd.f32 %v4182_v49, %v3273_v63  ;;  %v3633_v4 = vadd.f32 %v1647_v3, %v3289_v55  ;;  %v4187_v3 = vld [vmem:[#allocation32_spill] sm:$0xff]  ;;  %v4195_v49 = vld [vmem:[#allocation39_spill] sm:$0xff] }
 0x126   :  { %v3637_v7 = vadd.f32 %v3477_v40, %v3295_v50  ;;  %v4183_v63 = vrot.slane %v3477_v40, 1  ;;  %v3647_v37 = vadd.f32 %v4184_v52, %v3303_v29  ;;  %v3653_v55 = vadd.f32 %v1651_v24, %v3307_v31  ;;  %v4185_v50 = vld [vmem:[#allocation30_spill] sm:$0xff]  ;;  %v4189_v29 = vld [vmem:[#allocation33_spill] sm:$0xff]  ;;  %v4191_v31 = vld [vmem:[#allocation35_spill] sm:$0xff] }
 0x127   :  { %v3656_v0 = vadd.f32 %v1652_v19, %v3309_v57  ;;  %v3659_v8 = vadd.f32 %v1653_v20, %v4185_v50  ;;  %v3666_v40 = vadd.f32 %v4188_v46, %v4187_v3  ;;  %v3669_v15 = vadd.f32 %v1655_v2, %v4189_v29  ;;  %v4192_v57 = vld [vmem:[#allocation36_spill] sm:$0xff]  ;;  %v4193_v20 = vld [vmem:[#allocation37_spill] sm:$0xff] }
 0x128   :  { %v3642_v16 = vadd.f32 %v4183_v63, %v3297_v26  ;;  %v3662_v26 = vadd.f32 %v1654_v9, %v4186_v35  ;;  %v3672_v11 = vadd.f32 %v1656_v22, %v4190_v53  ;;  %v3675_v24 = vadd.f32 %v1657_v60, %v4191_v31  ;;  %v4194_v9 = vld [vmem:[#allocation38_spill] sm:$0xff]  ;;  %v4196_v2 = vld [vmem:[#allocation40_spill] sm:$0xff]  ;;  %v4197_v52 = vld [vmem:[#allocation49_spill] sm:$0xff] }
 0x129   :  { %v3678_v19 = vadd.f32 %v1658_v27, %v4192_v57  ;;  %v3681_v17 = vadd.f32 %v1659_v48, %v4193_v20  ;;  %v3684_v28 = vadd.f32 %v1660_v62, %v4194_v9  ;;  %v3687_v63 = vadd.f32 %v1661_v23, %v4195_v49  ;;  %v4198_v22 = vld [vmem:[#allocation41_spill] sm:$0xff]  ;;  %v4199_v60 = vld [vmem:[#allocation10_spill] sm:$0xff]  ;;  %v4202_v62 = vld [vmem:[#allocation43_spill] sm:$0xff] }
 0x12a   :  { %v3691_v50 = vadd.f32 %v4197_v52, %v4196_v2  ;;  %v3694_v35 = vadd.f32 %v1662_v1, %v4198_v22  ;;  %v3697_v3 = vadd.f32 %v1663_v12, %v4199_v60  ;;  %v4200_v27 = vld [vmem:[#allocation2_spill] sm:$0xff]  ;;  %v3706_v53 = vadd.f32 %v1666_v18, %v4202_v62  ;;  %v4203_v23 = vld [vmem:[#allocation4_spill] sm:$0xff]  ;;  %v4204_v57 = vld [vmem:[#allocation11_spill] sm:$0xff] }
 0x12b   :  { %v3700_v46 = vadd.f32 %v1664_v61, %v4200_v27  ;;  %v4201_v48 = vld [vmem:[#allocation42_spill] sm:$0xff]  ;;  %v3709_v31 = vadd.f32 %v1667_v36, %v4203_v23  ;;  %v3712_v20 = vadd.f32 %v1668_v30, %v4204_v57  ;;  %v4205_v1 = vld [vmem:[#allocation12_spill] sm:$0xff]  ;;  %v4207_v12 = vld [vmem:[#allocation5_spill] sm:$0xff] }
 0x12c   :  { %v3703_v29 = vadd.f32 %v1665_v44, %v4201_v48  ;;  %v4206_v9 = vld [vmem:[#allocation50_spill] sm:$0xff]  ;;  %v4209_v44 = vld [vmem:[#allocation13_spill] sm:$0xff]  ;;  %v4210_v18 = vld [vmem:[#allocation16_spill] sm:$0xff] }
 0x12d   :  { %v3716_v49 = vadd.f32 %v4206_v9, %v4205_v1  ;;  %v4208_v61 = vrot.slane %v4206_v9, 1  ;;  %v3724_v52 = vadd.f32 %v1670_v6, %v4209_v44  ;;  %v3727_v22 = vadd.f32 %v1671_v14, %v4210_v18  ;;  %v4211_v36 = vld [vmem:[#allocation18_spill] sm:$0xff]  ;;  %v4212_v30 = vld [vmem:[#allocation20_spill] sm:$0xff]  ;;  %v4217_v6 = vld [vmem:[#allocation15_spill] sm:$0xff] }
 0x12e   :  { %v3730_v60 = vadd.f32 %v1672_v33, %v4211_v36  ;;  %v3733_v27 = vadd.f32 %v1673_v56, %v4212_v30  ;;  %v4213_v48 = vld [vmem:[#allocation6_spill] sm:$0xff]  ;;  %v4214_v23 = vld [vmem:[#allocation8_spill] sm:$0xff]  ;;  %v4218_v14 = vrot.slane %v3530_v41, 1  ;;  %v4219_v33 = vld [vmem:[#allocation17_spill] sm:$0xff]  ;;  %v4225_v36 = vrot.slane %v3530_v41, 4 }
 0x12f   :  { %v3721_v2 = vadd.f32 %v4208_v61, %v4207_v12  ;;  %v3736_v62 = vadd.f32 %v1674_v10, %v4213_v48  ;;  %v3739_v57 = vadd.f32 %v1675_v58, %v4214_v23  ;;  %v4215_v1 = vld [vmem:[#allocation14_spill] sm:$0xff]  ;;  %v4220_v61 = vrot.slane %v3530_v41, 2  ;;  %v4221_v44 = vld [vmem:[#allocation19_spill] sm:$0xff]  ;;  %v4224_v58 = vld [vmem:[#allocation21_spill] sm:$0xff] }
 0x130   :  { %v3743_v9 = vadd.f32 %v3530_v41, %v4215_v1  ;;  %v3748_v12 = vadd.f32 %v4218_v14, %v4217_v6  ;;  %v4222_v10 = vrot.slane %v3530_v41, 3  ;;  %v3763_v30 = vadd.f32 %v4225_v36, %v4224_v58  ;;  %v4227_v48 = vld [vmem:[#allocation7_spill] sm:$0xff]  ;;  %v4230_v6 = vld [vmem:[#allocation22_spill] sm:$0xff]  ;;  %v4237_v58 = vld [vmem:[#allocation25_spill] sm:$0xff] }
 0x131   :  { %v3753_v56 = vadd.f32 %v4220_v61, %v4219_v33  ;;  %v4228_v23 = vrot.slane %v3530_v41, 5  ;;  %v4231_v14 = vrot.slane %v3530_v41, 6  ;;  %v4232_v61 = vld [vmem:[#allocation23_spill] sm:$0xff]  ;;  %v4238_v36 = vrot.slane %v3543_v43, 1 }
 0x132   :  { %4216 = vst [vmem:[#allocation28_spill] sm:$0xff] %v3743_v9  ;;  %v3758_v18 = vadd.f32 %v4222_v10, %v4221_v44  ;;  %4226 = vst [vmem:[#allocation9_spill] sm:$0xff] %v3763_v30  ;;  %v4233_v9 = vrot.slane %v3530_v41, 7  ;;  %v4235_v10 = vld [vmem:[#allocation24_spill] sm:$0xff] }
 0x133   :  { %v3768_v1 = vadd.f32 %v4228_v23, %v4227_v48  ;;  %v3773_v33 = vadd.f32 %v4231_v14, %v4230_v6  ;;  %v3787_v30 = vadd.f32 %v4238_v36, %v4237_v58  ;;  %v4240_v48 = vld [vmem:[#allocation26_spill] sm:$0xff]  ;;  %v4241_v23 = vrot.slane %v3543_v43, 2  ;;  %v4243_v6 = vld [vmem:[#allocation27_spill] sm:$0xff] }
 0x134   :  { %4223 = vst [vmem:[#allocation29_spill] sm:$0xff] %v3758_v18  ;;  %v3778_v44 = vadd.f32 %v4233_v9, %v4232_v61  ;;  %v3782_v18 = vadd.f32 %v3543_v43, %v4235_v10  ;;  %v4244_v14 = vrot.slane %v3543_v43, 3  ;;  %v4245_v9 = vld [vmem:[#allocation44_spill] sm:$0xff]  ;;  %v4246_v61 = vrot.slane %v3543_v43, 4  ;;  %v4250_v36 = vld [vmem:[#allocation46_spill] sm:$0xff] }
 0x135   :  { %4229 = vst [vmem:[#allocation30_spill] sm:$0xff] %v3768_v1  ;;  %4239 = vst [vmem:[#allocation48_spill] sm:$0xff] %v3787_v30  ;;  %v3792_v1 = vadd.f32 %v4241_v23, %v4240_v48  ;;  %v4251_v30 = vrot.slane %v3543_v43, 6  ;;  %v4252_v23 = vld [vmem:[#allocation47_spill] sm:$0xff] }
 0x136   :  { %4234 = vst [vmem:[#allocation31_spill] sm:$0xff] %v3778_v44  ;;  %4236 = vst [vmem:[#allocation32_spill] sm:$0xff] %v3782_v18  ;;  %v3797_v41 = vadd.f32 %v4244_v14, %v4243_v6  ;;  %v3802_v10 = vadd.f32 %v4246_v61, %v4245_v9  ;;  %v4247_v18 = vld [vmem:[#allocation45_spill] sm:$0xff]  ;;  %v4248_v44 = vrot.slane %v3543_v43, 5  ;;  %v1882_v14 = vrot.slane %v3572_v5, 7 }
 0x137   :  { %4242 = vst [vmem:[#allocation33_spill] sm:$0xff] %v3792_v1  ;;  %v3812_v48 = vadd.f32 %v4251_v30, %v4250_v36  ;;  %v4253_v1 = vrot.slane %v3543_v43, 7  ;;  %v1885_v9 = vrot.slane %v3577_v39, 6  ;;  %v1888_v61 = vrot.slane %v3582_v45, 5 }
 0x138   :  { %v3807_v58 = vadd.f32 %v4248_v44, %v4247_v18  ;;  %v4254_v18 = vld [vmem:[#allocation3_spill] sm:$0xff]  ;;  %v1894_v36 = vrot.slane %v3592_v42, 3  ;;  %v1897_v43 = vrot.slane %v3597_v38, 2  ;;  %v1900_v39 = vrot.slane %v3602_v54, 1 }
 0x139   :  { %v3817_v6 = vadd.f32 %v4253_v1, %v4252_v23  ;;  %v1891_v44 = vrot.slane %v4254_v18, 4  ;;  %v1903_v1 = vrot.slane %v3611_v13, 7  ;;  %v1905_v23 = vrot.slane %v3616_v47, 6 }
 0x13a   :  { %4249 = vst [vmem:[#allocation34_spill] sm:$0xff] %v3807_v58  ;;  %v4255_v58 = vld [vmem:[#allocation51_spill] sm:$0xff]  ;;  %v1907_v18 = vrot.slane %v3621_v32, 5  ;;  %v1909_v42 = vrot.slane %v3624_v59, 4  ;;  %v1911_v38 = vrot.slane %v3627_v34, 3  ;;  %v1917_v13 = vrot.slane %v3642_v16, 7 }
 0x13b   :  { %v1884_v30 = vsel %vm1883_vm1, %v1882_v14, %v4255_v58  ;;  %v1913_v14 = vrot.slane %v3630_v21, 2  ;;  %v1904_v54 = vsel %vm1883_vm1, %v1903_v1, %v3606_v51  ;;  %v1921_v59 = vrot.slane %v3650_v25, 5 }
 0x13c   :  { %v1887_v5 = vsel %vm1886_vm2, %v1885_v9, %v1884_v30  ;;  %v1906_v32 = vsel %vm1886_vm2, %v1905_v23, %v1904_v54  ;;  %v1918_v30 = vsel %vm1883_vm1, %v1917_v13, %v3637_v7  ;;  %v1923_v51 = vrot.slane %v3653_v55, 4 }
 0x13d   :  { %v1890_v45 = vsel %vm1889_vm3, %v1888_v61, %v1887_v5  ;;  %v1915_v61 = vrot.slane %v3633_v4, 1  ;;  %v1908_v21 = vsel %vm1889_vm3, %v1907_v18, %v1906_v32  ;;  %v1929_v7 = vrot.slane %v3662_v26, 1 }
 0x13e   :  { %v1893_v58 = vsel %vm1892_vm4, %v1891_v44, %v1890_v45  ;;  %v1919_v44 = vrot.slane %v3647_v37, 6  ;;  %v1910_v4 = vsel %vm1892_vm4, %v1909_v42, %v1908_v21  ;;  %v1931_v55 = vrot.slane %v3669_v15, 7 }
 0x13f   :  { %v1896_v9 = vsel %vm1895_vm5, %v1894_v36, %v1893_v58  ;;  %v1925_v36 = vrot.slane %v3656_v0, 3  ;;  %v1912_v37 = vsel %vm1895_vm5, %v1911_v38, %v1910_v4  ;;  %v1933_v0 = vrot.slane %v3672_v11, 6 }
 0x140   :  { %v1899_v47 = vsel %vm1898_vm6, %v1897_v43, %v1896_v9  ;;  %v1920_v16 = vsel %vm1886_vm2, %v1919_v44, %v1918_v30  ;;  %v1927_v43 = vrot.slane %v3659_v8, 2  ;;  %v1914_v5 = vsel %vm1898_vm6, %v1913_v14, %v1912_v37  ;;  %v4259_v37 = vld [vmem:[#allocation30_spill] sm:$0xff] }
 0x141   :  { %v1902_v34 = vsel %vm1901_vm7, %v1900_v39, %v1899_v47  ;;  %v1922_v25 = vsel %vm1889_vm3, %v1921_v59, %v1920_v16  ;;  %v1935_v8 = vrot.slane %v3675_v24, 5  ;;  %v1916_v45 = vsel %vm1901_vm7, %v1915_v61, %v1914_v5  ;;  %v4257_v16 = vld [vmem:[#allocation9_spill] sm:$0xff] }
 0x142   :  { %2009 = vst.msk [vmem:[%s3975_s4] sm:$0xff] %vm833_vm0, %v1902_v34  ;;  %v1924_v39 = vsel %vm1892_vm4, %v1923_v51, %v1922_v25  ;;  %v1932_v23 = vsel %vm1883_vm1, %v1931_v55, %v3666_v40  ;;  %v1937_v18 = vrot.slane %v3678_v19, 4  ;;  %v1939_v58 = vrot.slane %v3681_v17, 3  ;;  %2010 = vst.msk [vmem:[%s3975_s4 + $0x8] sm:$0xff] %vm833_vm0, %v1916_v45  ;;  %v4256_v51 = vld [vmem:[#allocation29_spill] sm:$0xff]  ;;  %v4260_v55 = vld [vmem:[#allocation31_spill] sm:$0xff] }
 0x143   :  { %v1926_v1 = vsel %vm1895_vm5, %v1925_v36, %v1924_v39  ;;  %v1934_v15 = vsel %vm1886_vm2, %v1933_v0, %v1932_v23  ;;  %v1941_v42 = vrot.slane %v3684_v28, 2  ;;  %v1943_v40 = vrot.slane %v3687_v63, 1  ;;  %v4261_v39 = vld [vmem:[#allocation48_spill] sm:$0xff] }
 0x144   :  { %v1928_v26 = vsel %vm1898_vm6, %v1927_v43, %v1926_v1  ;;  %v1936_v24 = vsel %vm1889_vm3, %v1935_v8, %v1934_v15  ;;  %v1945_v19 = vrot.slane %v3694_v35, 7  ;;  %v1947_v14 = vrot.slane %v3697_v3, 6  ;;  %v4258_v43 = vld [vmem:[#allocation28_spill] sm:$0xff]  ;;  %v4262_v1 = vld [vmem:[#allocation33_spill] sm:$0xff] }
 0x145   :  { %v1930_v11 = vsel %vm1901_vm7, %v1929_v7, %v1928_v26  ;;  %v1938_v38 = vsel %vm1892_vm4, %v1937_v18, %v1936_v24  ;;  %v1949_v17 = vrot.slane %v3700_v46, 5  ;;  %v1951_v28 = vrot.slane %v3703_v29, 4  ;;  %v4263_v26 = vld [vmem:[#allocation32_spill] sm:$0xff] }
 0x146   :  { %2011 = vst.msk [vmem:[%s3975_s4 + $0x10] sm:$0xff] %vm833_vm0, %v1930_v11  ;;  %v1940_v9 = vsel %vm1895_vm5, %v1939_v58, %v1938_v38  ;;  %v1946_v63 = vsel %vm1883_vm1, %v1945_v19, %v3691_v50  ;;  %v1953_v35 = vrot.slane %v3706_v53, 3  ;;  %v1955_v54 = vrot.slane %v3709_v31, 2 }
 0x147   :  { %v1942_v3 = vsel %vm1898_vm6, %v1941_v42, %v1940_v9  ;;  %v1948_v46 = vsel %vm1886_vm2, %v1947_v14, %v1946_v63  ;;  %v1957_v29 = vrot.slane %v3712_v20, 1  ;;  %v1959_v61 = vrot.slane %v3721_v2, 7  ;;  %v4264_v42 = vld [vmem:[#allocation34_spill] sm:$0xff] }
 0x148   :  { %v1944_v13 = vsel %vm1901_vm7, %v1943_v40, %v1942_v3  ;;  %v1950_v47 = vsel %vm1889_vm3, %v1949_v17, %v1948_v46  ;;  %v1961_v32 = vrot.slane %v3724_v52, 6  ;;  %v1963_v50 = vrot.slane %v3727_v22, 5 }
 0x149   :  { %v1952_v53 = vsel %vm1892_vm4, %v1951_v28, %v1950_v47  ;;  %v1960_v31 = vsel %vm1883_vm1, %v1959_v61, %v3716_v49  ;;  %v1965_v44 = vrot.slane %v3730_v60, 4  ;;  %v1967_v59 = vrot.slane %v3733_v27, 3  ;;  %2012 = vst.msk [vmem:[%s3975_s4 + $0x18] sm:$0xff] %vm833_vm0, %v1944_v13 }
 0x14a   :  { %v1954_v20 = vsel %vm1895_vm5, %v1953_v35, %v1952_v53  ;;  %v1962_v2 = vsel %vm1886_vm2, %v1961_v32, %v1960_v31  ;;  %v1969_v52 = vrot.slane %v3736_v62, 2  ;;  %v1971_v22 = vrot.slane %v3739_v57, 1 }
 0x14b   :  { %v1956_v34 = vsel %vm1898_vm6, %v1955_v54, %v1954_v20  ;;  %v1964_v49 = vsel %vm1889_vm3, %v1963_v50, %v1962_v2  ;;  %v1973_v60 = vrot.slane %v3748_v12, 7  ;;  %v1975_v27 = vrot.slane %v3753_v56, 6 }
 0x14c   :  { %v1958_v21 = vsel %vm1901_vm7, %v1957_v29, %v1956_v34  ;;  %v1966_v30 = vsel %vm1892_vm4, %v1965_v44, %v1964_v49  ;;  %v1977_v4 = vrot.slane %v4256_v51, 5  ;;  %v1979_v36 = vrot.slane %v4257_v16, 4 }
 0x14d   :  { %v1968_v62 = vsel %vm1895_vm5, %v1967_v59, %v1966_v30  ;;  %v1974_v57 = vsel %vm1883_vm1, %v1973_v60, %v4258_v43  ;;  %v1981_v25 = vrot.slane %v4259_v37, 3  ;;  %v1983_v7 = vrot.slane %v3773_v33, 2  ;;  %2013 = vst.msk [vmem:[%s3975_s4 + $0x20] sm:$0xff] %vm833_vm0, %v1958_v21 }
 0x14e   :  { %v1970_v12 = vsel %vm1898_vm6, %v1969_v52, %v1968_v62  ;;  %v1976_v56 = vsel %vm1886_vm2, %v1975_v27, %v1974_v57  ;;  %v1985_v5 = vrot.slane %v4260_v55, 1  ;;  %v1987_v0 = vrot.slane %v4261_v39, 7 }
 0x14f   :  { %v1972_v8 = vsel %vm1901_vm7, %v1971_v22, %v1970_v12  ;;  %v1978_v45 = vsel %vm1889_vm3, %v1977_v4, %v1976_v56  ;;  %v1989_v23 = vrot.slane %v4262_v1, 6  ;;  %v1991_v33 = vrot.slane %v3797_v41, 5 }
 0x150   :  { %v1980_v18 = vsel %vm1892_vm4, %v1979_v36, %v1978_v45  ;;  %v1988_v15 = vsel %vm1883_vm1, %v1987_v0, %v4263_v26  ;;  %v1993_v58 = vrot.slane %v3802_v10, 4  ;;  %v1995_v11 = vrot.slane %v4264_v42, 3  ;;  %2014 = vst.msk [vmem:[%s3975_s4 + $0x28] sm:$0xff] %vm833_vm0, %v1972_v8 }
 0x151   :  { %v1982_v24 = vsel %vm1895_vm5, %v1981_v25, %v1980_v18  ;;  %v1990_v40 = vsel %vm1886_vm2, %v1989_v23, %v1988_v15  ;;  %v1997_v41 = vrot.slane %v3812_v48, 2  ;;  %v1999_v14 = vrot.slane %v3817_v6, 1 }
 0x152   :  { %v1984_v19 = vsel %vm1898_vm6, %v1983_v7, %v1982_v24  ;;  %v1992_v38 = vsel %vm1889_vm3, %v1991_v33, %v1990_v40 }
 0x153   :  { %v1986_v10 = vsel %vm1901_vm7, %v1985_v5, %v1984_v19  ;;  %v1994_v17 = vsel %vm1892_vm4, %v1993_v58, %v1992_v38 }
 0x154   :  { %v1996_v28 = vsel %vm1895_vm5, %v1995_v11, %v1994_v17  ;;  %2015 = vst.msk [vmem:[%s3975_s4 + $0x30] sm:$0xff] %vm833_vm0, %v1986_v10 }
 0x155   :  { %v1998_v9 = vsel %vm1898_vm6, %v1997_v41, %v1996_v28 }
 0x156   :  { %v2000_v48 = vsel %vm1901_vm7, %v1999_v14, %v1998_v9 }
 0x157   :  { %2016 = vst.msk [vmem:[%s3975_s4 + $0x38] sm:$0xff] %vm833_vm0, %v2000_v48 }

// kernel: s2tla_forward.6
= control target key start
LH: loop header
LB: loop body
LE: loop exit
PB: predicated region body
PF: predicated region fallthrough
CT: control target
= control target key end

     0   :  { %11 = vsyncpa [#allocation4], 0  ;;  %s1301_s21 = smov 0   ;;  %s1448_s0 = inlined_call_operand.vmem [shape: f32[2,32,64], index: 0, kind: input, shape index: {}]   ;;  %s1449_s1 = inlined_call_operand.vmem [shape: f32[32,32], index: 1, kind: input, shape index: {}]   ;;  %s1450_s2 = inlined_call_operand.vmem [shape: f32[32,1], index: 2, kind: input, shape index: {}]   ;;  %s1451_s3 = inlined_call_operand.vmem [shape: f32[96,32], index: 3, kind: input, shape index: {}]   ;;  %s1452_s4 = inlined_call_operand.vmem [shape: f32[4], index: 4, kind: input, shape index: {}]   ;;  %s1453_s5 = inlined_call_operand.vmem [shape: f32[32,32], index: 5, kind: input, shape index: {}]   ;;  %s1454_s6 = inlined_call_operand.vmem [shape: f32[2,32,64], index: 6, kind: output, shape index: {}]  }
   0x1 LB: > { %s1307_s22 = sadd.s32 4294967295, %s1255_s21   ;;  %p1005_p0 = scmp.ge.s32.totalorder %s1255_s21, 1  ;;  %s1255_s21 = sphi %s1301_s21, %s17_s21  }
   0x2   : > { %p179_p1 = scmp.lt.s32.totalorder %s1255_s21, 3  ;;  %s201_s25 = sshll.u32 %s1452_s4, 4  ;;  %s202_s25 = int_to_ptr.vmem [resolvable:$true] %s201_s25 }
   0x3   : > { %p1193_p3 = scmp.eq.s32.totalorder %s1307_s22, 0  ;;  %s1226_s27 = scalar_lea.vmem %s202_s25, 16 }
   0x4   : > { %p1314_p2 = pnand %p1005_p0, %p179_p1  ;;  %p1227_p6 = scmp.ne.s32.totalorder %s202_s25, %s1226_s27 }
   0x5   : > { %p1234_p10 = scmp.lt.s32.totalorder %s202_s25, %s202_s25  ;;  %p1235_p11 = scmp.lt.s32.totalorder %s1226_s27, %s1226_s27 }
   0x6   : > { %p1189_p4 = pneg %p1314_p2 }
   0x7   : > { %p1236_p12 = por %p1235_p11, %p1234_p10 }
   0x8   : > { %p1190_p5 = pnand %p1193_p3, %p1189_p4 }
   0xa   : > { %p1228_p7 = pneg %p1190_p5 }
   0xc   : > { %p1229_p8 = pnand %p1228_p7, %p1227_p6 }
   0xe   : > { %p1230_p9 = pneg %p1229_p8 }
  0x10   : > { %p1237_p13 = pnand %p1236_p12, %p1230_p9 }
  0x12   : > { %1240 = shalt.err (!%p1237_p13)
}
  0x13   : > { %s1261_s28 = smov [#allocation3]   ;;  %225 = sbr.rel (%p1314_p2) target bundleno = 1619 (0x653), region = 44 }
  0x14   : > { %1192 = dma.vmem_to_smem (!%p1190_p5), %s202_s25, 16, %s1261_s28, [#allocation4]  }
  0x1a   : > { %1250 = dma.done.wait (%p1193_p3), [#allocation4], 16  }
  0x1b   : > { %1252 = vsyncadd (%p1193_p3), [#allocation4], 4294967280 }
  0x1c   : > { %231 = sfence }
  0x1d   : > { %p256_p0 = scmp.lt.s32.totalorder %s1307_s22, 1  ;;  %v266_v0 = vld [vmem:[%s1449_s1] sm:$0xff]  ;;  %vm298_vm0 = vcmask 261120   ;;  %v268_v1 = vld [vmem:[%s1449_s1 + $0x10] sm:$0xff]  ;;  %v1262_v4 = vmov 0   ;;  %v277_v5 = vld [vmem:[%s1450_s2 + $0x18] sm:$0xff] }
  0x1e   : > { %1080 = vmatprep.mubr.msk.f32.mxu0 %vm298_vm0, %v266_v0  ;;  %1083 = vmatprep.mubr.msk.f32.mxu1 %vm298_vm0, %v268_v1  ;;  %v276_v2 = vld [vmem:[%s1450_s2 + $0x10] sm:$0xff]  ;;  %v274_v3 = vld [vmem:[%s1450_s2] sm:$0xff]  ;;  %v275_v6 = vld [vmem:[%s1450_s2 + $0x8] sm:$0xff]  ;;  %s1375_s29 = smov 0  }
  0x1f   : > { %s1457_s22 = smov (!%p256_p0, %s1307_s22), 1  ;;  %1217 = vset.pattern.permute.xlu1 %v1262_v4  ;;  %1216 = vset.pattern.permute.xlu0 %v1262_v4  ;;  %v267_v13 = vld [vmem:[%s1449_s1 + $0x8] sm:$0xff]  ;;  %v269_v14 = vld [vmem:[%s1449_s1 + $0x18] sm:$0xff] }
  0x20   : > { %290 = vperm.xlu1 %1217, %v276_v2   ;;  %280 = vperm.xlu0 %1216, %v274_v3   ;;  %s1035_s13 = sshll.u32 %s1457_s22, 5 }
  0x21   : > { %s260_s20 = scalar_lea.vmem %s1448_s0, %s1035_s13  ;;  %s1357_s25 = scalar_lea.vmem %s1454_s6, %s1035_s13 }
  0x22   : > { %v270_v7 = vld [vmem:[%s260_s20] sm:$0xff]  ;;  %v271_v8 = vld [vmem:[%s260_s20 + $0x8] sm:$0xff]  ;;  %v272_v9 = vld [vmem:[%s260_s20 + $0x10] sm:$0xff] }
  0x23   : > { %v1143_v10 = vpack.c.bf16 %v271_v8, %v270_v7  ;;  %v273_v11 = vld [vmem:[%s260_s20 + $0x18] sm:$0xff] }
  0x24   : > { %295 = vperm.xlu1 %1217, %v277_v5   ;;  %285 = vperm.xlu0 %1216, %v275_v6   ;;  %v1147_v12 = vpack.c.bf16 %v273_v11, %v272_v9 }
  0x25   : > { %1144 = vmatprep.subr.bf16.mxu0 %v1143_v10  ;;  %1177 = vmatprep.subr.bf16.mxu1 %v1143_v10 }
  0x26   : > { %1146 = vmatpush3.bf16.msra.mxu0 %v1143_v10  ;;  %1179 = vmatpush3.bf16.msra.mxu1 %v1143_v10 }
  0x27   : > { %1148 = vmatprep.subr.bf16.mxu0 %v1147_v12  ;;  %1178 = vmatprep.subr.bf16.mxu1 %v1147_v12 }
  0x2a   : > { %1150 = vmatpush3.bf16.msra.mxu0 %v1147_v12  ;;  %1180 = vmatpush3.bf16.msra.mxu1 %v1147_v12 }
  0x2d   : > { %1081 = vmatmul.mubr.msk.f32.vlgmr.msra.gmra.mrb[0].mxu0 %vm298_vm0, %v267_v13  ;;  %1084 = vmatmul.mubr.msk.f32.vlgmr.msra.gmra.mrb[0].mxu1 %vm298_vm0, %v269_v14 }
  0x9f   : > { %v291_v15 = vpop.permute.xlu1 %290  ;;  %v281_v16 = vpop.permute.xlu0 %280 }
  0xa3   : > { %v296_v17 = vpop.permute.xlu1 %295  ;;  %v286_v18 = vpop.permute.xlu0 %285 }
 0x100   : > { %v1082_v19 = vpop.f32.mrb[0].mxu0  ;;  %v1085_v20 = vpop.f32.mrb[0].mxu1 }
 0x101   : > { %v1367_v21 = vadd.f32 %v1082_v19, %v286_v18  ;;  %v1369_v22 = vadd.f32 %v1085_v20, %v296_v17  ;;  %v377_v23 = vpop.f32.mrb[1].mxu0  ;;  %v387_v24 = vpop.f32.mrb[1].mxu1 }
 0x102   : > { %v1371_v25 = vadd.f32 %v377_v23, %v281_v16  ;;  %v1373_v26 = vadd.f32 %v387_v24, %v291_v15 }
 0x103 LB: >> { %v1263_v28 = vmov 0.0|0.0   ;;  %s1018_s30 = sshll.u32 %s1259_s29, 3  ;;  %vm1264_vm1 = vmmov 0   ;;  %v1265_v30 = vmov 0.0   ;;  %vm631_vm2 = vcmask 523264   ;;  %s721_s10 = sld [smem:[#allocation3 + %s1259_s29]]  ;;  %s1259_s29 = sphi %s1375_s29, %s401_s29  }
 0x104   : >> { %v1152_v27 = vpack.c.bf16 %v1367_v21, %v1371_v25  ;;  %1157 = vmatprep.subr.bf16.mxu1 %v1263_v28  ;;  %1151 = vmatprep.subr.bf16.mxu0 %v1263_v28  ;;  %v1155_v29 = vpack.c.bf16 %v1369_v22, %v1373_v26  ;;  %s1390_s9 = scalar_lea.vmem %s1451_s3, %s1018_s30  ;;  %vm724_vm3 = vcmask 64512   ;;  %s809_s11 = scalar_lea.vmem [#allocation2], %s1018_s30 }
 0x105   : >> { %1105 = vmatprep.mubr.msk.f32.mxu1 %vm1264_vm1, %v1265_v30  ;;  %1094 = vmatprep.mubr.msk.f32.mxu0 %vm1264_vm1, %v1265_v30  ;;  %v1020_v31 = vld [vmem:[%s1390_s9 + $0x20] sm:$0xff]  ;;  %s401_s29 = sadd.s32 1, %s1259_s29  }
 0x106   : >> { %1159 = vmatpush3.bf16.msra.mxu1 %v1152_v27  ;;  %1153 = vmatpush3.bf16.msra.mxu0 %v1152_v27  ;;  %v404_v32 = vld [vmem:[%s1390_s9] sm:$0xff]  ;;  %p398_p1 = scmp.ge.s32.totalorder %s401_s29, 4  }
 0x107   : >> { %1160 = vmatprep.subr.bf16.mxu1 %v1263_v28  ;;  %1154 = vmatprep.subr.bf16.mxu0 %v1263_v28  ;;  %v1022_v49 = vld [vmem:[%s1390_s9 + $0x40] sm:$0xff]  ;;  %v813_v9 = vld [vmem:[%s1453_s5 + $0x10] sm:$0xff] (%p398_p1)  ;;  %v812_v11 = vld [vmem:[%s1453_s5 + $0x8] sm:$0xff] (%p398_p1) }
 0x108   : > { %v811_v8 = vld [vmem:[%s1453_s5] sm:$0xff] (%p398_p1)  ;;  %v814_v12 = vld [vmem:[%s1453_s5 + $0x18] sm:$0xff] (%p398_p1) }
 0x109   : >> { %v722_v50 = vstv %s721_s10 }
 0x10a   : >> { %1162 = vmatpush3.bf16.msra.mxu1 %v1155_v29  ;;  %1156 = vmatpush3.bf16.msra.mxu0 %v1155_v29 }
 0x10b   : >> { %1119 = vmatprep.subr.mxu1 %v1265_v30  ;;  %1163 = vmatprep.subr.bf16.mxu0 %v1263_v28 }
 0x10d   : >> { %1106 = vmatmul.mubr.msk.f32.vlgmr.msra.gmra.mrb[0].mxu1 %vm298_vm0, %v1020_v31  ;;  %1095 = vmatmul.mubr.msk.f32.vlgmr.msra.gmra.mrb[0].mxu0 %vm298_vm0, %v404_v32 }
 0x10e   : >> { %1121 = vmatprep.mubr.msk.f32.mxu1 %vm1264_vm1, %v1265_v30  ;;  %1165 = vmatpush3.bf16.msra.mxu0 %v1152_v27 }
 0x10f   : >> { %1166 = vmatprep.subr.bf16.mxu0 %v1263_v28  ;;  %1116 = vmatprep.mubr.msk.f32.mxu0 %vm1264_vm1, %v1265_v30 }
 0x112   : >> { %1168 = vmatpush3.bf16.msra.mxu0 %v1155_v29 }
 0x115   : >> { %1117 = vmatmul.mubr.msk.f32.vlgmr.msra.gmra.mrb[2].mxu0 %vm298_vm0, %v1022_v49 }
 0x116   : > { %1137 = vmatprep.mubr.msk.f32.mxu0 (%p398_p1), %vm298_vm0, %v811_v8 }
 0x1e0   : >> { %v553_v33 = vpop.f32.mrb[0].mxu1  ;;  %v480_v34 = vpop.f32.mrb[0].mxu0 }
 0x1e1   : >> { %v1107_v35 = vpop.f32.mrb[1].mxu1  ;;  %v630_v36 = vmul.f32 %v480_v34, %v480_v34  ;;  %v638_v37 = vmul.f32 %v553_v33, %v553_v33  ;;  %v1096_v38 = vpop.f32.mrb[1].mxu0 }
 0x1e3   : >> { %v639_v39 = vsel %vm631_vm2, %v638_v37, 0.0  ;;  %v632_v40 = vsel %vm631_vm2, %v630_v36, 0.0 }
 0x1e4   : >> { %640 = vadd.xlane.f32.xlu0 %v639_v39 }
 0x1e8   : >> { %633 = vadd.xlane.f32.xlu0 %v632_v40  ;;  %v626_v60 = vpop.f32.mrb[2].mxu0 }
 0x1e9   : >> { %v1118_v61 = vpop.f32.mrb[3].mxu0 }
 0x271   : >> { %v641_v41 = vpop.xlane.xlu0 %640 }
 0x272   : >> { %v642_v42 = vmax.f32 %v641_v41, 1e-24 }
 0x274   : >> { %1218 = vrsqrt.f32 %v642_v42 }
 0x275   : >> { %v634_v43 = vpop.xlane.xlu0 %633 }
 0x276   : >> { %v635_v44 = vmax.f32 %v634_v43, 1e-24 }
 0x278   : >> { %1220 = vrsqrt.f32 %v635_v44 }
 0x27e   : >> { %v1219_v45 = vpop.eup %1218 }
 0x27f   : >> { %v644_v46 = vmul.f32 %v1219_v45, %v553_v33 }
 0x281   : >> { %1120 = vmatpush3.xpose.msk.msra.mxu1 %vm631_vm2, %v644_v46 }
 0x282   : >> { %v1221_v47 = vpop.eup %1220  ;;  %1124 = vmatprep.subr.mxu1 %v1265_v30 }
 0x283   : >> { %v637_v48 = vmul.f32 %v1221_v47, %v480_v34 }
 0x285   : >> { %1122 = vmatmul.mubr.msk.f32.vlgmr.msra.gmra.mrb[2].mxu1 %vm631_vm2, %v637_v48 }
 0x286   : >> { %1126 = vmatprep.mubr.msk.f32.mxu1 %vm1264_vm1, %v1265_v30  ;;  %1125 = vmatpush3.msra.mxu1 %v626_v60 }
 0x358   : >> { %v717_v51 = vpop.f32.mrb[2].mxu1 }
 0x359   : >> { %v723_v52 = vmul.f32 %v722_v50, %v717_v51  ;;  %v1123_v53 = vpop.f32.mrb[3].mxu1 }
 0x35b   : >> { %v725_v54 = vsel %vm724_vm3, %v723_v52, -inf }
 0x35c   : >> { %726 = vmax.xlane.f32.xlu1 %v725_v54 }
 0x3e9   : >> { %v727_v55 = vpop.xlane.xlu1 %726 }
 0x3ea   : >> { %v728_v56 = vsub.f32 %v723_v52, %v727_v55 }
 0x3ec   : >> { %v729_v57 = vmul.f32 1.442695, %v728_v56 }
 0x3ee   : >> { %1222 = vpow2.f32 %v729_v57 }
 0x3f8   : >> { %v1223_v58 = vpop.eup %1222 }
 0x3f9   : >> { %v731_v59 = vsel %vm724_vm3, %v1223_v58, 0.0 }
 0x3fa   : >> { %732 = vadd.xlane.f32.xlu1 %v731_v59 }
 0x487   : >> { %v733_v62 = vpop.xlane.xlu1 %732 }
 0x488   : >> { %1224 = vrcp.f32 %v733_v62 }
 0x492   : >> { %v1225_v63 = vpop.eup %1224 }
 0x493   : >> { %v735_v0 = vmul.f32 %v1225_v63, %v1223_v58 }
 0x495   : >> { %1127 = vmatmul.mubr.msk.f32.vlgmr.msra.gmra.mrb[4].mxu1 %vm724_vm3, %v735_v0 }
 0x496   : > { %1140 = vmatprep.mubr.msk.f32.mxu1 (%p398_p1), %vm298_vm0, %v813_v9 }
 0x563   : > { %400 = sbr.rel (!%p398_p1) target bundleno = 259 (0x103), region = 90 }
 0x568   : >> { %v805_v1 = vpop.f32.mrb[4].mxu1 }
 0x569   : >> { %810 = vst.msk [vmem:[%s809_s11] sm:$0xff] %vm631_vm2, %v805_v1  ;;  %v1128_v2 = vpop.f32.mrb[5].mxu1 }
 0x570   : > { %v815_v3 = vld [vmem:[#allocation2] sm:$0xff]  ;;  %v816_v4 = vld [vmem:[#allocation2 + $0x8] sm:$0xff]  ;;  %v817_v5 = vld [vmem:[#allocation2 + $0x10] sm:$0xff] }
 0x571   : > { %v1169_v6 = vpack.c.bf16 %v816_v4, %v815_v3  ;;  %v818_v7 = vld [vmem:[#allocation2 + $0x18] sm:$0xff] }
 0x572   : > { %v1173_v10 = vpack.c.bf16 %v818_v7, %v817_v5 }
 0x573   : > { %1170 = vmatprep.subr.bf16.mxu0 %v1169_v6  ;;  %1181 = vmatprep.subr.bf16.mxu1 %v1169_v6 }
 0x574   : > { %1172 = vmatpush3.bf16.msra.mxu0 %v1169_v6  ;;  %1183 = vmatpush3.bf16.msra.mxu1 %v1169_v6 }
 0x575   : > { %1174 = vmatprep.subr.bf16.mxu0 %v1173_v10  ;;  %1182 = vmatprep.subr.bf16.mxu1 %v1173_v10 }
 0x578   : > { %1176 = vmatpush3.bf16.msra.mxu0 %v1173_v10  ;;  %1184 = vmatpush3.bf16.msra.mxu1 %v1173_v10 }
 0x57b   : > { %1138 = vmatmul.mubr.msk.f32.vlgmr.msra.gmra.mrb[0].mxu0 %vm298_vm0, %v812_v11  ;;  %1141 = vmatmul.mubr.msk.f32.vlgmr.msra.gmra.mrb[0].mxu1 %vm298_vm0, %v814_v12 }
 0x64e   : > { %v1139_v13 = vpop.f32.mrb[0].mxu0  ;;  %v1142_v14 = vpop.f32.mrb[0].mxu1 }
 0x64f   : > { %v903_v15 = vadd.f32 %v1139_v13, %v1367_v21  ;;  %v913_v16 = vadd.f32 %v1142_v14, %v1369_v22  ;;  %v897_v17 = vpop.f32.mrb[1].mxu0  ;;  %v907_v18 = vpop.f32.mrb[1].mxu1 }
 0x650   : > { %v898_v19 = vadd.f32 %v897_v17, %v1371_v25  ;;  %v908_v20 = vadd.f32 %v907_v18, %v1373_v26 }
 0x651   : > { %918 = vst.msk [vmem:[%s1357_s25 + $0x8] sm:$0xff] %vm631_vm2, %v903_v15  ;;  %920 = vst.msk [vmem:[%s1357_s25 + $0x18] sm:$0xff] %vm631_vm2, %v913_v16 }
 0x652   : > { %917 = vst.msk [vmem:[%s1357_s25] sm:$0xff] %vm631_vm2, %v898_v19  ;;  %919 = vst.msk [vmem:[%s1357_s25 + $0x10] sm:$0xff] %vm631_vm2, %v908_v20 }
 0x653 PF: > { %s17_s21 = sadd.s32 1, %s1255_s21  }
 0x654   : > { %p14_p2 = scmp.ge.s32.totalorder %s17_s21, 4  }
 0x656   :  { %16 = sbr.rel (!%p14_p2) target bundleno = 1 (0x1), region = 101 }
 0x65d   :  { %942 = vsyncpa [#allocation4], 1 }
 0x65e   :  { %944 = vsyncpa [#allocation4 + $0x1], 1 }

// kernel: s2tla_forward.7
= control target key start
LH: loop header
LB: loop body
LE: loop exit
PB: predicated region body
PF: predicated region fallthrough
CT: control target
= control target key end

     0   :  { %s1560_s21 = smov 0   ;;  %s1562_s22 = smov 0   ;;  %s1765_s0 = inlined_call_operand.vmem [shape: f32[2,32,64], index: 0, kind: input, shape index: {}]   ;;  %s1766_s1 = inlined_call_operand.vmem [shape: f32[2,32,64], index: 1, kind: input, shape index: {}]   ;;  %s1767_s2 = inlined_call_operand.vmem [shape: f32[2,32,1], index: 2, kind: input, shape index: {}]   ;;  %s1768_s3 = inlined_call_operand.vmem [shape: f32[2,32,1], index: 3, kind: input, shape index: {}]   ;;  %s1769_s4 = inlined_call_operand.vmem [shape: f32[2,32,1], index: 4, kind: input, shape index: {}]   ;;  %s1770_s5 = inlined_call_operand.vmem [shape: f32[2,32,1], index: 5, kind: input, shape index: {}]   ;;  %s1771_s6 = inlined_call_operand.vmem [shape: f32[32,1], index: 6, kind: input, shape index: {}]   ;;  %s1772_s7 = inlined_call_operand.vmem [shape: f32[32,1], index: 7, kind: input, shape index: {}]   ;;  %s1773_s8 = inlined_call_operand.vmem [shape: f32[64,32], index: 8, kind: input, shape index: {}]   ;;  %s1774_s9 = inlined_call_operand.vmem [shape: f32[64,1], index: 9, kind: input, shape index: {}]   ;;  %s1775_s10 = inlined_call_operand.vmem [shape: f32[32,64], index: 10, kind: input, shape index: {}]   ;;  %s1776_s11 = inlined_call_operand.vmem [shape: f32[32,1], index: 11, kind: input, shape index: {}]   ;;  %s1777_s12 = inlined_call_operand.vmem [shape: f32[2,32,64], index: 12, kind: output, shape index: {}]  }
   0x1   :  { %s1564_s23 = smov 0  }
   0x2 LB: > { %s34_s24 = sadd.s32 1, %s1488_s22  ;;  %p1299_p0 = scmp.ge.s32.totalorder %s1492_s23, 1  ;;  %s1492_s23 = sphi %s1564_s23, %s22_s23   ;;  %s1488_s22 = sphi %s1562_s22, %s1779_s22   ;;  %s1484_s21 = sphi %s1560_s21, %s1778_s21  }
   0x3   : > { %p36_p1 = scmp.ge.s32.totalorder %s34_s24, 2  ;;  %p436_p2 = scmp.lt.s32.totalorder %s1492_s23, 3 }
   0x5   : > { %s1781_s24 = smov (%p36_p1, %s34_s24), 0  ;;  %p437_p3 = pnand %p1299_p0, %p436_p2 }
   0x6   : > { %p512_p4 = scmp.lt.s32.totalorder (!%p437_p3), %s1484_s21, 1  ;;  %v1494_v0 = vmov (!%p437_p3), 0   ;;  %v644_v5 = vld [vmem:[%s1771_s6 + $0x8] sm:$0xff] (!%p437_p3)  ;;  %v643_v6 = vld [vmem:[%s1771_s6] sm:$0xff] (!%p437_p3)  ;;  %v646_v9 = vld [vmem:[%s1771_s6 + $0x18] sm:$0xff] (!%p437_p3)  ;;  %vm815_vm0 = vcmask (!%p437_p3), 261120  }
   0x7   : > { %440 = sbr.rel (%p437_p3) target bundleno = 688 (0x2b0), region = 68  ;;  %1451 = vset.pattern.permute.xlu1 (!%p437_p3), %v1494_v0  ;;  %1450 = vset.pattern.permute.xlu0 (!%p437_p3), %v1494_v0  ;;  %v672_v7 = vld [vmem:[%s1772_s7 + $0x8] sm:$0xff] (!%p437_p3)  ;;  %v671_v8 = vld [vmem:[%s1772_s7] sm:$0xff] (!%p437_p3)  ;;  %v645_v10 = vld [vmem:[%s1771_s6 + $0x10] sm:$0xff] (!%p437_p3)  ;;  %vm596_vm1 = vcmask (!%p437_p3), 523264  }
   0x8   : > { %v674_v15 = vld [vmem:[%s1772_s7 + $0x18] sm:$0xff] (!%p437_p3)  ;;  %v673_v16 = vld [vmem:[%s1772_s7 + $0x10] sm:$0xff] (!%p437_p3)  ;;  %v768_v25 = vld [vmem:[%s1774_s9 + $0x8] sm:$0xff] (!%p437_p3) }
   0x9   : > { %v767_v26 = vld [vmem:[%s1774_s9] sm:$0xff] (!%p437_p3)  ;;  %v770_v27 = vld [vmem:[%s1774_s9 + $0x18] sm:$0xff] (!%p437_p3)  ;;  %v769_v28 = vld [vmem:[%s1774_s9 + $0x10] sm:$0xff] (!%p437_p3) }
   0xa   : > { %v772_v29 = vld [vmem:[%s1774_s9 + $0x28] sm:$0xff] (!%p437_p3)  ;;  %v771_v30 = vld [vmem:[%s1774_s9 + $0x20] sm:$0xff] (!%p437_p3)  ;;  %v774_v31 = vld [vmem:[%s1774_s9 + $0x38] sm:$0xff] (!%p437_p3) }
   0xb   : > { %v773_v32 = vld [vmem:[%s1774_s9 + $0x30] sm:$0xff] (!%p437_p3)  ;;  %v990_v33 = vld [vmem:[%s1776_s11 + $0x8] sm:$0xff] (!%p437_p3)  ;;  %v989_v34 = vld [vmem:[%s1776_s11] sm:$0xff] (!%p437_p3) }
   0xc   : > { %v992_v35 = vld [vmem:[%s1776_s11 + $0x18] sm:$0xff] (!%p437_p3)  ;;  %v991_v36 = vld [vmem:[%s1776_s11 + $0x10] sm:$0xff] (!%p437_p3)  ;;  %v759_v41 = vld [vmem:[%s1773_s8] sm:$0xff] (!%p437_p3) }
   0xd   : > { %1367 = vmatprep.mubr.msk.f32.mxu0 (!%p437_p3), %vm815_vm0, %v759_v41 }
   0xe   : > { %s1783_s21 = smov (!%p512_p4, %s1484_s21), 1 }
   0xf   : > { %s1578_s25 = sshll.u32 %s1783_s21, 5 }
  0x10   : > { %s532_s28 = scalar_lea.vmem %s1767_s2, %s1578_s25  ;;  %s542_s21 = scalar_lea.vmem %s1769_s4, %s1578_s25 }
  0x11   : > { %v562_v1 = vld [vmem:[%s532_s28 + $0x10] sm:$0xff]  ;;  %v560_v2 = vld [vmem:[%s532_s28] sm:$0xff]  ;;  %v563_v3 = vld [vmem:[%s532_s28 + $0x18] sm:$0xff]  ;;  %s537_s18 = scalar_lea.vmem %s1768_s3, %s1578_s25  ;;  %s547_s17 = scalar_lea.vmem %s1770_s5, %s1578_s25 }
  0x12   : > { %580 = vperm.xlu1 %1451, %v562_v1   ;;  %570 = vperm.xlu0 %1450, %v560_v2   ;;  %v561_v4 = vld [vmem:[%s532_s28 + $0x8] sm:$0xff]  ;;  %v699_v12 = vld [vmem:[%s542_s21] sm:$0xff]  ;;  %v702_v19 = vld [vmem:[%s542_s21 + $0x18] sm:$0xff]  ;;  %s527_s27 = scalar_lea.vmem %s1766_s1, %s1578_s25  ;;  %s519_s29 = scalar_lea.vmem %s1765_s0, %s1578_s25 }
  0x13   : > { %v700_v11 = vld [vmem:[%s542_s21 + $0x8] sm:$0xff]  ;;  %v703_v14 = vadd.f32 1.0, %v699_v12  ;;  %v731_v18 = vld [vmem:[%s537_s18] sm:$0xff]  ;;  %v701_v20 = vld [vmem:[%s542_s21 + $0x10] sm:$0xff]  ;;  %v706_v21 = vadd.f32 1.0, %v702_v19 }
  0x14   : > { %v704_v13 = vadd.f32 1.0, %v700_v11  ;;  %v732_v17 = vld [vmem:[%s537_s18 + $0x8] sm:$0xff]  ;;  %v705_v22 = vadd.f32 1.0, %v701_v20  ;;  %v734_v23 = vld [vmem:[%s537_s18 + $0x18] sm:$0xff]  ;;  %v733_v24 = vld [vmem:[%s537_s18 + $0x10] sm:$0xff] }
  0x15   : > { %v1111_v37 = vld [vmem:[%s547_s17 + $0x8] sm:$0xff]  ;;  %v1110_v38 = vld [vmem:[%s547_s17] sm:$0xff]  ;;  %v1113_v39 = vld [vmem:[%s547_s17 + $0x18] sm:$0xff] }
  0x16   : > { %585 = vperm.xlu1 %1451, %v563_v3   ;;  %575 = vperm.xlu0 %1450, %v561_v4   ;;  %v1112_v40 = vld [vmem:[%s547_s17 + $0x10] sm:$0xff]  ;;  %v564_v42 = vld [vmem:[%s527_s27] sm:$0xff]  ;;  %v567_v50 = vld [vmem:[%s527_s27 + $0x18] sm:$0xff] }
  0x17   : > { %v566_v43 = vld [vmem:[%s527_s27 + $0x10] sm:$0xff]  ;;  %v556_v46 = vld [vmem:[%s519_s29] sm:$0xff]  ;;  %v565_v51 = vld [vmem:[%s527_s27 + $0x8] sm:$0xff]  ;;  %s555_s27 = scalar_lea.vmem %s1777_s12, %s1578_s25 }
  0x18   : > { %v558_v49 = vld [vmem:[%s519_s29 + $0x10] sm:$0xff]  ;;  %v559_v55 = vld [vmem:[%s519_s29 + $0x18] sm:$0xff]  ;;  %v557_v56 = vld [vmem:[%s519_s29 + $0x8] sm:$0xff] }
  0x1a   : > { %654 = vperm.xlu1 %1451, %v644_v5   ;;  %649 = vperm.xlu0 %1450, %v643_v6  }
  0x1e   : > { %682 = vperm.xlu1 %1451, %v672_v7   ;;  %677 = vperm.xlu0 %1450, %v671_v8  }
  0x22   : > { %664 = vperm.xlu1 %1451, %v646_v9   ;;  %659 = vperm.xlu0 %1450, %v645_v10  }
  0x26   : > { %714 = vperm.xlu1 %1451, %v704_v13   ;;  %709 = vperm.xlu0 %1450, %v703_v14  }
  0x2a   : > { %692 = vperm.xlu1 %1451, %v674_v15   ;;  %687 = vperm.xlu0 %1450, %v673_v16  }
  0x2e   : > { %742 = vperm.xlu1 %1451, %v732_v17   ;;  %737 = vperm.xlu0 %1450, %v731_v18  }
  0x32   : > { %724 = vperm.xlu1 %1451, %v706_v21   ;;  %719 = vperm.xlu0 %1450, %v705_v22  }
  0x36   : > { %752 = vperm.xlu1 %1451, %v734_v23   ;;  %747 = vperm.xlu0 %1450, %v733_v24  }
  0x3a   : > { %782 = vperm.xlu1 %1451, %v768_v25   ;;  %777 = vperm.xlu0 %1450, %v767_v26  }
  0x3e   : > { %792 = vperm.xlu1 %1451, %v770_v27   ;;  %787 = vperm.xlu0 %1450, %v769_v28  }
  0x42   : > { %802 = vperm.xlu1 %1451, %v772_v29   ;;  %797 = vperm.xlu0 %1450, %v771_v30  }
  0x46   : > { %812 = vperm.xlu1 %1451, %v774_v31   ;;  %807 = vperm.xlu0 %1450, %v773_v32  }
  0x4a   : > { %1000 = vperm.xlu1 %1451, %v990_v33   ;;  %995 = vperm.xlu0 %1450, %v989_v34  }
  0x4e   : > { %1010 = vperm.xlu1 %1451, %v992_v35   ;;  %1005 = vperm.xlu0 %1450, %v991_v36  }
  0x52   : > { %1121 = vperm.xlu1 %1451, %v1111_v37   ;;  %1116 = vperm.xlu0 %1450, %v1110_v38  }
  0x56   : > { %1131 = vperm.xlu1 %1451, %v1113_v39   ;;  %1126 = vperm.xlu0 %1450, %v1112_v40  }
  0x91   : > { %v581_v44 = vpop.permute.xlu1 %580  ;;  %v571_v45 = vpop.permute.xlu0 %570 }
  0x92   : > { %v588_v47 = vmul.f32 %v571_v45, %v564_v42  ;;  %v590_v48 = vmul.f32 %v581_v44, %v566_v43 }
  0x94   : > { %v1668_v52 = vadd.f32 %v588_v47, %v556_v46  ;;  %v1670_v57 = vadd.f32 %v590_v48, %v558_v49 }
  0x95   : > { %v586_v53 = vpop.permute.xlu1 %585  ;;  %v576_v54 = vpop.permute.xlu0 %575 }
  0x96   : > { %v591_v58 = vmul.f32 %v586_v53, %v567_v50  ;;  %v589_v59 = vmul.f32 %v576_v54, %v565_v51  ;;  %v612_v60 = vmul.f32 %v1668_v52, %v1668_v52  ;;  %v614_v63 = vmul.f32 %v1670_v57, %v1670_v57 }
  0x97   : > { %v597_v0 = vsel %vm596_vm1, %v1668_v52, 0.0  ;;  %v600_v4 = vsel %vm596_vm1, %v1670_v57, 0.0 }
  0x98   : > { %v1674_v61 = vadd.f32 %v591_v58, %v559_v55  ;;  %v1676_v62 = vadd.f32 %v589_v59, %v557_v56  ;;  %v616_v5 = vsel %vm596_vm1, %v612_v60, 0.0  ;;  %v619_v10 = vsel %vm596_vm1, %v614_v63, 0.0 }
  0x99   : > { %v655_v14 = vpop.permute.xlu1 %654  ;;  %v650_v15 = vpop.permute.xlu0 %649 }
  0x9a   : > { %v598_v1 = vsel %vm596_vm1, %v1676_v62, 0.0  ;;  %v613_v2 = vmul.f32 %v1676_v62, %v1676_v62  ;;  %v615_v6 = vmul.f32 %v1674_v61, %v1674_v61  ;;  %v602_v11 = vsel %vm596_vm1, %v1674_v61, 0.0 }
  0x9b   : > { %v599_v3 = vadd.f32 %v598_v1, %v597_v0 }
  0x9c   : > { %v617_v7 = vsel %vm596_vm1, %v613_v2, 0.0  ;;  %v621_v16 = vsel %vm596_vm1, %v615_v6, 0.0 }
  0x9d   : > { %v601_v8 = vadd.f32 %v600_v4, %v599_v3  ;;  %v618_v9 = vadd.f32 %v617_v7, %v616_v5  ;;  %v683_v23 = vpop.permute.xlu1 %682  ;;  %v678_v24 = vpop.permute.xlu0 %677 }
  0x9f   : > { %v603_v12 = vadd.f32 %v602_v11, %v601_v8  ;;  %v620_v13 = vadd.f32 %v619_v10, %v618_v9 }
  0xa1   : > { %v604_v17 = vrot.slane %v603_v12, 4  ;;  %v622_v18 = vadd.f32 %v621_v16, %v620_v13  ;;  %v665_v31 = vpop.permute.xlu1 %664  ;;  %v660_v32 = vpop.permute.xlu0 %659 }
  0xa3   : > { %v605_v19 = vadd.f32 %v604_v17, %v603_v12  ;;  %v623_v20 = vrot.slane %v622_v18, 4 }
  0xa5   : > { %v606_v21 = vrot.slane %v605_v19, 2  ;;  %v624_v22 = vadd.f32 %v623_v20, %v622_v18  ;;  %v715_v38 = vpop.permute.xlu1 %714  ;;  %v710_v39 = vpop.permute.xlu0 %709  ;;  %v763_v20 = vld [vmem:[%s1773_s8 + $0x20] sm:$0xff] }
  0xa7   : > { %v625_v25 = vrot.slane %v624_v22, 2  ;;  %v607_v26 = vadd.f32 %v606_v21, %v605_v19  ;;  %v762_v19 = vld [vmem:[%s1773_s8 + $0x18] sm:$0xff]  ;;  %v764_v21 = vld [vmem:[%s1773_s8 + $0x28] sm:$0xff] }
  0xa9   : > { %v626_v27 = vadd.f32 %v625_v25, %v624_v22  ;;  %v608_v28 = vrot.slane %v607_v26, 1  ;;  %v693_v42 = vpop.permute.xlu1 %692  ;;  %v688_v43 = vpop.permute.xlu0 %687  ;;  %v765_v22 = vld [vmem:[%s1773_s8 + $0x30] sm:$0xff] }
  0xab   : > { %v627_v29 = vrot.slane %v626_v27, 1  ;;  %v609_v30 = vadd.f32 %v608_v28, %v607_v26 }
  0xad   : > { %v628_v33 = vadd.f32 %v627_v29, %v626_v27  ;;  %v611_v34 = vmul.f32 0.03125, %v609_v30  ;;  %v743_v44 = vpop.permute.xlu1 %742  ;;  %v738_v45 = vpop.permute.xlu0 %737 }
  0xaf   : > { %v629_v35 = vmul.f32 0.03125, %v628_v33  ;;  %v630_v36 = vmul.f32 %v611_v34, %v611_v34  ;;  %v634_v46 = vsub.f32 %v1676_v62, %v611_v34  ;;  %v633_v47 = vsub.f32 %v1668_v52, %v611_v34 }
  0xb0   : > { %v636_v48 = vsub.f32 %v1674_v61, %v611_v34  ;;  %v635_v49 = vsub.f32 %v1670_v57, %v611_v34 }
  0xb1   : > { %v631_v37 = vsub.f32 %v629_v35, %v630_v36  ;;  %v725_v56 = vpop.permute.xlu1 %724  ;;  %v720_v58 = vpop.permute.xlu0 %719 }
  0xb3   : > { %v632_v40 = vmax.f32 %v631_v37, 0.0 }
  0xb5   : > { %v637_v41 = vadd.f32 1e-05, %v632_v40  ;;  %v753_v9 = vpop.permute.xlu1 %752  ;;  %v748_v10 = vpop.permute.xlu0 %747 }
  0xb7   : > { %1452 = vrsqrt.f32 %v637_v41 }
  0xb9   : > { %v783_v25 = vpop.permute.xlu1 %782  ;;  %v778_v26 = vpop.permute.xlu0 %777 }
  0xbd   : > { %v793_v27 = vpop.permute.xlu1 %792  ;;  %v788_v29 = vpop.permute.xlu0 %787 }
  0xc1   : > { %v1453_v50 = vpop.eup %1452  ;;  %v798_v40 = vpop.permute.xlu0 %797 }
  0xc2   : > { %v640_v51 = vmul.f32 %v1453_v50, %v634_v46  ;;  %v639_v53 = vmul.f32 %v1453_v50, %v633_v47  ;;  %v642_v54 = vmul.f32 %v1453_v50, %v636_v48  ;;  %v641_v55 = vmul.f32 %v1453_v50, %v635_v49 }
  0xc4   : > { %v668_v59 = vmul.f32 %v655_v14, %v640_v51  ;;  %v667_v60 = vmul.f32 %v650_v15, %v639_v53  ;;  %v670_v63 = vmul.f32 %v665_v31, %v642_v54  ;;  %v669_v0 = vmul.f32 %v660_v32, %v641_v55  ;;  %v760_v14 = vld [vmem:[%s1773_s8 + $0x8] sm:$0xff]  ;;  %v761_v15 = vld [vmem:[%s1773_s8 + $0x10] sm:$0xff] }
  0xc5   : > { %v808_v51 = vpop.permute.xlu0 %807 }
  0xc6   : > { %v696_v1 = vadd.f32 %v683_v23, %v668_v59  ;;  %v695_v2 = vadd.f32 %v678_v24, %v667_v60  ;;  %v698_v3 = vadd.f32 %v693_v42, %v670_v63  ;;  %v697_v4 = vadd.f32 %v688_v43, %v669_v0  ;;  %v766_v23 = vld [vmem:[%s1773_s8 + $0x38] sm:$0xff]  ;;  %v985_v24 = vld [vmem:[%s1775_s10] sm:$0xff] }
  0xc7   : > { %1395 = vmatprep.mubr.msk.f32.mxu1 %vm596_vm1, %v985_v24 }
  0xc8   : > { %v728_v5 = vmul.f32 %v715_v38, %v696_v1  ;;  %v727_v6 = vmul.f32 %v710_v39, %v695_v2  ;;  %v730_v7 = vmul.f32 %v725_v56, %v698_v3  ;;  %v729_v8 = vmul.f32 %v720_v58, %v697_v4  ;;  %v803_v38 = vpop.permute.xlu1 %802 }
  0xca   : > { %v756_v11 = vadd.f32 %v743_v44, %v728_v5  ;;  %v755_v12 = vadd.f32 %v738_v45, %v727_v6  ;;  %v758_v13 = vadd.f32 %v753_v9, %v730_v7  ;;  %v757_v16 = vadd.f32 %v748_v10, %v729_v8 }
  0xcc   : > { %v1401_v17 = vpack.c.bf16 %v756_v11, %v755_v12  ;;  %v1405_v18 = vpack.c.bf16 %v758_v13, %v757_v16  ;;  %v813_v48 = vpop.permute.xlu1 %812 }
  0xce   : > { %1402 = vmatprep.subr.bf16.mxu0 %v1401_v17 }
  0xcf   : > { %1404 = vmatpush3.bf16.msra.mxu0 %v1401_v17 }
  0xd0   : > { %1406 = vmatprep.subr.bf16.mxu0 %v1405_v18 }
  0xd3   : > { %1408 = vmatpush3.bf16.msra.mxu0 %v1405_v18 }
  0xd6   : > { %1368 = vmatmul.mubr.msk.f32.vlgmr.msra.gmra.mrb[0].mxu0 %vm815_vm0, %v760_v14 }
  0xd7   : > { %1370 = vmatprep.mubr.msk.f32.mxu0 %vm815_vm0, %v761_v15 }
  0xda   : > { %1371 = vmatmul.mubr.msk.f32.gmra.mrb[2].mxu0 %vm815_vm0, %v762_v19 }
  0xdb   : > { %1373 = vmatprep.mubr.msk.f32.mxu0 %vm815_vm0, %v763_v20 }
  0xde   : > { %1374 = vmatmul.mubr.msk.f32.gmra.mrb[4].mxu0 %vm815_vm0, %v764_v21 }
  0xdf   : > { %1376 = vmatprep.mubr.msk.f32.mxu0 %vm815_vm0, %v765_v22 }
  0xe2   : > { %1377 = vmatmul.mubr.msk.f32.gmra.mrb[6].mxu0 %vm815_vm0, %v766_v23 }
 0x1a9   : > { %v1369_v28 = vpop.f32.mrb[0].mxu0 }
 0x1aa   : > { %v912_v30 = vadd.f32 %v1369_v28, %v783_v25  ;;  %v906_v31 = vpop.f32.mrb[1].mxu0 }
 0x1ab   : > { %v907_v32 = vadd.f32 %v906_v31, %v778_v26 }
 0x1ac   : > { %v954_v33 = vmul.f32 0.70710677, %v912_v30  ;;  %v946_v60 = vmul.f32 0.5, %v912_v30 }
 0x1ad   : > { %v953_v34 = vmul.f32 0.70710677, %v907_v32  ;;  %v1372_v35 = vpop.f32.mrb[2].mxu0  ;;  %v945_v1 = vmul.f32 0.5, %v907_v32 }
 0x1ae   : > { %1454 = verf.f32 %v954_v33  ;;  %v922_v36 = vadd.f32 %v1372_v35, %v793_v27  ;;  %v916_v37 = vpop.f32.mrb[3].mxu0  ;;  %v986_v33 = vld [vmem:[%s1775_s10 + $0x8] sm:$0xff]  ;;  %v988_v35 = vld [vmem:[%s1775_s10 + $0x18] sm:$0xff] }
 0x1af   : > { %1456 = verf.f32 %v953_v34  ;;  %v917_v39 = vadd.f32 %v916_v37, %v788_v29  ;;  %v987_v34 = vld [vmem:[%s1775_s10 + $0x10] sm:$0xff]  ;;  %v996_v37 = vpop.permute.xlu0 %995 }
 0x1b0   : > { %v956_v41 = vmul.f32 0.70710677, %v922_v36  ;;  %v948_v7 = vmul.f32 0.5, %v922_v36  ;;  %v1001_v36 = vpop.permute.xlu1 %1000 }
 0x1b1   : > { %v955_v42 = vmul.f32 0.70710677, %v917_v39  ;;  %v1375_v43 = vpop.f32.mrb[4].mxu0  ;;  %v947_v9 = vmul.f32 0.5, %v917_v39 }
 0x1b2   : > { %1458 = verf.f32 %v956_v41  ;;  %v932_v44 = vadd.f32 %v1375_v43, %v803_v38  ;;  %v926_v45 = vpop.f32.mrb[5].mxu0 }
 0x1b3   : > { %1460 = verf.f32 %v955_v42  ;;  %v927_v46 = vadd.f32 %v926_v45, %v798_v40  ;;  %v1006_v39 = vpop.permute.xlu0 %1005 }
 0x1b4   : > { %v958_v47 = vmul.f32 0.70710677, %v932_v44  ;;  %v950_v18 = vmul.f32 0.5, %v932_v44  ;;  %v1011_v38 = vpop.permute.xlu1 %1010 }
 0x1b5   : > { %v957_v49 = vmul.f32 0.70710677, %v927_v46  ;;  %v1378_v50 = vpop.f32.mrb[6].mxu0  ;;  %v949_v15 = vmul.f32 0.5, %v927_v46 }
 0x1b6   : > { %1462 = verf.f32 %v958_v47  ;;  %v942_v53 = vadd.f32 %v1378_v50, %v813_v48  ;;  %v936_v54 = vpop.f32.mrb[7].mxu0 }
 0x1b7   : > { %1464 = verf.f32 %v957_v49  ;;  %v937_v55 = vadd.f32 %v936_v54, %v808_v51  ;;  %v1117_v42 = vpop.permute.xlu0 %1116 }
 0x1b8   : > { %v1455_v56 = vpop.eup %1454  ;;  %v960_v58 = vmul.f32 0.70710677, %v942_v53  ;;  %v952_v25 = vmul.f32 0.5, %v942_v53  ;;  %v1122_v40 = vpop.permute.xlu1 %1121 }
 0x1b9   : > { %v1457_v59 = vpop.eup %1456  ;;  %v959_v63 = vmul.f32 0.70710677, %v937_v55  ;;  %v970_v0 = vadd.f32 1.0, %v1455_v56  ;;  %v951_v27 = vmul.f32 0.5, %v937_v55 }
 0x1ba   : > { %1466 = verf.f32 %v960_v58  ;;  %v969_v2 = vadd.f32 1.0, %v1457_v59 }
 0x1bb   : > { %1468 = verf.f32 %v959_v63  ;;  %v978_v3 = vmul.f32 %v970_v0, %v946_v60  ;;  %v1127_v56 = vpop.permute.xlu0 %1126 }
 0x1bc   : > { %v1459_v4 = vpop.eup %1458  ;;  %v977_v5 = vmul.f32 %v969_v2, %v945_v1  ;;  %v1132_v53 = vpop.permute.xlu1 %1131 }
 0x1bd   : > { %v1461_v6 = vpop.eup %1460  ;;  %v972_v8 = vadd.f32 1.0, %v1459_v4 }
 0x1be   : > { %v971_v10 = vadd.f32 1.0, %v1461_v6  ;;  %v1409_v11 = vpack.c.bf16 %v978_v3, %v977_v5 }
 0x1bf   : > { %v980_v12 = vmul.f32 %v972_v8, %v948_v7 }
 0x1c0   : > { %v1463_v13 = vpop.eup %1462  ;;  %v979_v16 = vmul.f32 %v971_v10, %v947_v9  ;;  %1410 = vmatprep.subr.bf16.mxu1 %v1409_v11 }
 0x1c1   : > { %v1465_v17 = vpop.eup %1464  ;;  %v974_v14 = vadd.f32 1.0, %v1463_v13  ;;  %1412 = vmatpush3.bf16.msra.mxu1 %v1409_v11 }
 0x1c2   : > { %v973_v19 = vadd.f32 1.0, %v1465_v17  ;;  %v1413_v20 = vpack.c.bf16 %v980_v12, %v979_v16 }
 0x1c3   : > { %v982_v21 = vmul.f32 %v974_v14, %v950_v18 }
 0x1c4   : > { %v1467_v22 = vpop.eup %1466  ;;  %v981_v23 = vmul.f32 %v973_v19, %v949_v15  ;;  %1414 = vmatprep.subr.bf16.mxu1 %v1413_v20 }
 0x1c5   : > { %v1469_v24 = vpop.eup %1468  ;;  %v976_v26 = vadd.f32 1.0, %v1467_v22  ;;  %1416 = vmatpush3.bf16.msra.mxu1 %v1413_v20 }
 0x1c6   : > { %v975_v28 = vadd.f32 1.0, %v1469_v24  ;;  %v1417_v29 = vpack.c.bf16 %v982_v21, %v981_v23 }
 0x1c7   : > { %v984_v30 = vmul.f32 %v976_v26, %v952_v25 }
 0x1c8   : > { %v983_v31 = vmul.f32 %v975_v28, %v951_v27  ;;  %1418 = vmatprep.subr.bf16.mxu1 %v1417_v29 }
 0x1c9   : > { %1420 = vmatpush3.bf16.msra.mxu1 %v1417_v29 }
 0x1ca   : > { %v1421_v32 = vpack.c.bf16 %v984_v30, %v983_v31 }
 0x1cc   : > { %1422 = vmatprep.subr.bf16.mxu1 %v1421_v32 }
 0x1cd   : > { %1424 = vmatpush3.bf16.msra.mxu1 %v1421_v32 }
 0x1d0   : > { %1396 = vmatmul.mubr.msk.f32.vlgmr.msra.gmra.mrb[0].mxu1 %vm596_vm1, %v986_v33 }
 0x1d1   : > { %1398 = vmatprep.mubr.msk.f32.mxu1 %vm596_vm1, %v987_v34 }
 0x1d4   : > { %1399 = vmatmul.mubr.msk.f32.gmra.mrb[2].mxu1 %vm596_vm1, %v988_v35 }
 0x2a3   : > { %v1397_v41 = vpop.f32.mrb[0].mxu1 }
 0x2a4   : > { %v1097_v43 = vadd.f32 %v1397_v41, %v1001_v36  ;;  %v1091_v44 = vpop.f32.mrb[1].mxu1 }
 0x2a5   : > { %v1092_v45 = vadd.f32 %v1091_v44, %v996_v37 }
 0x2a6   : > { %v1135_v46 = vmul.f32 %v1122_v40, %v1097_v43 }
 0x2a7   : > { %v1134_v47 = vmul.f32 %v1117_v42, %v1092_v45  ;;  %v1400_v48 = vpop.f32.mrb[2].mxu1 }
 0x2a8   : > { %v1139_v49 = vadd.f32 %v1135_v46, %v1676_v62  ;;  %v1107_v50 = vadd.f32 %v1400_v48, %v1011_v38  ;;  %v1101_v51 = vpop.f32.mrb[3].mxu1 }
 0x2a9   : > { %v1138_v54 = vadd.f32 %v1134_v47, %v1668_v52  ;;  %v1102_v55 = vadd.f32 %v1101_v51, %v1006_v39 }
 0x2aa   : > { %1143 = vst.msk [vmem:[%s555_s27 + $0x8] sm:$0xff] %vm596_vm1, %v1139_v49  ;;  %v1137_v58 = vmul.f32 %v1132_v53, %v1107_v50 }
 0x2ab   : > { %1142 = vst.msk [vmem:[%s555_s27] sm:$0xff] %vm596_vm1, %v1138_v54  ;;  %v1136_v59 = vmul.f32 %v1127_v56, %v1102_v55 }
 0x2ac   : > { %v1141_v60 = vadd.f32 %v1137_v58, %v1674_v61 }
 0x2ad   : > { %v1140_v63 = vadd.f32 %v1136_v59, %v1670_v57 }
 0x2ae   : > { %1145 = vst.msk [vmem:[%s555_s27 + $0x18] sm:$0xff] %vm596_vm1, %v1141_v60 }
 0x2af   : > { %1144 = vst.msk [vmem:[%s555_s27 + $0x10] sm:$0xff] %vm596_vm1, %v1140_v63 }
 0x2b0 PF: > { %s22_s23 = sadd.s32 1, %s1492_s23   ;;  %s1778_s21 = smov %s1488_s22 }
 0x2b1   : > { %p19_p5 = scmp.ge.s32.totalorder %s22_s23, 4   ;;  %s1779_s22 = smov %s1781_s24 }
 0x2b3   :  { %21 = sbr.rel (!%p19_p5) target bundleno = 2 (0x2), region = 113 }

</bundles_post_ra>
